<compile_context>
chip_gen: v6e
topology: v6e:2x2x1
jax: 0.10.0
libtpu: 0.0.40
codegen_flags: <defaults>
</compile_context>

<pallas_src>
import jax
import jax.numpy as jnp
import numpy as np
from jax import lax
from jax.experimental import pallas as pl
from jax.experimental.pallas import tpu as pltpu


# ----------------------------- Pallas kernel --------------------------------
def conv_bn_prelu_kernel(x_ref, w_ref, sb_ref, alpha_ref, out_ref, scr_ref):
    """TH output rows of (H-upsample + pad + conv3x3 + BN + PReLU) for batch n.

    x_ref     : (1, H, R, Cin)          bf16  W-upsampled, W-zero-padded rows
    w_ref     : (9, Cin, Cout)          bf16  conv weight, tap index = 3*dy + dx
    sb_ref    : (2, Cout)               f32   row 0: BN scale, row 1: folded bias
    alpha_ref : (1,)                    f32   PReLU slope (SMEM)
    out_ref   : (1, TH*R, Cout)         f32   flattened (row, padded-col) tile
    scr_ref   : ((TH+2)*R + 8, Cin)     bf16  single-storage halo scratch
    """
    _, H, R, Cin = x_ref.shape
    THR = out_ref.shape[1]
    TH = THR // R
    H2 = 2 * H

    y0 = pl.program_id(1) * TH              # first output row of this tile

    # ---- fused H-direction bilinear 2x upsample + conv zero-pad -------------
    # Build the halo scratch: TH+2 upsampled rows [y0-1, y0+TH], each stored
    # exactly once as R flat rows (R is a multiple of 8 -> aligned stores).
    def build_row(t, carry):
        r = y0 + t - 1                                      # upsampled row idx
        src = jnp.maximum(r.astype(jnp.float32) * 0.5 - 0.25, 0.0)
        i0 = jnp.minimum(jnp.floor(src).astype(jnp.int32), H - 1)
        i1 = jnp.minimum(i0 + 1, H - 1)
        frac = src - i0.astype(jnp.float32)
        row0 = x_ref[0, i0, :, :].astype(jnp.float32)       # (R, Cin)
        row1 = x_ref[0, i1, :, :].astype(jnp.float32)
        valid = jnp.logical_and(r >= 0, r < H2)             # zero row = conv H-pad
        row = jnp.where(valid, row0 + (row1 - row0) * frac, 0.0)
        base = pl.multiple_of(t * R, 8)                     # R % 8 == 0
        scr_ref[pl.ds(base, R), :] = row.astype(scr_ref.dtype)
        return carry

    lax.fori_loop(0, TH + 2, build_row, 0)

    # Tail rows are only read by taps of the dropped padding-column outputs;
    # zero them so results stay finite/deterministic.
    scr_ref[pl.ds((TH + 2) * R, 8), :] = jnp.zeros((8, Cin), scr_ref.dtype)

    # ---- 3x3 conv: 9 MXU matmuls over row-shifted views (K = Cin) -----------
    # Tap (dy, dx) of flat output position p lives at scratch row p + dy*R + dx.
    acc = None
    for dy in range(3):
        for dx in range(3):
            a = scr_ref[pl.ds(dy * R + dx, THR), :]          # (TH*R, Cin) bf16
            c = jnp.dot(a, w_ref[3 * dy + dx],
                        preferred_element_type=jnp.float32)  # (TH*R, Cout) f32
            acc = c if acc is None else acc + c

    # ---- fused BatchNorm (inference) + PReLU, single store -------------------
    z = acc * sb_ref[0:1, :] + sb_ref[1:2, :]
    out_ref[0, :, :] = jnp.where(z > 0, z, alpha_ref[0] * z)


# ------------------------------ JAX glue -------------------------------------
def _round_up(v, m):
    return ((v + m - 1) // m) * m


def _pick_tile_rows(h2, max_rows=16):
    """Largest TH <= max_rows that divides H2 (R is already 8-aligned)."""
    cand = [th for th in range(1, min(h2, max_rows) + 1) if h2 % th == 0]
    return max(cand) if cand else h2


def _pick_vmem_limit(footprint_bytes):
    """Derive vmem_limit_bytes from the actual footprint, per chip capacity."""
    try:
        cap = int(pltpu.get_tpu_info().vmem_capacity_bytes)
    except Exception:  # interpret mode / older jax: assume the smallest (v7x)
        cap = 64 * 1024 * 1024
    limit = min(max(32 * 1024 * 1024, 2 * footprint_bytes), int(0.75 * cap))
    return int(max(limit, min(footprint_bytes + (8 << 20), cap)))


def psp_upsample_forward(x_nchw, params, *, max_tile_rows=16):
    """PSPUpsample.forward.  Input/output are NCHW like the PyTorch module."""
    eps = 1e-5
    w = params["conv_w"]                                    # (Cout, Cin, 3, 3)
    Cout, Cin = int(w.shape[0]), int(w.shape[1])
    N, _, H, W = (int(s) for s in x_nchw.shape)
    H2, W2 = 2 * H, 2 * W
    R = _round_up(W2 + 2, 8)            # padded output width, sublane-aligned

    x = jnp.transpose(x_nchw, (0, 2, 3, 1)).astype(jnp.float32)   # NHWC

    # W-direction bilinear 2x upsample with structured shifted lerps (no
    # gather), plus the conv's W zero-padding (padded out to R columns).
    # H-direction upsample + H zero-pad are fused in-kernel.
    prev = jnp.concatenate([x[:, :, :1], x[:, :, :-1]], axis=2)
    nxt = jnp.concatenate([x[:, :, 1:], x[:, :, -1:]], axis=2)
    even = 0.25 * prev + 0.75 * x        # output col 2k
    odd = 0.75 * x + 0.25 * nxt          # output col 2k+1
    xw = jnp.stack([even, odd], axis=3).reshape(N, H, W2, Cin)
    xw = jnp.pad(xw, ((0, 0), (0, 0), (1, R - 1 - W2), (0, 0))).astype(jnp.bfloat16)

    # conv weight -> (9, Cin, Cout), tap index 3*dy + dx
    w_k = jnp.transpose(w, (2, 3, 1, 0)).reshape(9, Cin, Cout).astype(jnp.bfloat16)

    # folded BatchNorm (inference) affine: scale = gamma / sqrt(var + eps)
    scale = params["bn_gamma"] / jnp.sqrt(params["bn_var"] + eps)
    bias = params["bn_beta"] + (params["conv_b"] - params["bn_mean"]) * scale
    sb = jnp.stack([scale, bias]).astype(jnp.float32)       # (2, Cout)
    alpha = jnp.reshape(jnp.asarray(params["prelu_a"], jnp.float32), (1,))

    TH = _pick_tile_rows(H2, max_tile_rows)
    grid = (N, H2 // TH)                                    # both "parallel"

    # VMEM footprint: double-buffered blocks + scratch (+ small extras).
    in_block = H * R * Cin * 2
    w_block = 9 * Cin * Cout * 2
    out_block = TH * R * Cout * 4
    scratch_b = ((TH + 2) * R + 8) * Cin * 2
    footprint = 2 * (in_block + w_block + out_block) + scratch_b + 2 * Cout * 4
    vmem_limit = _pick_vmem_limit(footprint)

    flops = 2 * N * H2 * R * Cin * Cout * 9 + 8 * N * H2 * R * max(Cin, Cout)
    bytes_accessed = (N * H * R * Cin * 2 + 9 * Cin * Cout * 2
                      + 2 * Cout * 4 + 4 + N * H2 * R * Cout * 4)

    out_flat = pl.pallas_call(
        conv_bn_prelu_kernel,
        out_shape=jax.ShapeDtypeStruct((N, H2 * R, Cout), jnp.float32),
        grid_spec=pltpu.PrefetchScalarGridSpec(
            num_scalar_prefetch=0,
            grid=grid,
            in_specs=[
                pl.BlockSpec((1, H, R, Cin), lambda n, y: (n, 0, 0, 0)),
                pl.BlockSpec((9, Cin, Cout), lambda n, y: (0, 0, 0)),
                pl.BlockSpec((2, Cout), lambda n, y: (0, 0)),
                pl.BlockSpec(memory_space=pltpu.MemorySpace.SMEM),
            ],
            out_specs=pl.BlockSpec((1, TH * R, Cout), lambda n, y: (n, y, 0)),
            scratch_shapes=[pltpu.VMEM(((TH + 2) * R + 8, Cin), jnp.bfloat16)],
        ),
        compiler_params=pltpu.CompilerParams(
            dimension_semantics=("parallel", "parallel"),
            vmem_limit_bytes=vmem_limit,
        ),
        cost_estimate=pl.CostEstimate(
            flops=flops, transcendentals=0, bytes_accessed=bytes_accessed),
    )(xw, w_k, sb, alpha)

    # drop the garbage (padding) columns, back to NCHW (module semantics)
    out = out_flat.reshape(N, H2, R, Cout)[:, :, :W2, :]
    return jnp.transpose(out, (0, 3, 1, 2))


# ------------------------------ Reference ------------------------------------
def upsample2x_bilinear(x):
    """Bilinear 2x upsample, NHWC, matching F.interpolate(align_corners=False)."""
    N, H, W, C = x.shape

    def src_idx(in_size):
        out = 2 * in_size
        d = jnp.arange(out, dtype=jnp.float32)
        src = jnp.maximum((d + 0.5) * 0.5 - 0.5, 0.0)
        i0 = jnp.minimum(jnp.floor(src).astype(jnp.int32), in_size - 1)
        i1 = jnp.minimum(i0 + 1, in_size - 1)
        l1 = src - i0.astype(jnp.float32)
        return i0, i1, l1

    i0, i1, lh = src_idx(H)
    x = (x[:, i0] * (1.0 - lh)[None, :, None, None]
         + x[:, i1] * lh[None, :, None, None])
    j0, j1, lw = src_idx(W)
    x = (x[:, :, j0] * (1.0 - lw)[None, None, :, None]
         + x[:, :, j1] * lw[None, None, :, None])
    return x


def psp_upsample_reference(x_nchw, params):
    eps = 1e-5
    x = jnp.transpose(x_nchw, (0, 2, 3, 1)).astype(jnp.float32)
    up = upsample2x_bilinear(x)
    w_hwio = jnp.transpose(params["conv_w"], (2, 3, 1, 0))        # (3,3,Cin,Cout)
    conv = jax.lax.conv_general_dilated(
        up, w_hwio, window_strides=(1, 1), padding=((1, 1), (1, 1)),
        dimension_numbers=("NHWC", "HWIO", "NHWC"),
    ) + params["conv_b"]
    scale = params["bn_gamma"] / jnp.sqrt(params["bn_var"] + eps)
    y = (conv - params["bn_mean"]) * scale + params["bn_beta"]
    y = jnp.where(y > 0, y, params["prelu_a"] * y)
    return jnp.transpose(y, (0, 3, 1, 2))


# --------------------------------- Main ---------------------------------------
if __name__ == "__main__":
    key = jax.random.PRNGKey(0)
    k_x, k_w, k_b, k_g, k_be, k_m, k_v = jax.random.split(key, 7)

    N, Cin, H, W = 2, 4, 16, 16
    Cout = 8

    x = jax.random.normal(k_x, (N, Cin, H, W), jnp.float32)

    params = {
        "conv_w": 0.1 * jax.random.normal(k_w, (Cout, Cin, 3, 3), jnp.float32),
        "conv_b": 0.1 * jax.random.normal(k_b, (Cout,), jnp.float32),
        "bn_gamma": 1.0 + 0.1 * jax.random.normal(k_g, (Cout,), jnp.float32),
        "bn_beta": 0.1 * jax.random.normal(k_be, (Cout,), jnp.float32),
        "bn_mean": 0.1 * jax.random.normal(k_m, (Cout,), jnp.float32),
        "bn_var": 0.5 + jnp.abs(jax.random.normal(k_v, (Cout,), jnp.float32)) * 0.1,
        "prelu_a": jnp.float32(0.25),          # nn.PReLU() default init
    }

    out = jax.block_until_ready(psp_upsample_forward(x, params))
    ref = jax.block_until_ready(psp_upsample_reference(x, params))

    assert out.shape == (N, Cout, 2 * H, 2 * W), out.shape
    # bf16 matmul operands (f32 accumulation) -> loosened tolerance vs f32 ref
    np.testing.assert_allclose(np.asarray(out), np.asarray(ref),
                               rtol=2e-2, atol=2e-2)
    print("KERNEL_OK")
</pallas_src>

<mosaic_0001>
module attributes {stable_mosaic.version = 11 : i64} {
  func.func @conv_bn_prelu_kernel(%arg0: i32, %arg1: i32, %arg2: memref<1x16x40x4xbf16, #tpu.memory_space<vmem>>, %arg3: memref<9x4x8xbf16, #tpu.memory_space<vmem>>, %arg4: memref<2x8xf32, #tpu.memory_space<vmem>>, %arg5: memref<1xf32, #tpu.memory_space<smem>>, %arg6: memref<1x640x8xf32, #tpu.memory_space<vmem>>, %arg7: memref<728x4xbf16, #tpu.memory_space<vmem>>) attributes {dimension_semantics = [#tpu.dimension_semantics<parallel>, #tpu.dimension_semantics<parallel>], iteration_bounds = array<i64: 2, 2>, scalar_prefetch = 0 : i64, scratch_operands = 1 : i64, tpu.core_type = #tpu.core_type<tc>, window_params = [{transform_indices = @transform_0, window_bounds = array<i64: 1, 16, 40, 4>}, {pipeline_mode = #tpu.pipeline_mode<synchronous>, transform_indices = @transform_1, window_bounds = array<i64: 9, 4, 8>}, {pipeline_mode = #tpu.pipeline_mode<synchronous>, transform_indices = @transform_2, window_bounds = array<i64: 2, 8>}, {transform_indices = @transform_3, window_bounds = array<i64: 1>}, {transform_indices = @transform_4, window_bounds = array<i64: 1, 640, 8>}]} {
    %c16_i32 = arith.constant 16 : i32
    %0 = arith.muli %arg1, %c16_i32 : i32
    %c0_i32 = arith.constant 0 : i32
    %c18_i32 = arith.constant 18 : i32
    %1 = arith.addi %c0_i32, %c18_i32 : i32
    %c1_i32 = arith.constant 1 : i32
    scf.for %arg8 = %c0_i32 to %1 step %c1_i32  : i32 {
      %63 = arith.addi %0, %arg8 : i32
      %c1_i32_50 = arith.constant 1 : i32
      %64 = arith.subi %63, %c1_i32_50 : i32
      %65 = arith.sitofp %64 : i32 to f32
      %cst_51 = arith.constant 5.000000e-01 : f32
      %66 = arith.mulf %65, %cst_51 : f32
      %cst_52 = arith.constant 2.500000e-01 : f32
      %67 = arith.subf %66, %cst_52 : f32
      %cst_53 = arith.constant 0.000000e+00 : f32
      %68 = arith.maximumf %67, %cst_53 : f32
      %69 = math.floor %68 : f32
      %70 = arith.fptosi %69 : f32 to i32
      %c15_i32 = arith.constant 15 : i32
      %71 = arith.minsi %70, %c15_i32 : i32
      %c1_i32_54 = arith.constant 1 : i32
      %72 = arith.addi %71, %c1_i32_54 : i32
      %c15_i32_55 = arith.constant 15 : i32
      %73 = arith.minsi %72, %c15_i32_55 : i32
      %74 = arith.sitofp %71 : i32 to f32
      %75 = arith.subf %68, %74 : f32
      %c0_56 = arith.constant 0 : index
      %76 = arith.index_cast %71 : i32 to index
      %c0_57 = arith.constant 0 : index
      %c0_58 = arith.constant 0 : index
      %77 = vector.load %arg2[%c0_56, %76, %c0_57, %c0_58] : memref<1x16x40x4xbf16, #tpu.memory_space<vmem>>, vector<1x1x40x4xbf16>
      %78 = vector.shape_cast %77 : vector<1x1x40x4xbf16> to vector<40x4xbf16>
      %79 = arith.extf %78 : vector<40x4xbf16> to vector<40x4xf32>
      %c0_59 = arith.constant 0 : index
      %80 = arith.index_cast %73 : i32 to index
      %c0_60 = arith.constant 0 : index
      %c0_61 = arith.constant 0 : index
      %81 = vector.load %arg2[%c0_59, %80, %c0_60, %c0_61] : memref<1x16x40x4xbf16, #tpu.memory_space<vmem>>, vector<1x1x40x4xbf16>
      %82 = vector.shape_cast %81 : vector<1x1x40x4xbf16> to vector<40x4xbf16>
      %83 = arith.extf %82 : vector<40x4xbf16> to vector<40x4xf32>
      %c0_i32_62 = arith.constant 0 : i32
      %84 = arith.cmpi sge, %64, %c0_i32_62 : i32
      %c32_i32 = arith.constant 32 : i32
      %85 = arith.cmpi slt, %64, %c32_i32 : i32
      %86 = arith.andi %84, %85 : i1
      %87 = arith.subf %83, %79 : vector<40x4xf32>
      %88 = vector.broadcast %75 : f32 to vector<40x4xf32>
      %89 = arith.mulf %87, %88 : vector<40x4xf32>
      %90 = arith.addf %79, %89 : vector<40x4xf32>
      %cst_63 = arith.constant 0.000000e+00 : f32
      %91 = vector.broadcast %cst_63 : f32 to vector<40x4xf32>
      %92 = arith.select %86, %90, %91 : vector<40x4xf32>
      %c40_i32 = arith.constant 40 : i32
      %93 = arith.muli %arg8, %c40_i32 : i32
      %94 = tpu.assume_multiple %93, 8 : i32
      %95 = arith.truncf %92 : vector<40x4xf32> to vector<40x4xbf16>
      %96 = arith.index_cast %94 : i32 to index
      %c0_64 = arith.constant 0 : index
      %97 = vector.load %arg7[%96, %c0_64] : memref<728x4xbf16, #tpu.memory_space<vmem>>, vector<40x4xbf16>
      tpu.vector_store %arg7[%96, %c0_64], %95 {strides = array<i32>} : memref<728x4xbf16, #tpu.memory_space<vmem>>, vector<40x4xbf16>,
    }
    %c18_i32_0 = arith.constant 18 : i32
    %cst = arith.constant 0.000000e+00 : bf16
    %2 = vector.broadcast %cst : bf16 to vector<8x4xbf16>
    %c720 = arith.constant 720 : index
    %c0 = arith.constant 0 : index
    %3 = vector.load %arg7[%c720, %c0] : memref<728x4xbf16, #tpu.memory_space<vmem>>, vector<8x4xbf16>
    tpu.vector_store %arg7[%c720, %c0], %2 {strides = array<i32>} : memref<728x4xbf16, #tpu.memory_space<vmem>>, vector<8x4xbf16>,
    %c0_1 = arith.constant 0 : index
    %c0_2 = arith.constant 0 : index
    %4 = vector.load %arg7[%c0_1, %c0_2] : memref<728x4xbf16, #tpu.memory_space<vmem>>, vector<640x4xbf16>
    %c0_3 = arith.constant 0 : index
    %c0_4 = arith.constant 0 : index
    %c0_5 = arith.constant 0 : index
    %5 = vector.load %arg3[%c0_3, %c0_4, %c0_5] : memref<9x4x8xbf16, #tpu.memory_space<vmem>>, vector<1x4x8xbf16>
    %6 = vector.shape_cast %5 : vector<1x4x8xbf16> to vector<4x8xbf16>
    %cst_6 = arith.constant dense<0.000000e+00> : vector<640x8xf32>
    %7 = tpu.matmul %4, %6, %cst_6 {dimension_numbers = #tpu.dot_dimension_numbers<[1], [0], [0], [1], [0, 0, 1, 1], [], []>} : vector<640x4xbf16>, vector<4x8xbf16>, vector<640x8xf32> -> vector<640x8xf32>
    %c1 = arith.constant 1 : index
    %c0_7 = arith.constant 0 : index
    %8 = vector.load %arg7[%c1, %c0_7] : memref<728x4xbf16, #tpu.memory_space<vmem>>, vector<640x4xbf16>
    %c1_8 = arith.constant 1 : index
    %c0_9 = arith.constant 0 : index
    %c0_10 = arith.constant 0 : index
    %9 = vector.load %arg3[%c1_8, %c0_9, %c0_10] : memref<9x4x8xbf16, #tpu.memory_space<vmem>>, vector<1x4x8xbf16>
    %10 = vector.shape_cast %9 : vector<1x4x8xbf16> to vector<4x8xbf16>
    %cst_11 = arith.constant dense<0.000000e+00> : vector<640x8xf32>
    %11 = tpu.matmul %8, %10, %cst_11 {dimension_numbers = #tpu.dot_dimension_numbers<[1], [0], [0], [1], [0, 0, 1, 1], [], []>} : vector<640x4xbf16>, vector<4x8xbf16>, vector<640x8xf32> -> vector<640x8xf32>
    %12 = arith.addf %7, %11 : vector<640x8xf32>
    %c2 = arith.constant 2 : index
    %c0_12 = arith.constant 0 : index
    %13 = vector.load %arg7[%c2, %c0_12] : memref<728x4xbf16, #tpu.memory_space<vmem>>, vector<640x4xbf16>
    %c2_13 = arith.constant 2 : index
    %c0_14 = arith.constant 0 : index
    %c0_15 = arith.constant 0 : index
    %14 = vector.load %arg3[%c2_13, %c0_14, %c0_15] : memref<9x4x8xbf16, #tpu.memory_space<vmem>>, vector<1x4x8xbf16>
    %15 = vector.shape_cast %14 : vector<1x4x8xbf16> to vector<4x8xbf16>
    %cst_16 = arith.constant dense<0.000000e+00> : vector<640x8xf32>
    %16 = tpu.matmul %13, %15, %cst_16 {dimension_numbers = #tpu.dot_dimension_numbers<[1], [0], [0], [1], [0, 0, 1, 1], [], []>} : vector<640x4xbf16>, vector<4x8xbf16>, vector<640x8xf32> -> vector<640x8xf32>
    %17 = arith.addf %12, %16 : vector<640x8xf32>
    %c40 = arith.constant 40 : index
    %c0_17 = arith.constant 0 : index
    %18 = vector.load %arg7[%c40, %c0_17] : memref<728x4xbf16, #tpu.memory_space<vmem>>, vector<640x4xbf16>
    %c3 = arith.constant 3 : index
    %c0_18 = arith.constant 0 : index
    %c0_19 = arith.constant 0 : index
    %19 = vector.load %arg3[%c3, %c0_18, %c0_19] : memref<9x4x8xbf16, #tpu.memory_space<vmem>>, vector<1x4x8xbf16>
    %20 = vector.shape_cast %19 : vector<1x4x8xbf16> to vector<4x8xbf16>
    %cst_20 = arith.constant dense<0.000000e+00> : vector<640x8xf32>
    %21 = tpu.matmul %18, %20, %cst_20 {dimension_numbers = #tpu.dot_dimension_numbers<[1], [0], [0], [1], [0, 0, 1, 1], [], []>} : vector<640x4xbf16>, vector<4x8xbf16>, vector<640x8xf32> -> vector<640x8xf32>
    %22 = arith.addf %17, %21 : vector<640x8xf32>
    %c41 = arith.constant 41 : index
    %c0_21 = arith.constant 0 : index
    %23 = vector.load %arg7[%c41, %c0_21] : memref<728x4xbf16, #tpu.memory_space<vmem>>, vector<640x4xbf16>
    %c4 = arith.constant 4 : index
    %c0_22 = arith.constant 0 : index
    %c0_23 = arith.constant 0 : index
    %24 = vector.load %arg3[%c4, %c0_22, %c0_23] : memref<9x4x8xbf16, #tpu.memory_space<vmem>>, vector<1x4x8xbf16>
    %25 = vector.shape_cast %24 : vector<1x4x8xbf16> to vector<4x8xbf16>
    %cst_24 = arith.constant dense<0.000000e+00> : vector<640x8xf32>
    %26 = tpu.matmul %23, %25, %cst_24 {dimension_numbers = #tpu.dot_dimension_numbers<[1], [0], [0], [1], [0, 0, 1, 1], [], []>} : vector<640x4xbf16>, vector<4x8xbf16>, vector<640x8xf32> -> vector<640x8xf32>
    %27 = arith.addf %22, %26 : vector<640x8xf32>
    %c42 = arith.constant 42 : index
    %c0_25 = arith.constant 0 : index
    %28 = vector.load %arg7[%c42, %c0_25] : memref<728x4xbf16, #tpu.memory_space<vmem>>, vector<640x4xbf16>
    %c5 = arith.constant 5 : index
    %c0_26 = arith.constant 0 : index
    %c0_27 = arith.constant 0 : index
    %29 = vector.load %arg3[%c5, %c0_26, %c0_27] : memref<9x4x8xbf16, #tpu.memory_space<vmem>>, vector<1x4x8xbf16>
    %30 = vector.shape_cast %29 : vector<1x4x8xbf16> to vector<4x8xbf16>
    %cst_28 = arith.constant dense<0.000000e+00> : vector<640x8xf32>
    %31 = tpu.matmul %28, %30, %cst_28 {dimension_numbers = #tpu.dot_dimension_numbers<[1], [0], [0], [1], [0, 0, 1, 1], [], []>} : vector<640x4xbf16>, vector<4x8xbf16>, vector<640x8xf32> -> vector<640x8xf32>
    %32 = arith.addf %27, %31 : vector<640x8xf32>
    %c80 = arith.constant 80 : index
    %c0_29 = arith.constant 0 : index
    %33 = vector.load %arg7[%c80, %c0_29] : memref<728x4xbf16, #tpu.memory_space<vmem>>, vector<640x4xbf16>
    %c6 = arith.constant 6 : index
    %c0_30 = arith.constant 0 : index
    %c0_31 = arith.constant 0 : index
    %34 = vector.load %arg3[%c6, %c0_30, %c0_31] : memref<9x4x8xbf16, #tpu.memory_space<vmem>>, vector<1x4x8xbf16>
    %35 = vector.shape_cast %34 : vector<1x4x8xbf16> to vector<4x8xbf16>
    %cst_32 = arith.constant dense<0.000000e+00> : vector<640x8xf32>
    %36 = tpu.matmul %33, %35, %cst_32 {dimension_numbers = #tpu.dot_dimension_numbers<[1], [0], [0], [1], [0, 0, 1, 1], [], []>} : vector<640x4xbf16>, vector<4x8xbf16>, vector<640x8xf32> -> vector<640x8xf32>
    %37 = arith.addf %32, %36 : vector<640x8xf32>
    %c81 = arith.constant 81 : index
    %c0_33 = arith.constant 0 : index
    %38 = vector.load %arg7[%c81, %c0_33] : memref<728x4xbf16, #tpu.memory_space<vmem>>, vector<640x4xbf16>
    %c7 = arith.constant 7 : index
    %c0_34 = arith.constant 0 : index
    %c0_35 = arith.constant 0 : index
    %39 = vector.load %arg3[%c7, %c0_34, %c0_35] : memref<9x4x8xbf16, #tpu.memory_space<vmem>>, vector<1x4x8xbf16>
    %40 = vector.shape_cast %39 : vector<1x4x8xbf16> to vector<4x8xbf16>
    %cst_36 = arith.constant dense<0.000000e+00> : vector<640x8xf32>
    %41 = tpu.matmul %38, %40, %cst_36 {dimension_numbers = #tpu.dot_dimension_numbers<[1], [0], [0], [1], [0, 0, 1, 1], [], []>} : vector<640x4xbf16>, vector<4x8xbf16>, vector<640x8xf32> -> vector<640x8xf32>
    %42 = arith.addf %37, %41 : vector<640x8xf32>
    %c82 = arith.constant 82 : index
    %c0_37 = arith.constant 0 : index
    %43 = vector.load %arg7[%c82, %c0_37] : memref<728x4xbf16, #tpu.memory_space<vmem>>, vector<640x4xbf16>
    %c8 = arith.constant 8 : index
    %c0_38 = arith.constant 0 : index
    %c0_39 = arith.constant 0 : index
    %44 = vector.load %arg3[%c8, %c0_38, %c0_39] : memref<9x4x8xbf16, #tpu.memory_space<vmem>>, vector<1x4x8xbf16>
    %45 = vector.shape_cast %44 : vector<1x4x8xbf16> to vector<4x8xbf16>
    %cst_40 = arith.constant dense<0.000000e+00> : vector<640x8xf32>
    %46 = tpu.matmul %43, %45, %cst_40 {dimension_numbers = #tpu.dot_dimension_numbers<[1], [0], [0], [1], [0, 0, 1, 1], [], []>} : vector<640x4xbf16>, vector<4x8xbf16>, vector<640x8xf32> -> vector<640x8xf32>
    %47 = arith.addf %42, %46 : vector<640x8xf32>
    %c0_41 = arith.constant 0 : index
    %c0_42 = arith.constant 0 : index
    %48 = vector.load %arg4[%c0_41, %c0_42] : memref<2x8xf32, #tpu.memory_space<vmem>>, vector<1x8xf32>
    %49 = vector.broadcast %48 : vector<1x8xf32> to vector<640x8xf32>
    %50 = arith.mulf %47, %49 : vector<640x8xf32>
    %c1_43 = arith.constant 1 : index
    %c0_44 = arith.constant 0 : index
    %51 = vector.load %arg4[%c1_43, %c0_44] : memref<2x8xf32, #tpu.memory_space<vmem>>, vector<1x8xf32>
    %52 = vector.broadcast %51 : vector<1x8xf32> to vector<640x8xf32>
    %53 = arith.addf %50, %52 : vector<640x8xf32>
    %cst_45 = arith.constant 0.000000e+00 : f32
    %54 = vector.broadcast %cst_45 : f32 to vector<640x8xf32>
    %55 = arith.cmpf ogt, %53, %54 : vector<640x8xf32>
    %c0_46 = arith.constant 0 : index
    %56 = memref.load %arg5[%c0_46] : memref<1xf32, #tpu.memory_space<smem>>
    %57 = vector.broadcast %56 : f32 to vector<640x8xf32>
    %58 = arith.mulf %57, %53 : vector<640x8xf32>
    %59 = arith.select %55, %53, %58 : vector<640x8xi1>, vector<640x8xf32>
    %c0_47 = arith.constant 0 : index
    %c0_48 = arith.constant 0 : index
    %c0_49 = arith.constant 0 : index
    %60 = vector.load %arg6[%c0_47, %c0_48, %c0_49] : memref<1x640x8xf32, #tpu.memory_space<vmem>>, vector<1x640x8xf32>
    %61 = vector.shape_cast %60 : vector<1x640x8xf32> to vector<640x8xf32>
    %62 = vector.shape_cast %59 : vector<640x8xf32> to vector<1x640x8xf32>
    tpu.vector_store %arg6[%c0_47, %c0_48, %c0_49], %62 {strides = array<i32>} : memref<1x640x8xf32, #tpu.memory_space<vmem>>, vector<1x640x8xf32>,
    return
  }
  func.func @transform_0(%arg0: i32, %arg1: i32) -> (i32, i32, i32, i32) {
    %c0_i32 = arith.constant 0 : i32
    %c0_i32_0 = arith.constant 0 : i32
    %c0_i32_1 = arith.constant 0 : i32
    %c0_i32_2 = arith.constant 0 : i32
    return %arg0, %c0_i32, %c0_i32_0, %c0_i32_1 : i32, i32, i32, i32
  }
  func.func @transform_1(%arg0: i32, %arg1: i32) -> (i32, i32, i32) {
    %c0_i32 = arith.constant 0 : i32
    %c0_i32_0 = arith.constant 0 : i32
    %c0_i32_1 = arith.constant 0 : i32
    %c0_i32_2 = arith.constant 0 : i32
    return %c0_i32, %c0_i32_0, %c0_i32_1 : i32, i32, i32
  }
  func.func @transform_2(%arg0: i32, %arg1: i32) -> (i32, i32) {
    %c0_i32 = arith.constant 0 : i32
    %c0_i32_0 = arith.constant 0 : i32
    %c0_i32_1 = arith.constant 0 : i32
    return %c0_i32, %c0_i32_0 : i32, i32
  }
  func.func @transform_3(%arg0: i32, %arg1: i32) -> i32 {
    %c0_i32 = arith.constant 0 : i32
    %c0_i32_0 = arith.constant 0 : i32
    return %c0_i32 : i32
  }
  func.func @transform_4(%arg0: i32, %arg1: i32) -> (i32, i32, i32) {
    %c0_i32 = arith.constant 0 : i32
    %c0_i32_0 = arith.constant 0 : i32
    return %arg0, %arg1, %c0_i32 : i32, i32, i32
  }
}

</mosaic_0001>

<bundles_post_ra>
// kernel: tpu_custom_call.1
= control target key start
LH: loop header
LB: loop body
LE: loop exit
PB: predicated region body
PF: predicated region fallthrough
CT: control target
= control target key end

     0   :  { %s12984_s0 = inlined_call_operand.vmem [shape: bf16[2,16,40,4], index: 0, kind: input, shape index: {}]   ;;  %s12985_s1 = inlined_call_operand.vmem [shape: bf16[9,4,8], index: 1, kind: input, shape index: {}]   ;;  %s12986_s2 = inlined_call_operand.hbm [shape: f32[2,8], index: 2, kind: input, shape index: {}]   ;;  %s12987_s3 = inlined_call_operand.<no memory space> [shape: f32[1], index: 3, kind: input, shape index: {}]   ;;  %s12988_s4 = inlined_call_operand.vmem [shape: f32[2,1280,8], index: 4, kind: output, shape index: {}]  }
   0x1   :  { %9 = sst [smem:[#allocation3]] %s12987_s3 }
   0x2   :  { %10 = vsyncpa [#allocation5], 0  ;;  %s10598_s17 = smov 0   ;;  %s10600_s18 = smov 0  }
   0x3   :  { %s10602_s19 = smov 0   ;;  %s10604_s20 = smov 0  }
   0x4   :  { %s10606_s21 = smov 0  }
   0x5 LB: > { %s8410_s3 = sadd.s32 4294967295, %s10561_s21   ;;  %s25_s22 = sadd.s32 1, %s10553_s19  ;;  %s10561_s21 = sphi %s10606_s21, %s16_s21   ;;  %s10557_s20 = sphi %s10604_s20, %s13307_s20   ;;  %s10553_s19 = sphi %s10602_s19, %s13306_s19   ;;  %s10549_s18 = sphi %s10600_s18, %s13305_s18   ;;  %s10545_s17 = sphi %s10598_s17, %s13304_s17  }
   0x6   : > { %p26_p0 = scmp.ge.s32.totalorder %s25_s22, 2  ;;  %s28_s23 = sadd.s32 1, %s10557_s20 }
   0x7   : > { %p8412_p1 = scmp.ge.s32.totalorder %s10561_s21, 1  ;;  %p150_p2 = scmp.lt.s32.totalorder %s10561_s21, 5 }
   0x8   : > { %s13309_s22 = smov (%p26_p0, %s25_s22), 0  ;;  %s13311_s23 = smov (!%p26_p0, %s28_s23), %s10557_s20 }
   0x9   : > { %p10631_p3 = pnand %p8412_p1, %p150_p2  ;;  %p30_p4 = scmp.ge.s32.totalorder %s13311_s23, 2 }
   0xa   : > { %p10635_p5 = scmp.eq.s32.totalorder %s8410_s3, 0  ;;  %s10567_s26 = smov [#allocation4]  }
   0xb   : > { %p10161_p6 = pneg %p10631_p3  ;;  %s13313_s23 = smov (%p30_p4, %s13311_s23), 0 }
   0xc   : > { %s166_s27 = sshll.u32 %s10567_s26, 4  ;;  %s167_s27 = int_to_ptr.vmem [resolvable:$true] %s166_s27 }
   0xd   : > { %p10162_p7 = pnand %p10635_p5, %p10161_p6  ;;  %s10500_s28 = scalar_lea.vmem %s167_s27, 32 }
   0xe   : > { %p10501_p9 = scmp.ne.s32.totalorder %s167_s27, %s10500_s28  ;;  %p10508_p12 = scmp.lt.s32.totalorder %s167_s27, %s167_s27 }
   0xf   : > { %p10491_p8 = pneg %p10162_p7  ;;  %p10509_p13 = scmp.lt.s32.totalorder %s10500_s28, %s10500_s28 }
  0x11   : > { %p10503_p10 = pnand %p10501_p9, %p10491_p8  ;;  %p10510_p0 = por %p10509_p13, %p10508_p12 }
  0x13   : > { %p10504_p11 = pneg %p10503_p10 }
  0x15   : > { %p10511_p1 = pnand %p10510_p0, %p10504_p11 }
  0x17   : > { %10514 = shalt.err (!%p10511_p1)
}
  0x18   : > { %10164 = dma.hbm_to_vmem [thread:$0]  (!%p10162_p7), %s12986_s2, 32, %s167_s27, [#allocation5]  }
  0x19   : > { %190 = sbr.rel (%p10631_p3) target bundleno = 1016 (0x3f8), region = 36 }
  0x1e   : > { %10540 = dma.done.wait (%p10635_p5), [#allocation5], 32  }
  0x1f   : > { %10542 = vsyncadd (%p10635_p5), [#allocation5], 4294967264  ;;  %p220_p2 = scmp.lt.s32.totalorder %s10549_s18, 1  ;;  %s225_s5 = smul.u32 80, %s10545_s17 }
  0x20   : > { %s8419_s6 = sshll.u32 %s10545_s17, 4  ;;  %s10668_s3 = smov 0  }
  0x21   : > { %s13315_s18 = smov (!%p220_p2, %s10549_s18), 1  ;;  %p228_p4 = scmp.lt.s32.totalorder %s225_s5, 159 }
  0x22   : > { %s10153_s7 = smul.u32 320, %s13315_s18 }
  0x23   : > { %s13317_s5 = smov (!%p228_p4, %s225_s5), 159  ;;  %s10154_s11 = smul.u32 160, %s13315_s18 }
  0x24   : > { %s10661_s10 = scalar_lea.vmem %s12984_s0, %s10153_s7 }
  0x25   : > { %s231_s12 = sadd.s32 %s10154_s11, %s13317_s5 }
  0x26   : > { %s8418_s13 = sshll.u32 %s231_s12, 3 }
  0x27   : > { %s10666_s16 = scalar_lea.vmem %s12988_s4, %s8418_s13 }
  0x28 LB: >> { %s243_s24 = sadd.s32 %s10565_s3, %s8419_s6  ;;  %s10568_s28 = smov 0.0   ;;  %vm338_vm1 = vcmask 27648   ;;  %s10565_s3 = sphi %s10668_s3, %s242_s3  }
  0x29   : >> { %s8420_s25 = sadd.s32 4294967295, %s243_s24 }
  0x2a   : >> { %s245_s18 = scvt.s32.f32 %s8420_s25  ;;  %p284_p3 = scmp.ge.s32.totalorder %s8420_s25, 0 }
  0x2b   : >> { %p285_p5 = scmp.lt.s32.totalorder %s8420_s25, 32  ;;  %s312_s25 = smul.u32 40, %s10565_s3 }
  0x2c   : >> { %s246_s26 = smul.f32 0.5, %s245_s18  ;;  %s242_s3 = sadd.s32 1, %s10565_s3  }
  0x2d   : >> { %p10676_p6 = pnand %p285_p5, %p284_p3  ;;  %s334_s18 = sshra.s32 %s312_s25, 3 }
  0x2e   : >> { %s8421_s27 = sadd.f32 -0.25, %s246_s26  ;;  %s8430_s26 = sshll.u32 %s334_s18, 2 }
  0x2f   : >> { %s8424_s8 = scalar_select %p10676_p6, 0, 1 }
  0x30   : >> { %s248_s29 = smax.f32 %s10568_s28, %s8421_s27  ;;  %s337_s27 = scalar_lea.vmem [#allocation2], %s8430_s26 }
  0x31   : >> { %s249_s30 = sfloor.f32 %s248_s29  ;;  %v305_v16 = vstv %s8424_s8  ;;  %p239_p9 = scmp.ge.s32.totalorder %s242_s3, 18  }
  0x32   : >> { %s10156_s5 = scvt.f32.s32 %s249_s30  ;;  %vm306_vm0 = vcmp.eq.s32.totalorder %v305_v16, 1  ;;  %v8431_v43 = vld [vmem:[%s12985_s1 + $0x2] sm:$0x3] (%p239_p9)  ;;  %vm1079_vm2 = vcmask (%p239_p9), 1041408   ;;  %vm633_vm3 = vsmask.f32 (%p239_p9), 7424 }
  0x33   : > { %10144 = vmatprep.subr.msk.bf16.mxu1 (%p239_p9), %vm1079_vm2, %v8431_v43  ;;  %10143 = vmatprep.subr.msk.bf16.mxu0 (%p239_p9), %vm1079_vm2, %v8431_v43  ;;  %v1081_v46 = vsel (%p239_p9), %vm1079_vm2, %v8431_v43, 0  ;;  %vm958_vm4 = vcmask (%p239_p9), 31744   ;;  %v426_v56 = vld [vmem:[%s12985_s1] sm:$0x3] (%p239_p9)  ;;  %vm1878_vm5 = vcmask (%p239_p9), 1046528   ;;  %vm8222_vm6 = vcmask (%p239_p9), 64512  }
  0x34   : >> { %p251_p7 = scmp.lt.s32.totalorder %s10156_s5, 15  ;;  %10142 = vmatpush3.bf16.msra.mxu1 (%p239_p9), %v1081_v46  ;;  %9404 = vmatpush3.bf16.msra.mxu0 (%p239_p9), %v1081_v46 }
  0x35   : > { %10145 = vmatprep.subr.msk.bf16.mxu1 (%p239_p9), %vm1079_vm2, %v426_v56 }
  0x36   : >> { %s13319_s5 = smov (!%p251_p7, %s10156_s5), 15 }
  0x37   : >> { %s253_s9 = sadd.s32 1, %s13319_s5  ;;  %s9009_s11 = smul.u32 20, %s13319_s5 }
  0x38   : >> { %p254_p8 = scmp.lt.s32.totalorder %s253_s9, 15  ;;  %s256_s12 = scvt.s32.f32 %s13319_s5 }
  0x39   : >> { %s260_s13 = scalar_lea.vmem %s10661_s10, %s9009_s11 }
  0x3a   : >> { %s13321_s9 = smov (!%p254_p8, %s253_s9), 15  ;;  %v9017_v0 = vld [vmem:[%s260_s13] sm:$0xff]   ;;  %v9032_v1 = vld [vmem:[%s260_s13 + $0x8] sm:$0xff]   ;;  %v265_v2 = vld [vmem:[%s260_s13 + $0x10] sm:$0xf]  ;;  %s257_s15 = ssub.f32 %s248_s29, %s256_s12 }
  0x3b   : >> { %s9010_s14 = smul.u32 20, %s13321_s9  ;;  %v9018_v3 = vunpack.c.l.bf16 %v9017_v0  ;;  %v9019_v4 = vunpack.c.h.bf16 %v9017_v0  ;;  %v9022_v5 = vunpack.c.l.bf16 %v9032_v1  ;;  %v9023_v6 = vunpack.c.h.bf16 %v9032_v1 }
  0x3c   : >> { %v270_v9 = vunpack.c.l.bf16 %v265_v2  ;;  %v293_v15 = vstv %s257_s15 }
  0x3d   : >> { %s273_s24 = scalar_lea.vmem %s10661_s10, %s9010_s14 }
  0x3e   : >> { %v9025_v7 = vld [vmem:[%s273_s24] sm:$0xff]   ;;  %v9033_v8 = vld [vmem:[%s273_s24 + $0x8] sm:$0xff]   ;;  %v278_v10 = vld [vmem:[%s273_s24 + $0x10] sm:$0xf] }
  0x3f   : >> { %v9026_v11 = vunpack.c.l.bf16 %v9025_v7  ;;  %v9027_v12 = vunpack.c.h.bf16 %v9025_v7  ;;  %v9030_v13 = vunpack.c.l.bf16 %v9033_v8  ;;  %v9031_v14 = vunpack.c.h.bf16 %v9033_v8 }
  0x40   : >> { %v283_v17 = vunpack.c.l.bf16 %v278_v10 }
  0x41   : >> { %v288_v18 = vsub.f32 %v9026_v11, %v9018_v3  ;;  %v289_v19 = vsub.f32 %v9027_v12, %v9019_v4  ;;  %v290_v20 = vsub.f32 %v9030_v13, %v9022_v5  ;;  %v291_v21 = vsub.f32 %v9031_v14, %v9023_v6 }
  0x42   : >> { %v292_v22 = vsub.f32 %v283_v17, %v270_v9 }
  0x43   : >> { %v294_v23 = vmul.f32 %v293_v15, %v288_v18  ;;  %v295_v24 = vmul.f32 %v293_v15, %v289_v19  ;;  %v296_v25 = vmul.f32 %v293_v15, %v290_v20  ;;  %v297_v26 = vmul.f32 %v293_v15, %v291_v21 }
  0x44   : >> { %v298_v27 = vmul.f32 %v293_v15, %v292_v22 }
  0x45   : >> { %v299_v28 = vadd.f32 %v9018_v3, %v294_v23  ;;  %v300_v29 = vadd.f32 %v9019_v4, %v295_v24  ;;  %v301_v30 = vadd.f32 %v9022_v5, %v296_v25  ;;  %v302_v31 = vadd.f32 %v9023_v6, %v297_v26  ;;  %v8553_v5 = vld [vmem:[%s12985_s1 + $0x4] sm:$0x3] (%p239_p9) }
  0x46   : >> { %v303_v32 = vadd.f32 %v298_v27, %v270_v9  ;;  %v1517_v4 = vsel (%p239_p9), %vm1079_vm2, %v426_v56, 0  ;;  %10146 = vmatprep.subr.msk.bf16.mxu0 (%p239_p9), %vm1079_vm2, %v8553_v5  ;;  %v2081_v7 = vsel (%p239_p9), %vm1079_vm2, %v8553_v5, 0 }
  0x47   : >> { %v307_v33 = vsel %vm306_vm0, %v299_v28, 0.0  ;;  %v308_v34 = vsel %vm306_vm0, %v300_v29, 0.0  ;;  %v309_v35 = vsel %vm306_vm0, %v301_v30, 0.0  ;;  %v310_v36 = vsel %vm306_vm0, %v302_v31, 0.0 }
  0x48   : >> { %v9011_v37 = vpack.c.bf16 %v307_v33, %v307_v33  ;;  %v9012_v38 = vpack.c.bf16 %v308_v34, %v308_v34  ;;  %v9013_v39 = vpack.c.bf16 %v309_v35, %v309_v35  ;;  %v9014_v40 = vpack.c.bf16 %v310_v36, %v310_v36  ;;  %241 = sbr.rel (!%p239_p9) target bundleno = 40 (0x28), region = 89 }
  0x49   : >> { %v311_v41 = vsel %vm306_vm0, %v303_v32, 0.0 }
  0x4a   : >> { %339 = vst.msk [vmem:[%s337_s27] sm:$0xf] %vm338_vm1, %v9011_v37  ;;  %340 = vst.msk [vmem:[%s337_s27 + $0x4] sm:$0xf] %vm338_vm1, %v9012_v38  ;;  %v9015_v42 = vpack.c.bf16 %v311_v41, %v311_v41 }
  0x4b   : >> { %341 = vst.msk [vmem:[%s337_s27 + $0x8] sm:$0xf] %vm338_vm1, %v9013_v39  ;;  %342 = vst.msk [vmem:[%s337_s27 + $0xc] sm:$0xf] %vm338_vm1, %v9014_v40 }
  0x4c   : >> { %343 = vst.msk [vmem:[%s337_s27 + $0x10] sm:$0xf] %vm338_vm1, %v9015_v42  ;;  %s8060_s27 = sld [smem:[#allocation3]] (%p239_p9) }
  0x53   : > { %v346_v44 = vld [vmem:[#allocation2] sm:$0xf]  ;;  %v10701_v45 = vld [vmem:[#allocation2 + $0x8] sm:$0xff]   ;;  %v10706_v47 = vld [vmem:[#allocation2 + $0x4] sm:$0xf] }
  0x54   : > { %v10709_v48 = vcombine.low %v346_v44, %v10706_v47  ;;  %v642_v49 = vshll.u32 %v10701_v45, 16  ;;  %v646_v50 = vshrl.u32 %v10701_v45, 16  ;;  %v10220_v54 = vld [vmem:[#allocation2 + $0xa0] sm:$0xff]   ;;  %v10221_v55 = vld [vmem:[#allocation2 + $0xa8] sm:$0xff]   ;;  %v10719_v60 = vld [vmem:[#allocation2 + $0x10] sm:$0xff]  }
  0x55   : > { %v794_v58 = vshll.u32 %v10220_v54, 16  ;;  %v798_v59 = vshrl.u32 %v10220_v54, 16  ;;  %v802_v62 = vshll.u32 %v10221_v55, 16  ;;  %v806_v63 = vshrl.u32 %v10221_v55, 16  ;;  %v10223_v3 = vld [vmem:[#allocation2 + $0xb0] sm:$0xff]   ;;  %v10732_v12 = vld [vmem:[#allocation2 + $0x18] sm:$0xff]  }
  0x56   : > { %v635_v51 = vshrl.u32 %v10709_v48, 16  ;;  %v637_v52 = vshll.u32 %v10709_v48, 16  ;;  %v644_v53 = vrot.slane %v642_v49, 1  ;;  %v650_v2 = vshll.u32 %v10719_v60, 16  ;;  %v10225_v13 = vld [vmem:[#allocation2 + $0xb8] sm:$0xff]   ;;  %v10739_v21 = vld [vmem:[#allocation2 + $0x20] sm:$0xff]  }
  0x57   : > { %v10721_v1 = vrot.slane %v794_v58, 1  ;;  %v804_v6 = vrot.slane %v802_v62, 1  ;;  %v810_v11 = vshll.u32 %v10223_v3, 16  ;;  %v654_v15 = vshrl.u32 %v10719_v60, 16  ;;  %v10227_v22 = vld [vmem:[#allocation2 + $0xc0] sm:$0xff]   ;;  %v10747_v33 = vld [vmem:[#allocation2 + $0x28] sm:$0xff]  }
  0x58   : > { %v639_v57 = vrot.slane %v637_v52, 1  ;;  %v648_v61 = vor.u32 %v646_v50, %v644_v53  ;;  %v652_v10 = vrot.slane %v650_v2, 1  ;;  %v814_v16 = vshrl.u32 %v10223_v3, 16  ;;  %v10229_v35 = vld [vmem:[#allocation2 + $0xc8] sm:$0xff]   ;;  %v10756_v50 = vld [vmem:[#allocation2 + $0x30] sm:$0xff]  }
  0x59   : > { %v800_v9 = vor.u32 %v798_v59, %v10721_v1  ;;  %v808_v14 = vor.u32 %v806_v63, %v804_v6  ;;  %v812_v19 = vrot.slane %v810_v11, 1  ;;  %v658_v20 = vshll.u32 %v10732_v12, 16  ;;  %v10231_v52 = vld [vmem:[#allocation2 + $0xd0] sm:$0xff]  }
  0x5a   : > { %v640_v0 = vor.u32 %v639_v57, %v635_v51  ;;  %v653_v18 = vsel %vm633_vm3, %v648_v61, %v652_v10  ;;  %v656_v23 = vor.u32 %v654_v15, %v652_v10  ;;  %v818_v24 = vshll.u32 %v10225_v13, 16  ;;  %v10761_v61 = vld [vmem:[#allocation2 + $0x38] sm:$0xff]   ;;  %v10235_v10 = vld [vmem:[#allocation2 + $0xe0] sm:$0xff]  }
  0x5b   : > { %v805_v17 = vsel %vm633_vm3, %v800_v9, %v804_v6  ;;  %v662_v25 = vshrl.u32 %v10732_v12, 16  ;;  %v813_v26 = vsel %vm633_vm3, %v808_v14, %v812_v19  ;;  %v660_v27 = vrot.slane %v658_v20, 1  ;;  %v10770_v9 = vld [vmem:[#allocation2 + $0x40] sm:$0xff]   ;;  %v10773_v14 = vld [vmem:[#allocation2 + $0x48] sm:$0xff]  }
  0x5c   : > { %v645_v8 = vsel %vm633_vm3, %v640_v0, %v644_v53  ;;  %9445 = vmatprep.mubr.msk.bf16.mxu1 %vm958_vm4, %v805_v17  ;;  %v816_v28 = vor.u32 %v814_v16, %v812_v19  ;;  %v666_v29 = vshll.u32 %v10739_v21, 16  ;;  %v820_v30 = vrot.slane %v818_v24, 1  ;;  %v10233_v0 = vld [vmem:[#allocation2 + $0xd8] sm:$0xff]   ;;  %v10237_v19 = vld [vmem:[#allocation2 + $0xe8] sm:$0xff]  }
  0x5d   : > { %9405 = vmatprep.mubr.msk.bf16.mxu0 %vm958_vm4, %v645_v8  ;;  %9446 = vmatmul.mubr.msk.bf16.vlgmr.msra.gmra.mxu1 %vm958_vm4, %v813_v26  ;;  %v822_v31 = vshrl.u32 %v10225_v13, 16  ;;  %v826_v32 = vshll.u32 %v10227_v22, 16  ;;  %v670_v34 = vshrl.u32 %v10739_v21, 16  ;;  %v661_v36 = vsel %vm633_vm3, %v656_v23, %v660_v27 }
  0x5e   : > { %9406 = vmatmul.mubr.msk.bf16.vlgmr.msra.gmra.mxu0 %vm958_vm4, %v653_v18  ;;  %9486 = vmatpush3.bf16.msra.mxu1 %v1517_v4  ;;  %v664_v37 = vor.u32 %v662_v25, %v660_v27  ;;  %v668_v38 = vrot.slane %v666_v29, 1  ;;  %v830_v39 = vshrl.u32 %v10227_v22, 16  ;;  %v821_v40 = vsel %vm633_vm3, %v816_v28, %v820_v30 }
  0x5f   : > { %9568 = vmatpush3.bf16.msra.mxu0 %v2081_v7  ;;  %9409 = vmatprep.mubr.msk.bf16.mxu0 %vm958_vm4, %v661_v36  ;;  %v824_v41 = vor.u32 %v822_v31, %v820_v30  ;;  %v828_v42 = vrot.slane %v826_v32, 1  ;;  %v674_v43 = vshll.u32 %v10747_v33, 16  ;;  %v834_v49 = vshll.u32 %v10229_v35, 16  ;;  %v10782_v30 = vld [vmem:[#allocation2 + $0x50] sm:$0xff]  }
  0x60   : > { %9449 = vmatprep.mubr.msk.bf16.mxu1 %vm958_vm4, %v821_v40  ;;  %v669_v44 = vsel %vm633_vm3, %v664_v37, %v668_v38  ;;  %v672_v46 = vor.u32 %v670_v34, %v668_v38  ;;  %v678_v51 = vshrl.u32 %v10747_v33, 16  ;;  %v838_v55 = vshrl.u32 %v10229_v35, 16  ;;  %v10239_v36 = vld [vmem:[#allocation2 + $0xf0] sm:$0xff]   ;;  %v10788_v40 = vld [vmem:[#allocation2 + $0x58] sm:$0xff]  }
  0x61   : > { %v676_v53 = vrot.slane %v674_v43, 1  ;;  %v832_v54 = vor.u32 %v830_v39, %v828_v42  ;;  %v829_v56 = vsel %vm633_vm3, %v824_v41, %v828_v42  ;;  %v836_v57 = vrot.slane %v834_v49, 1 }
  0x62   : > { %v682_v58 = vshll.u32 %v10756_v50, 16  ;;  %v842_v59 = vshll.u32 %v10231_v52, 16  ;;  %v686_v63 = vshrl.u32 %v10756_v50, 16  ;;  %v690_v6 = vshll.u32 %v10761_v61, 16 }
  0x63   : > { %v677_v62 = vsel %vm633_vm3, %v672_v46, %v676_v53  ;;  %v837_v2 = vsel %vm633_vm3, %v832_v54, %v836_v57  ;;  %v680_v3 = vor.u32 %v678_v51, %v676_v53  ;;  %v846_v7 = vshrl.u32 %v10231_v52, 16  ;;  %v10241_v46 = vld [vmem:[#allocation2 + $0xf8] sm:$0xff]  }
  0x64   : > { %v684_v4 = vrot.slane %v682_v58, 1  ;;  %v844_v5 = vrot.slane %v842_v59, 1  ;;  %v850_v8 = vshll.u32 %v10233_v0, 16  ;;  %v840_v11 = vor.u32 %v838_v55, %v836_v57  ;;  %v10798_v59 = vld [vmem:[#allocation2 + $0x60] sm:$0xff]  }
  0x65   : > { %9450 = vmatmul.mubr.msk.bf16.gmra.mxu1 %vm958_vm4, %v829_v56  ;;  %v692_v15 = vrot.slane %v690_v6, 1  ;;  %v698_v18 = vshll.u32 %v10770_v9, 16  ;;  %v694_v22 = vshrl.u32 %v10761_v61, 16  ;;  %v858_v23 = vshll.u32 %v10235_v10, 16 }
  0x66   : > { %9410 = vmatmul.mubr.msk.bf16.gmra.mxu0 %vm958_vm4, %v669_v44  ;;  %9453 = vmatprep.mubr.msk.bf16.mxu1 %vm958_vm4, %v837_v2  ;;  %v688_v13 = vor.u32 %v686_v63, %v684_v4  ;;  %v848_v16 = vor.u32 %v846_v7, %v844_v5  ;;  %v852_v17 = vrot.slane %v850_v8, 1  ;;  %v685_v20 = vsel %vm633_vm3, %v680_v3, %v684_v4  ;;  %v10243_v3 = vld [vmem:[#allocation2 + $0x100] sm:$0xff]   ;;  %v10804_v7 = vld [vmem:[#allocation2 + $0x68] sm:$0xff]  }
  0x67   : > { %9413 = vmatprep.mubr.msk.bf16.mxu0 %vm958_vm4, %v677_v62  ;;  %v702_v25 = vshrl.u32 %v10770_v9, 16  ;;  %v706_v26 = vshll.u32 %v10773_v14, 16  ;;  %v845_v27 = vsel %vm633_vm3, %v840_v11, %v844_v5  ;;  %v854_v28 = vshrl.u32 %v10233_v0, 16  ;;  %v10245_v11 = vld [vmem:[#allocation2 + $0x108] sm:$0xff]  }
  0x68   : > { %v693_v24 = vsel %vm633_vm3, %v688_v13, %v692_v15  ;;  %v862_v29 = vshrl.u32 %v10235_v10, 16  ;;  %v853_v31 = vsel %vm633_vm3, %v848_v16, %v852_v17  ;;  %v700_v32 = vrot.slane %v698_v18, 1 }
  0x69   : > { %v866_v34 = vshll.u32 %v10237_v19, 16  ;;  %v696_v35 = vor.u32 %v694_v22, %v692_v15  ;;  %v860_v37 = vrot.slane %v858_v23, 1  ;;  %v708_v39 = vrot.slane %v706_v26, 1 }
  0x6a   : > { %v704_v38 = vor.u32 %v702_v25, %v700_v32  ;;  %v856_v41 = vor.u32 %v854_v28, %v852_v17  ;;  %v714_v42 = vshll.u32 %v10782_v30, 16  ;;  %v710_v51 = vshrl.u32 %v10773_v14, 16 }
  0x6b   : > { %v864_v43 = vor.u32 %v862_v29, %v860_v37  ;;  %v868_v44 = vrot.slane %v866_v34, 1  ;;  %v701_v49 = vsel %vm633_vm3, %v696_v35, %v700_v32  ;;  %v874_v52 = vshll.u32 %v10239_v36, 16  ;;  %v10816_v29 = vld [vmem:[#allocation2 + $0x70] sm:$0xff]  }
  0x6c   : > { %v709_v53 = vsel %vm633_vm3, %v704_v38, %v708_v39  ;;  %v718_v54 = vshrl.u32 %v10782_v30, 16  ;;  %v722_v55 = vshll.u32 %v10788_v40, 16  ;;  %v861_v56 = vsel %vm633_vm3, %v856_v41, %v860_v37  ;;  %v10247_v34 = vld [vmem:[#allocation2 + $0x110] sm:$0xff]   ;;  %v10820_v37 = vld [vmem:[#allocation2 + $0x78] sm:$0xff]  }
  0x6d   : > { %9454 = vmatmul.mubr.msk.bf16.gmra.mxu1 %vm958_vm4, %v845_v27  ;;  %v716_v57 = vrot.slane %v714_v42, 1  ;;  %v870_v58 = vshrl.u32 %v10237_v19, 16  ;;  %v869_v62 = vsel %vm633_vm3, %v864_v43, %v868_v44  ;;  %v878_v63 = vshrl.u32 %v10239_v36, 16  ;;  %v10249_v43 = vld [vmem:[#allocation2 + $0x118] sm:$0xff]  }
  0x6e   : > { %9414 = vmatmul.mubr.msk.bf16.gmra.mxu0 %vm958_vm4, %v685_v20  ;;  %9457 = vmatprep.mubr.msk.bf16.mxu1 %vm958_vm4, %v853_v31  ;;  %v882_v0 = vshll.u32 %v10241_v46, 16  ;;  %v712_v2 = vor.u32 %v710_v51, %v708_v39  ;;  %v876_v4 = vrot.slane %v874_v52, 1  ;;  %v724_v6 = vrot.slane %v722_v55, 1 }
  0x6f   : > { %9417 = vmatprep.mubr.msk.bf16.mxu0 %vm958_vm4, %v693_v24  ;;  %v720_v5 = vor.u32 %v718_v54, %v716_v57  ;;  %v872_v8 = vor.u32 %v870_v58, %v868_v44  ;;  %v730_v10 = vshll.u32 %v10798_v59, 16  ;;  %v726_v17 = vshrl.u32 %v10788_v40, 16 }
  0x70   : > { %v880_v13 = vor.u32 %v878_v63, %v876_v4  ;;  %v884_v15 = vrot.slane %v882_v0, 1  ;;  %v717_v16 = vsel %vm633_vm3, %v712_v2, %v716_v57  ;;  %v890_v18 = vshll.u32 %v10243_v3, 16 }
  0x71   : > { %v725_v19 = vsel %vm633_vm3, %v720_v5, %v724_v6  ;;  %v734_v20 = vshrl.u32 %v10798_v59, 16  ;;  %v738_v22 = vshll.u32 %v10804_v7, 16  ;;  %v877_v23 = vsel %vm633_vm3, %v872_v8, %v876_v4  ;;  %v10251_v5 = vld [vmem:[#allocation2 + $0x120] sm:$0xff]  }
  0x72   : > { %v732_v24 = vrot.slane %v730_v10, 1  ;;  %v886_v25 = vshrl.u32 %v10241_v46, 16  ;;  %v898_v26 = vshll.u32 %v10245_v11, 16  ;;  %v885_v27 = vsel %vm633_vm3, %v880_v13, %v884_v15 }
  0x73   : > { %v894_v28 = vshrl.u32 %v10243_v3, 16  ;;  %v728_v31 = vor.u32 %v726_v17, %v724_v6  ;;  %v892_v32 = vrot.slane %v890_v18, 1  ;;  %v740_v36 = vrot.slane %v738_v22, 1  ;;  %v10836_v6 = vld [vmem:[#allocation2 + $0x88] sm:$0xff]  }
  0x74   : > { %v736_v35 = vor.u32 %v734_v20, %v732_v24  ;;  %v888_v38 = vor.u32 %v886_v25, %v884_v15  ;;  %v900_v39 = vrot.slane %v898_v26, 1  ;;  %v746_v42 = vshll.u32 %v10816_v29, 16  ;;  %v10253_v15 = vld [vmem:[#allocation2 + $0x128] sm:$0xff]  }
  0x75   : > { %9458 = vmatmul.mubr.msk.bf16.gmra.mxu1 %vm958_vm4, %v861_v56  ;;  %v896_v41 = vor.u32 %v894_v28, %v892_v32  ;;  %v733_v44 = vsel %vm633_vm3, %v728_v31, %v732_v24  ;;  %v742_v46 = vshrl.u32 %v10804_v7, 16  ;;  %v906_v51 = vshll.u32 %v10247_v34, 16  ;;  %v10830_v56 = vld [vmem:[#allocation2 + $0x80] sm:$0xff]   ;;  %v10848_v17 = vld [vmem:[%s12985_s1 + $0x8] sm:$0x3]  ;;  %v10860_v28 = vld [vmem:[#allocation2 + $0x90] sm:$0xff]  }
  0x76   : > { %9418 = vmatmul.mubr.msk.bf16.gmra.mxu0 %vm958_vm4, %v701_v49  ;;  %9461 = vmatprep.mubr.msk.bf16.mxu1 %vm958_vm4, %v869_v62  ;;  %v741_v49 = vsel %vm633_vm3, %v736_v35, %v740_v36  ;;  %v750_v52 = vshrl.u32 %v10816_v29, 16  ;;  %v893_v54 = vsel %vm633_vm3, %v888_v38, %v892_v32  ;;  %v902_v55 = vshrl.u32 %v10245_v11, 16 }
  0x77   : > { %9421 = vmatprep.mubr.msk.bf16.mxu0 %vm958_vm4, %v709_v53  ;;  %v754_v53 = vshll.u32 %v10820_v37, 16  ;;  %v901_v57 = vsel %vm633_vm3, %v896_v41, %v900_v39  ;;  %v748_v58 = vrot.slane %v746_v42, 1  ;;  %v910_v62 = vshrl.u32 %v10247_v34, 16  ;;  %10148 = vmatprep.subr.msk.bf16.mxu0 %vm1079_vm2, %v10848_v17  ;;  %v10866_v42 = vld [vmem:[#allocation2 + $0x98] sm:$0xff]  }
  0x78   : > { %v914_v63 = vshll.u32 %v10249_v43, 16  ;;  %v744_v0 = vor.u32 %v742_v46, %v740_v36  ;;  %v908_v2 = vrot.slane %v906_v51, 1  ;;  %v904_v8 = vor.u32 %v902_v55, %v900_v39  ;;  %v10255_v36 = vld [vmem:[#allocation2 + $0x130] sm:$0xff]   ;;  %v10257_v51 = vld [vmem:[#allocation2 + $0x138] sm:$0xff]  }
  0x79   : > { %v752_v3 = vor.u32 %v750_v52, %v748_v58  ;;  %v756_v4 = vrot.slane %v754_v53, 1  ;;  %v762_v10 = vshll.u32 %v10830_v56, 16  ;;  %v922_v22 = vshll.u32 %v10251_v5, 16 }
  0x7a   : > { %v912_v11 = vor.u32 %v910_v62, %v908_v2  ;;  %v916_v13 = vrot.slane %v914_v63, 1  ;;  %v749_v18 = vsel %vm633_vm3, %v744_v0, %v748_v58  ;;  %v770_v24 = vshll.u32 %v10836_v6, 16  ;;  %v10258_v62 = vld [vmem:[#allocation2 + $0x140] ss:$0 sps:$4 sm:$0x11]  }
  0x7b   : > { %v757_v20 = vsel %vm633_vm3, %v752_v3, %v756_v4  ;;  %v909_v25 = vsel %vm633_vm3, %v904_v8, %v908_v2  ;;  %v764_v26 = vrot.slane %v762_v10, 1  ;;  %v926_v32 = vshrl.u32 %v10251_v5, 16  ;;  %v1872_v10 = vld [vmem:[#allocation2] sm:$0xe] }
  0x7c   : > { %v917_v31 = vsel %vm633_vm3, %v912_v11, %v916_v13  ;;  %v930_v34 = vshll.u32 %v10253_v15, 16  ;;  %v924_v38 = vrot.slane %v922_v22, 1  ;;  %v772_v41 = vrot.slane %v770_v24, 1 }
  0x7d   : > { %9462 = vmatmul.mubr.msk.bf16.gmra.mxu1 %vm958_vm4, %v877_v23  ;;  %v766_v23 = vshrl.u32 %v10830_v56, 16  ;;  %v774_v53 = vshrl.u32 %v10836_v6, 16  ;;  %v782_v55 = vshrl.u32 %v10860_v28, 16  ;;  %v786_v58 = vshll.u32 %v10866_v42, 16 }
  0x7e   : > { %9422 = vmatmul.mubr.msk.bf16.gmra.mxu0 %vm958_vm4, %v717_v16  ;;  %9465 = vmatprep.mubr.msk.bf16.mxu1 %vm958_vm4, %v885_v27  ;;  %v10843_v16 = vld [vmem:[%s12985_s1 + $0x6] sm:$0x3]  ;;  %v918_v27 = vshrl.u32 %v10249_v43, 16  ;;  %v928_v46 = vor.u32 %v926_v32, %v924_v38  ;;  %v934_v2 = vshrl.u32 %v10253_v15, 16  ;;  %v946_v5 = vshll.u32 %v10257_v51, 16 }
  0x7f   : > { %9425 = vmatprep.mubr.msk.bf16.mxu0 %vm958_vm4, %v725_v19  ;;  %v758_v19 = vshrl.u32 %v10820_v37, 16  ;;  %10147 = vmatprep.subr.msk.bf16.mxu1 %vm1079_vm2, %v10843_v16  ;;  %v768_v39 = vor.u32 %v766_v23, %v764_v26  ;;  %v776_v8 = vor.u32 %v774_v53, %v772_v41  ;;  %v790_v15 = vshrl.u32 %v10866_v42, 16 }
  0x80   : > { %v920_v43 = vor.u32 %v918_v27, %v916_v13  ;;  %v948_v22 = vrot.slane %v946_v5, 1  ;;  %v954_v23 = vshll.u32 %v10258_v62, 16  ;;  %v8554_v24 = vcombine.low %v1872_v10, %v10706_v47 }
  0x81   : > { %v760_v35 = vor.u32 %v758_v19, %v756_v4  ;;  %v942_v4 = vshrl.u32 %v10255_v36, 16  ;;  %v1880_v27 = vrot.slane %v10701_v45, 1  ;;  %v1888_v53 = vrot.slane %v10747_v33, 1 }
  0x82   : > { %v925_v63 = vsel %vm633_vm3, %v920_v43, %v924_v38  ;;  %v1898_v62 = vrot.slane %v10782_v30, 1  ;;  %v1910_v10 = vrot.slane %v10830_v56, 1 }
  0x83   : > { %v765_v52 = vsel %vm633_vm3, %v760_v35, %v764_v26  ;;  %v950_v26 = vshrl.u32 %v10257_v51, 16  ;;  %v956_v35 = vrot.slane %v954_v23, 1  ;;  %v10426_v23 = vld [vmem:[#allocation2 + $0xb0] sm:$0xff]  }
  0x85   : > { %9466 = vmatmul.mubr.msk.bf16.gmra.mxu1 %vm958_vm4, %v893_v54  ;;  %v938_v54 = vshll.u32 %v10255_v36, 16  ;;  %v1879_v36 = vrot.slane %v8554_v24, 1  ;;  %v952_v47 = vor.u32 %v950_v26, %v948_v22  ;;  %v1922_v24 = vrot.slane %v10426_v23, 1 }
  0x86   : > { %9426 = vmatmul.mubr.msk.bf16.gmra.mxu0 %vm958_vm4, %v733_v44  ;;  %9469 = vmatprep.mubr.msk.bf16.mxu1 %vm958_vm4, %v901_v57  ;;  %v778_v44 = vshll.u32 %v10860_v28, 16  ;;  %v773_v57 = vsel %vm633_vm3, %v768_v39, %v772_v41 }
  0x87   : > { %9429 = vmatprep.mubr.msk.bf16.mxu0 %vm958_vm4, %v741_v49  ;;  %v932_v49 = vrot.slane %v930_v34, 1  ;;  %v940_v11 = vrot.slane %v938_v54, 1  ;;  %v1881_v41 = vsel %vm1878_vm5, %v1879_v36, %v1880_v27  ;;  %v957_v43 = vsel %vm633_vm3, %v952_v47, %v956_v35  ;;  %v10430_v36 = vld [vmem:[#allocation2 + $0xd0] sm:$0xff]   ;;  %v10431_v47 = vld [vmem:[#allocation2 + $0xd8] sm:$0xff]  }
  0x88   : > { %v780_v0 = vrot.slane %v778_v44, 1  ;;  %v1882_v44 = vrot.slane %v10719_v60, 1  ;;  %v1890_v54 = vrot.slane %v10756_v50, 1 }
  0x89   : > { %v933_v3 = vsel %vm633_vm3, %v928_v46, %v932_v49  ;;  %v936_v19 = vor.u32 %v934_v2, %v932_v49  ;;  %v4085_v46 = vsel %vm1079_vm2, %v10848_v17, 0  ;;  %v1884_v49 = vrot.slane %v10732_v12, 1  ;;  %v10954_v2 = vld [vmem:[%s12985_s1 + $0xa] sm:$0x3] }
  0x8a   : > { %v784_v13 = vor.u32 %v782_v55, %v780_v0  ;;  %v1886_v17 = vrot.slane %v10739_v21, 1  ;;  %v1892_v55 = vrot.slane %v10761_v61, 1 }
  0x8b   : > { %v941_v32 = vsel %vm633_vm3, %v936_v19, %v940_v11  ;;  %v1885_v51 = vsel %vm1878_vm5, %v1882_v44, %v1884_v49  ;;  %v10424_v19 = vld [vmem:[#allocation2 + $0xa0] sm:$0xff]  }
  0x8d   : > { %9470 = vmatmul.mubr.msk.bf16.gmra.mxu1 %vm958_vm4, %v909_v25  ;;  %v781_v25 = vsel %vm633_vm3, %v776_v8, %v780_v0  ;;  %v1902_v0 = vrot.slane %v10798_v59, 1 }
  0x8e   : > { %9430 = vmatmul.mubr.msk.bf16.gmra.mxu0 %vm958_vm4, %v749_v18  ;;  %9473 = vmatprep.mubr.msk.bf16.mxu1 %vm958_vm4, %v917_v31  ;;  %v788_v18 = vrot.slane %v786_v58, 1  ;;  %v1896_v58 = vrot.slane %v10773_v14, 1 }
  0x8f   : > { %9433 = vmatprep.mubr.msk.bf16.mxu0 %vm958_vm4, %v757_v20  ;;  %v944_v20 = vor.u32 %v942_v4, %v940_v11 }
  0x90   : > { %v789_v31 = vsel %vm633_vm3, %v784_v13, %v788_v18  ;;  %v792_v38 = vor.u32 %v790_v15, %v788_v18  ;;  %v1914_v13 = vrot.slane %v10860_v28, 1  ;;  %v1918_v15 = vrot.slane %v10424_v19, 1 }
  0x91   : > { %v949_v34 = vsel %vm633_vm3, %v944_v20, %v948_v22  ;;  %v10425_v20 = vld [vmem:[#allocation2 + $0xa8] sm:$0xff]  }
  0x92   : > { %v797_v39 = vsel %vm633_vm3, %v792_v38, %v10721_v1  ;;  %v1883_v1 = vsel %vm1878_vm5, %v1880_v27, %v1882_v44  ;;  %v10428_v27 = vld [vmem:[#allocation2 + $0xc0] sm:$0xff]   ;;  %v1930_v38 = vrot.slane %v10430_v36, 1 }
  0x93   : > { %v10432_v44 = vld [vmem:[#allocation2 + $0xe0] sm:$0xff]  }
  0x95   : > { %9474 = vmatmul.mubr.msk.bf16.gmra.mxu1 %vm958_vm4, %v925_v63  ;;  %v1900_v63 = vrot.slane %v10788_v40, 1 }
  0x96   : > { %9434 = vmatmul.mubr.msk.bf16.gmra.mxu0 %vm958_vm4, %v765_v52  ;;  %9477 = vmatprep.mubr.msk.bf16.mxu1 %vm958_vm4, %v933_v3  ;;  %v2919_v52 = vsel %vm1079_vm2, %v10843_v16, 0  ;;  %v1889_v16 = vsel %vm1878_vm5, %v1886_v17, %v1888_v53 }
  0x97   : > { %9437 = vmatprep.mubr.msk.bf16.mxu0 %vm958_vm4, %v773_v57  ;;  %v1894_v57 = vrot.slane %v10770_v9, 1  ;;  %v1903_v3 = vsel %vm1878_vm5, %v1900_v63, %v1902_v0 }
  0x9d   : > { %9478 = vmatmul.mubr.msk.bf16.gmra.mxu1 %vm958_vm4, %v941_v32  ;;  %v10429_v32 = vld [vmem:[#allocation2 + $0xc8] sm:$0xff]  }
  0x9e   : > { %9438 = vmatmul.mubr.msk.bf16.gmra.mxu0 %vm958_vm4, %v781_v25  ;;  %9481 = vmatprep.mubr.msk.bf16.mxu1 %vm958_vm4, %v949_v34  ;;  %v10427_v25 = vld [vmem:[#allocation2 + $0xb8] sm:$0xff]   ;;  %v1928_v34 = vrot.slane %v10429_v32, 1 }
  0x9f   : > { %9441 = vmatprep.mubr.msk.bf16.mxu0 %vm958_vm4, %v789_v31  ;;  %v1926_v31 = vrot.slane %v10428_v27, 1 }
  0xa1   : > { %v1929_v35 = vsel %vm1878_vm5, %v1926_v31, %v1928_v34 }
  0xa5   : > { %9482 = vmatmul.mubr.msk.bf16.gmra.mxu1 %vm958_vm4, %v957_v43 }
  0xa6   : > { %9442 = vmatmul.mubr.msk.bf16.gmra.mxu0 %vm958_vm4, %v797_v39  ;;  %9487 = vmatprep.mubr.msk.bf16.mxu1 %vm958_vm4, %v10709_v48  ;;  %v1887_v48 = vsel %vm1878_vm5, %v1884_v49, %v1886_v17  ;;  %v1932_v39 = vrot.slane %v10431_v47, 1  ;;  %v10433_v49 = vld [vmem:[#allocation2 + $0xe8] sm:$0xff]   ;;  %v10434_v17 = vld [vmem:[#allocation2 + $0xf0] sm:$0xff]  }
  0xa7   : > { %9569 = vmatprep.mubr.msk.bf16.mxu0 %vm958_vm4, %v1881_v41  ;;  %v1931_v41 = vsel %vm1878_vm5, %v1928_v34, %v1930_v38 }
  0xa8   : > { %v1933_v43 = vsel %vm1878_vm5, %v1930_v38, %v1932_v39 }
  0xad   : > { %9488 = vmatmul.mubr.msk.bf16.vlgmr.msra.gmra.mxu1 %vm958_vm4, %v10701_v45  ;;  %v1891_v45 = vsel %vm1878_vm5, %v1888_v53, %v1890_v54  ;;  %v1938_v53 = vrot.slane %v10434_v17, 1 }
  0xae   : > { %9570 = vmatmul.mubr.msk.bf16.vlgmr.msra.gmra.mxu0 %vm958_vm4, %v1883_v1  ;;  %9650 = vmatpush3.bf16.msra.mxu1 %v2919_v52  ;;  %v1936_v1 = vrot.slane %v10433_v49, 1 }
  0xaf   : > { %9732 = vmatpush3.bf16.msra.mxu0 %v4085_v46  ;;  %9573 = vmatprep.mubr.msk.bf16.mxu0 %vm958_vm4, %v1885_v51  ;;  %v1934_v46 = vrot.slane %v10432_v44, 1 }
  0xb0   : > { %9491 = vmatprep.mubr.msk.bf16.mxu1 %vm958_vm4, %v10719_v60  ;;  %v1893_v60 = vsel %vm1878_vm5, %v1890_v54, %v1892_v55  ;;  %10149 = vmatprep.subr.msk.bf16.mxu1 %vm1079_vm2, %v10954_v2  ;;  %v1939_v54 = vsel %vm1878_vm5, %v1936_v1, %v1938_v53 }
  0xb1   : > { %v1935_v51 = vsel %vm1878_vm5, %v1932_v39, %v1934_v46  ;;  %v1937_v52 = vsel %vm1878_vm5, %v1934_v46, %v1936_v1 }
  0xb5   : > { %9492 = vmatmul.mubr.msk.bf16.gmra.mxu1 %vm958_vm4, %v10732_v12  ;;  %v1895_v12 = vsel %vm1878_vm5, %v1892_v55, %v1894_v57 }
  0xb6   : > { %9574 = vmatmul.mubr.msk.bf16.gmra.mxu0 %vm958_vm4, %v1887_v48  ;;  %9495 = vmatprep.mubr.msk.bf16.mxu1 %vm958_vm4, %v10739_v21  ;;  %v1897_v21 = vsel %vm1878_vm5, %v1894_v57, %v1896_v58  ;;  %v10435_v48 = vld [vmem:[#allocation2 + $0xf8] sm:$0xff]  }
  0xb7   : > { %9577 = vmatprep.mubr.msk.bf16.mxu0 %vm958_vm4, %v1889_v16  ;;  %v1940_v16 = vrot.slane %v10435_v48, 1 }
  0xb9   : > { %v1941_v55 = vsel %vm1878_vm5, %v1938_v53, %v1940_v16 }
  0xbd   : > { %9496 = vmatmul.mubr.msk.bf16.gmra.mxu1 %vm958_vm4, %v10747_v33  ;;  %v1899_v33 = vsel %vm1878_vm5, %v1896_v58, %v1898_v62 }
  0xbe   : > { %9578 = vmatmul.mubr.msk.bf16.gmra.mxu0 %vm958_vm4, %v1891_v45  ;;  %9499 = vmatprep.mubr.msk.bf16.mxu1 %vm958_vm4, %v10756_v50  ;;  %v1901_v50 = vsel %vm1878_vm5, %v1898_v62, %v1900_v63 }
  0xbf   : > { %9581 = vmatprep.mubr.msk.bf16.mxu0 %vm958_vm4, %v1893_v60  ;;  %v10436_v60 = vld [vmem:[#allocation2 + $0x100] sm:$0xff]  }
  0xc0   : > { %v1942_v57 = vrot.slane %v10436_v60, 1 }
  0xc5   : > { %9500 = vmatmul.mubr.msk.bf16.gmra.mxu1 %vm958_vm4, %v10761_v61  ;;  %v1904_v61 = vrot.slane %v10804_v7, 1 }
  0xc6   : > { %9582 = vmatmul.mubr.msk.bf16.gmra.mxu0 %vm958_vm4, %v1895_v12  ;;  %9503 = vmatprep.mubr.msk.bf16.mxu1 %vm958_vm4, %v10770_v9  ;;  %v10967_v9 = vld [vmem:[%s12985_s1 + $0xc] sm:$0x3] }
  0xc7   : > { %9585 = vmatprep.mubr.msk.bf16.mxu0 %vm958_vm4, %v1897_v21  ;;  %10150 = vmatprep.subr.msk.bf16.mxu0 %vm1079_vm2, %v10967_v9  ;;  %v1905_v4 = vsel %vm1878_vm5, %v1902_v0, %v1904_v61  ;;  %v10437_v21 = vld [vmem:[#allocation2 + $0x108] sm:$0xff]  }
  0xc8   : > { %v1944_v62 = vrot.slane %v10437_v21, 1 }
  0xcd   : > { %9504 = vmatmul.mubr.msk.bf16.gmra.mxu1 %vm958_vm4, %v10773_v14  ;;  %v1906_v14 = vrot.slane %v10816_v29, 1 }
  0xce   : > { %9586 = vmatmul.mubr.msk.bf16.gmra.mxu0 %vm958_vm4, %v1899_v33  ;;  %9507 = vmatprep.mubr.msk.bf16.mxu1 %vm958_vm4, %v10782_v30  ;;  %v1908_v30 = vrot.slane %v10820_v37, 1 }
  0xcf   : > { %9589 = vmatprep.mubr.msk.bf16.mxu0 %vm958_vm4, %v1901_v50  ;;  %v1907_v5 = vsel %vm1878_vm5, %v1904_v61, %v1906_v14  ;;  %v1943_v50 = vsel %vm1878_vm5, %v1940_v16, %v1942_v57 }
  0xd0   : > { %v1909_v8 = vsel %vm1878_vm5, %v1906_v14, %v1908_v30 }
  0xd5   : > { %9508 = vmatmul.mubr.msk.bf16.gmra.mxu1 %vm958_vm4, %v10788_v40  ;;  %v1912_v40 = vrot.slane %v10836_v6, 1 }
  0xd6   : > { %9590 = vmatmul.mubr.msk.bf16.gmra.mxu0 %vm958_vm4, %v1903_v3  ;;  %9511 = vmatprep.mubr.msk.bf16.mxu1 %vm958_vm4, %v10798_v59  ;;  %v1911_v59 = vsel %vm1878_vm5, %v1908_v30, %v1910_v10  ;;  %v1945_v3 = vsel %vm1878_vm5, %v1942_v57, %v1944_v62  ;;  %v10438_v30 = vld [vmem:[#allocation2 + $0x110] sm:$0xff]  }
  0xd7   : > { %9593 = vmatprep.mubr.msk.bf16.mxu0 %vm958_vm4, %v1905_v4  ;;  %v1913_v11 = vsel %vm1878_vm5, %v1910_v10, %v1912_v40 }
  0xdd   : > { %9512 = vmatmul.mubr.msk.bf16.gmra.mxu1 %vm958_vm4, %v10804_v7  ;;  %v1916_v7 = vrot.slane %v10866_v42, 1 }
  0xde   : > { %9594 = vmatmul.mubr.msk.bf16.gmra.mxu0 %vm958_vm4, %v1907_v5  ;;  %9515 = vmatprep.mubr.msk.bf16.mxu1 %vm958_vm4, %v10816_v29  ;;  %v1915_v29 = vsel %vm1878_vm5, %v1912_v40, %v1914_v13  ;;  %v1946_v5 = vrot.slane %v10438_v30, 1  ;;  %v10439_v40 = vld [vmem:[#allocation2 + $0x118] sm:$0xff]  }
  0xdf   : > { %9597 = vmatprep.mubr.msk.bf16.mxu0 %vm958_vm4, %v1909_v8  ;;  %v1917_v18 = vsel %vm1878_vm5, %v1914_v13, %v1916_v7 }
  0xe5   : > { %9516 = vmatmul.mubr.msk.bf16.gmra.mxu1 %vm958_vm4, %v10820_v37  ;;  %v1920_v37 = vrot.slane %v10425_v20, 1 }
  0xe6   : > { %9598 = vmatmul.mubr.msk.bf16.gmra.mxu0 %vm958_vm4, %v1911_v59  ;;  %9519 = vmatprep.mubr.msk.bf16.mxu1 %vm958_vm4, %v10830_v56  ;;  %v1919_v56 = vsel %vm1878_vm5, %v1916_v7, %v1918_v15  ;;  %v1948_v59 = vrot.slane %v10439_v40, 1  ;;  %v1947_v7 = vsel %vm1878_vm5, %v1944_v62, %v1946_v5  ;;  %v10264_v62 = vld [vmem:[#allocation2 + $0x24] sm:$0xff]  }
  0xe7   : > { %9601 = vmatprep.mubr.msk.bf16.mxu0 %vm958_vm4, %v1913_v11  ;;  %v1921_v22 = vsel %vm1878_vm5, %v1918_v15, %v1920_v37  ;;  %v1923_v26 = vsel %vm1878_vm5, %v1920_v37, %v1922_v24  ;;  %v10440_v37 = vld [vmem:[#allocation2 + $0x120] sm:$0xff]  }
  0xed   : > { %9520 = vmatmul.mubr.msk.bf16.gmra.mxu1 %vm958_vm4, %v10836_v6  ;;  %v1924_v6 = vrot.slane %v10427_v25, 1 }
  0xee   : > { %9602 = vmatmul.mubr.msk.bf16.gmra.mxu0 %vm958_vm4, %v1915_v29  ;;  %9523 = vmatprep.mubr.msk.bf16.mxu1 %vm958_vm4, %v10860_v28 }
  0xef   : > { %9605 = vmatprep.mubr.msk.bf16.mxu0 %vm958_vm4, %v1917_v18  ;;  %v1925_v28 = vsel %vm1878_vm5, %v1922_v24, %v1924_v6  ;;  %v10441_v24 = vld [vmem:[#allocation2 + $0x128] sm:$0xff]  }
  0xf5   : > { %9524 = vmatmul.mubr.msk.bf16.gmra.mxu1 %vm958_vm4, %v10866_v42  ;;  %v1927_v42 = vsel %vm1878_vm5, %v1924_v6, %v1926_v31  ;;  %v3354_v6 = vld [vmem:[#allocation2 + $0x14] sm:$0xf] }
  0xf6   : > { %9606 = vmatmul.mubr.msk.bf16.gmra.mxu0 %vm958_vm4, %v1919_v56  ;;  %9527 = vmatprep.mubr.msk.bf16.mxu1 %vm958_vm4, %v10424_v19  ;;  %v1949_v19 = vsel %vm1878_vm5, %v1946_v5, %v1948_v59  ;;  %v1950_v56 = vrot.slane %v10440_v37, 1 }
  0xf7   : > { %9609 = vmatprep.mubr.msk.bf16.mxu0 %vm958_vm4, %v1921_v22 }
  0xf8   : > { %v1951_v31 = vsel %vm1878_vm5, %v1948_v59, %v1950_v56 }
  0xfd   : > { %9528 = vmatmul.mubr.msk.bf16.gmra.mxu1 %vm958_vm4, %v10425_v20 }
  0xfe   : > { %9610 = vmatmul.mubr.msk.bf16.gmra.mxu0 %vm958_vm4, %v1923_v26  ;;  %9531 = vmatprep.mubr.msk.bf16.mxu1 %vm958_vm4, %v10426_v23  ;;  %v3355_v26 = vld [vmem:[#allocation2 + $0x18] sm:$0xf] }
  0xff   : > { %9613 = vmatprep.mubr.msk.bf16.mxu0 %vm958_vm4, %v1925_v28 }
 0x105   : > { %9532 = vmatmul.mubr.msk.bf16.gmra.mxu1 %vm958_vm4, %v10427_v25  ;;  %v1952_v25 = vrot.slane %v10441_v24, 1 }
 0x106   : > { %9614 = vmatmul.mubr.msk.bf16.gmra.mxu0 %vm958_vm4, %v1927_v42  ;;  %9535 = vmatprep.mubr.msk.bf16.mxu1 %vm958_vm4, %v10428_v27 }
 0x107   : > { %9617 = vmatprep.mubr.msk.bf16.mxu0 %vm958_vm4, %v1929_v35  ;;  %v1953_v42 = vsel %vm1878_vm5, %v1950_v56, %v1952_v25  ;;  %v8677_v35 = vcombine.low %v3354_v6, %v3355_v26  ;;  %v3656_v56 = vshll.u32 %v10264_v62, 16 }
 0x109   : > { %v3643_v1 = vshll.u32 %v8677_v35, 16 }
 0x10d   : > { %9536 = vmatmul.mubr.msk.bf16.gmra.mxu1 %vm958_vm4, %v10429_v32 }
 0x10e   : > { %9618 = vmatmul.mubr.msk.bf16.gmra.mxu0 %vm958_vm4, %v1931_v41  ;;  %9539 = vmatprep.mubr.msk.bf16.mxu1 %vm958_vm4, %v10430_v36 }
 0x10f   : > { %9621 = vmatprep.mubr.msk.bf16.mxu0 %vm958_vm4, %v1933_v43 }
 0x115   : > { %9540 = vmatmul.mubr.msk.bf16.gmra.mxu1 %vm958_vm4, %v10431_v47  ;;  %v10442_v47 = vld [vmem:[#allocation2 + $0x130] sm:$0xff]  }
 0x116   : > { %9622 = vmatmul.mubr.msk.bf16.gmra.mxu0 %vm958_vm4, %v1935_v51  ;;  %9543 = vmatprep.mubr.msk.bf16.mxu1 %vm958_vm4, %v10432_v44  ;;  %v1954_v39 = vrot.slane %v10442_v47, 1  ;;  %v10443_v44 = vld [vmem:[#allocation2 + $0x138] sm:$0xff]  }
 0x117   : > { %9625 = vmatprep.mubr.msk.bf16.mxu0 %vm958_vm4, %v1937_v52  ;;  %v1956_v46 = vrot.slane %v10443_v44, 1 }
 0x119   : > { %v1957_v16 = vsel %vm1878_vm5, %v1954_v39, %v1956_v46 }
 0x11d   : > { %v11046_v58 = vpop.f32.mrf.mxu1  ;;  %9544 = vmatmul.mubr.msk.bf16.gmra.mxu1 %vm958_vm4, %v10433_v49  ;;  %v10262_v49 = vld [vmem:[#allocation2 + $0x1c] sm:$0xff]  }
 0x11e   : > { %v11042_v45 = vpop.f32.mrf.mxu0  ;;  %9626 = vmatmul.mubr.msk.bf16.gmra.mxu0 %vm958_vm4, %v1939_v54  ;;  %12992 = vst [vmem:[#allocation7_spill] sm:$0xff] %v11046_v58  ;;  %9547 = vmatprep.mubr.msk.bf16.mxu1 %vm958_vm4, %v10434_v17  ;;  %v1955_v17 = vsel %vm1878_vm5, %v1952_v25, %v1954_v39  ;;  %v3641_v54 = vshrl.u32 %v8677_v35, 16  ;;  %v3652_v6 = vshrl.u32 %v10262_v49, 16  ;;  %v10260_v39 = vld [vmem:[#allocation2 + $0x14] sm:$0xff]  }
 0x11f   : > { %9629 = vmatprep.mubr.msk.bf16.mxu0 %vm958_vm4, %v1941_v55  ;;  %v11052_v63 = vpop.f32.mrf.mxu1  ;;  %v3645_v55 = vrot.slane %v3643_v1, 1 }
 0x120   : > { %v11049_v12 = vpop.f32.mrf.mxu0  ;;  %12993 = vst [vmem:[#allocation8_spill] sm:$0xff] %v11052_v63 }
 0x121   : > { %v11057_v0 = vpop.f32.mrf.mxu1 }
 0x122   : > { %v11054_v33 = vpop.f32.mrf.mxu0  ;;  %12994 = vst [vmem:[#allocation9_spill] sm:$0xff] %v11057_v0 }
 0x123   : > { %v11062_v4 = vpop.f32.mrf.mxu1 }
 0x124   : > { %v11059_v61 = vpop.f32.mrf.mxu0  ;;  %12995 = vst [vmem:[#allocation10_spill] sm:$0xff] %v11062_v4 }
 0x125   : > { %v11068_v8 = vpop.f32.mrf.mxu1  ;;  %9548 = vmatmul.mubr.msk.bf16.gmra.mxu1 %vm958_vm4, %v10435_v48 }
 0x126   : > { %v11064_v14 = vpop.f32.mrf.mxu0  ;;  %9630 = vmatmul.mubr.msk.bf16.gmra.mxu0 %vm958_vm4, %v1943_v50  ;;  %12996 = vst [vmem:[#allocation11_spill] sm:$0xff] %v11068_v8  ;;  %9551 = vmatprep.mubr.msk.bf16.mxu1 %vm958_vm4, %v10436_v60  ;;  %v3648_v60 = vshll.u32 %v10262_v49, 16  ;;  %v10444_v50 = vld [vmem:[#allocation2 + $0x140] ss:$0 sps:$4 sm:$0x11]   ;;  %v10288_v8 = vld [vmem:[#allocation2 + $0x84] sm:$0xff]  }
 0x127   : > { %9633 = vmatprep.mubr.msk.bf16.mxu0 %vm958_vm4, %v1945_v3  ;;  %v11074_v11 = vpop.f32.mrf.mxu1  ;;  %v1958_v3 = vrot.slane %v10444_v50, 1  ;;  %v3756_v63 = vshrl.u32 %v10288_v8, 16 }
 0x128   : > { %v11071_v10 = vpop.f32.mrf.mxu0  ;;  %12997 = vst [vmem:[#allocation12_spill] sm:$0xff] %v11074_v11  ;;  %v3650_v59 = vrot.slane %v3648_v60, 1 }
 0x129   : > { %v11079_v29 = vpop.f32.mrf.mxu1  ;;  %v1959_v25 = vsel %vm1878_vm5, %v1956_v46, %v1958_v3 }
 0x12a   : > { %v11076_v13 = vpop.f32.mrf.mxu0  ;;  %12998 = vst [vmem:[#allocation13_spill] sm:$0xff] %v11079_v29  ;;  %v10281_v29 = vld [vmem:[#allocation2 + $0x64] sm:$0xff]  }
 0x12b   : > { %v11084_v15 = vpop.f32.mrf.mxu1 }
 0x12c   : > { %v11081_v18 = vpop.f32.mrf.mxu0  ;;  %12999 = vst [vmem:[#allocation14_spill] sm:$0xff] %v11084_v15 }
 0x12d   : > { %v11090_v22 = vpop.f32.mrf.mxu1  ;;  %9552 = vmatmul.mubr.msk.bf16.gmra.mxu1 %vm958_vm4, %v10437_v21 }
 0x12e   : > { %v11086_v20 = vpop.f32.mrf.mxu0  ;;  %9634 = vmatmul.mubr.msk.bf16.gmra.mxu0 %vm958_vm4, %v1947_v7  ;;  %13000 = vst [vmem:[#allocation15_spill] sm:$0xff] %v11090_v22  ;;  %9555 = vmatprep.mubr.msk.bf16.mxu1 %vm958_vm4, %v10438_v30  ;;  %v10266_v7 = vld [vmem:[#allocation2 + $0x2c] sm:$0xff]   ;;  %v10284_v22 = vld [vmem:[#allocation2 + $0x74] sm:$0xff]  }
 0x12f   : > { %9637 = vmatprep.mubr.msk.bf16.mxu0 %vm958_vm4, %v1949_v19  ;;  %v11096_v28 = vpop.f32.mrf.mxu1  ;;  %v3664_v35 = vshll.u32 %v10266_v7, 16 }
 0x130   : > { %v11093_v23 = vpop.f32.mrf.mxu0  ;;  %13001 = vst [vmem:[#allocation16_spill] sm:$0xff] %v11096_v28 }
 0x131   : > { %v11101_v32 = vpop.f32.mrf.mxu1  ;;  %v3666_v60 = vrot.slane %v3664_v35, 1 }
 0x132   : > { %v11098_v27 = vpop.f32.mrf.mxu0  ;;  %13002 = vst [vmem:[#allocation17_spill] sm:$0xff] %v11101_v32  ;;  %v10277_v32 = vld [vmem:[#allocation2 + $0x54] sm:$0xff]  }
 0x133   : > { %v11106_v36 = vpop.f32.mrf.mxu1 }
 0x134   : > { %v11103_v34 = vpop.f32.mrf.mxu0  ;;  %13003 = vst [vmem:[#allocation18_spill] sm:$0xff] %v11106_v36 }
 0x135   : > { %v11112_v41 = vpop.f32.mrf.mxu1  ;;  %9556 = vmatmul.mubr.msk.bf16.gmra.mxu1 %vm958_vm4, %v10439_v40  ;;  %v3646_v40 = vor.u32 %v3645_v55, %v3641_v54  ;;  %v3654_v54 = vor.u32 %v3652_v6, %v3650_v59 }
 0x136   : > { %v11108_v38 = vpop.f32.mrf.mxu0  ;;  %9638 = vmatmul.mubr.msk.bf16.gmra.mxu0 %vm958_vm4, %v1951_v31  ;;  %13004 = vst [vmem:[#allocation19_spill] sm:$0xff] %v11112_v41  ;;  %9559 = vmatprep.mubr.msk.bf16.mxu1 %vm958_vm4, %v10440_v37  ;;  %v10280_v41 = vld [vmem:[#allocation2 + $0x64] sm:$0xff]  }
 0x137   : > { %9641 = vmatprep.mubr.msk.bf16.mxu0 %vm958_vm4, %v1953_v42  ;;  %v11118_v51 = vpop.f32.mrf.mxu1  ;;  %v3660_v42 = vshrl.u32 %v10264_v62, 16  ;;  %v10270_v62 = vld [vmem:[#allocation2 + $0x3c] sm:$0xff]  }
 0x138   : > { %v11115_v43 = vpop.f32.mrf.mxu0  ;;  %13005 = vst [vmem:[#allocation20_spill] sm:$0xff] %v11118_v51 }
 0x139   : > { %v11123_v53 = vpop.f32.mrf.mxu1 }
 0x13a   : > { %v11120_v52 = vpop.f32.mrf.mxu0  ;;  %13006 = vst [vmem:[#allocation21_spill] sm:$0xff] %v11123_v53  ;;  %v10273_v53 = vld [vmem:[#allocation2 + $0x44] sm:$0xff]  }
 0x13b   : > { %v11128_v57 = vpop.f32.mrf.mxu1 }
 0x13c   : > { %v11125_v48 = vpop.f32.mrf.mxu0  ;;  %13007 = vst [vmem:[#allocation22_spill] sm:$0xff] %v11128_v57 }
 0x13d   : > { %v11134_v30 = vpop.f32.mrf.mxu1  ;;  %9560 = vmatmul.mubr.msk.bf16.gmra.mxu1 %vm958_vm4, %v10441_v24  ;;  %v3651_v24 = vsel %vm633_vm3, %v3646_v40, %v3650_v59 }
 0x13e   : > { %v11130_v21 = vpop.f32.mrf.mxu0  ;;  %9642 = vmatmul.mubr.msk.bf16.gmra.mxu0 %vm958_vm4, %v1955_v17  ;;  %13008 = vst [vmem:[#allocation23_spill] sm:$0xff] %v11134_v30  ;;  %9563 = vmatprep.mubr.msk.bf16.mxu1 %vm958_vm4, %v10442_v47  ;;  %v3658_v17 = vrot.slane %v3656_v56, 1  ;;  %v3668_v56 = vshrl.u32 %v10266_v7, 16  ;;  %v4728_v7 = vsel %vm1079_vm2, %v10954_v2, 0  ;;  %v10276_v30 = vld [vmem:[#allocation2 + $0x54] sm:$0xff]  }
 0x13f   : > { %9645 = vmatprep.mubr.msk.bf16.mxu0 %vm958_vm4, %v1957_v16  ;;  %v11140_v19 = vpop.f32.mrf.mxu1  ;;  %v10268_v16 = vld [vmem:[#allocation2 + $0x34] sm:$0xff]  }
 0x140   : > { %v11137_v5 = vpop.f32.mrf.mxu0  ;;  %13009 = vst [vmem:[#allocation24_spill] sm:$0xff] %v11140_v19  ;;  %v3662_v55 = vor.u32 %v3660_v42, %v3658_v17  ;;  %v3672_v40 = vshll.u32 %v10268_v16, 16  ;;  %v3659_v59 = vsel %vm633_vm3, %v3654_v54, %v3658_v17  ;;  %v3676_v35 = vshrl.u32 %v10268_v16, 16  ;;  %v10272_v54 = vld [vmem:[#allocation2 + $0x44] sm:$0xff]  }
 0x141   : > { %v11145_v26 = vpop.f32.mrf.mxu1 }
 0x142   : > { %v11142_v37 = vpop.f32.mrf.mxu0  ;;  %13010 = vst [vmem:[#allocation25_spill] sm:$0xff] %v11145_v26  ;;  %v3667_v42 = vsel %vm633_vm3, %v3662_v55, %v3666_v60  ;;  %v3674_v17 = vrot.slane %v3672_v40, 1  ;;  %v10274_v26 = vld [vmem:[#allocation2 + $0x4c] sm:$0xff]   ;;  %v3688_v40 = vshll.u32 %v10272_v54, 16 }
 0x143   : > { %v11150_v1 = vpop.f32.mrf.mxu1 }
 0x144   : > { %v11147_v31 = vpop.f32.mrf.mxu0  ;;  %13011 = vst [vmem:[#allocation26_spill] sm:$0xff] %v11150_v1  ;;  %v3678_v55 = vor.u32 %v3676_v35, %v3674_v17 }
 0x145   : > { %v11156_v46 = vpop.f32.mrf.mxu1  ;;  %9564 = vmatmul.mubr.msk.bf16.gmra.mxu1 %vm958_vm4, %v10443_v44  ;;  %v10263_v44 = vld [vmem:[#allocation2 + $0x1c] sm:$0xff]  }
 0x146   : > { %v11152_v47 = vpop.f32.mrf.mxu0  ;;  %9646 = vmatmul.mubr.msk.bf16.gmra.mxu0 %vm958_vm4, %v1959_v25  ;;  %13012 = vst [vmem:[#allocation27_spill] sm:$0xff] %v11156_v46  ;;  %9651 = vmatprep.mubr.msk.bf16.mxu1 %vm958_vm4, %v10260_v39  ;;  %v3680_v39 = vshll.u32 %v10270_v62, 16  ;;  %v10265_v46 = vld [vmem:[#allocation2 + $0x24] sm:$0xff]  }
 0x147   : > { %9733 = vmatprep.mubr.msk.bf16.mxu0 %vm958_vm4, %v3651_v24  ;;  %v11162_v50 = vpop.f32.mrf.mxu1  ;;  %v5566_v24 = vsel %vm1079_vm2, %v10967_v9, 0 }
 0x148   : > { %v11159_v49 = vpop.f32.mrf.mxu0  ;;  %13013 = vst [vmem:[#allocation28_spill] sm:$0xff] %v11162_v50 }
 0x149   : > { %v11167_v25 = vpop.f32.mrf.mxu1 }
 0x14a   : > { %v11164_v3 = vpop.f32.mrf.mxu0  ;;  %13014 = vst [vmem:[#allocation29_spill] sm:$0xff] %v11167_v25  ;;  %v3670_v25 = vor.u32 %v3668_v56, %v3666_v60  ;;  %v3684_v56 = vshrl.u32 %v10270_v62, 16 }
 0x14b   : > { %v11174_v50 = vpop.f32.mrf.mxu1 }
 0x14c   : > { %v11169_v6 = vpop.f32.mrf.mxu0  ;;  %13015 = vst [vmem:[#allocation30_spill] sm:$0xff] %v11174_v50  ;;  %v3682_v50 = vrot.slane %v3680_v39, 1  ;;  %v3675_v60 = vsel %vm633_vm3, %v3670_v25, %v3674_v17  ;;  %v3692_v39 = vshrl.u32 %v10272_v54, 16 }
 0x14d   : > { %v11182_v9 = vpop.f32.mrf.mxu1  ;;  %9652 = vmatmul.mubr.msk.bf16.vlgmr.msra.gmra.mxu1 %vm958_vm4, %v10263_v44  ;;  %v10267_v44 = vld [vmem:[#allocation2 + $0x2c] sm:$0xff]  }
 0x14e   : > { %v11176_v1 = vpop.f32.mrf.mxu0  ;;  %9734 = vmatmul.mubr.msk.bf16.vlgmr.msra.gmra.mxu0 %vm958_vm4, %v3659_v59  ;;  %13016 = vst [vmem:[#allocation31_spill] sm:$0xff] %v11182_v9  ;;  %9814 = vmatpush3.bf16.msra.mxu1 %v4728_v7  ;;  %v3683_v35 = vsel %vm633_vm3, %v3678_v55, %v3682_v50  ;;  %v3696_v9 = vshll.u32 %v10274_v26, 16  ;;  %v10269_v7 = vld [vmem:[#allocation2 + $0x34] sm:$0xff]   ;;  %v3686_v25 = vor.u32 %v3684_v56, %v3682_v50 }
 0x14f   : > { %9896 = vmatpush3.bf16.msra.mxu0 %v5566_v24  ;;  %9737 = vmatprep.mubr.msk.bf16.mxu0 %vm958_vm4, %v3667_v42  ;;  %v11188_v59 = vpop.f32.mrf.mxu1 }
 0x150   : > { %v11185_v16 = vpop.f32.mrf.mxu0  ;;  %9655 = vmatprep.mubr.msk.bf16.mxu1 %vm958_vm4, %v10265_v46  ;;  %13017 = vst [vmem:[#allocation32_spill] sm:$0xff] %v11188_v59  ;;  %v3690_v59 = vrot.slane %v3688_v40, 1  ;;  %v3698_v55 = vrot.slane %v3696_v9, 1  ;;  %v3704_v40 = vshll.u32 %v10276_v30, 16 }
 0x151   : > { %v11193_v24 = vpop.f32.mrf.mxu1 }
 0x152   : > { %v11190_v2 = vpop.f32.mrf.mxu0  ;;  %13018 = vst [vmem:[#allocation33_spill] sm:$0xff] %v11193_v24  ;;  %v3694_v54 = vor.u32 %v3692_v39, %v3690_v59  ;;  %v10278_v24 = vld [vmem:[#allocation2 + $0x5c] sm:$0xff]   ;;  %v3691_v50 = vsel %vm633_vm3, %v3686_v25, %v3690_v59  ;;  %v3708_v39 = vshrl.u32 %v10276_v30, 16 }
 0x153   : > { %v11198_v19 = vpop.f32.mrf.mxu1  ;;  %v3712_v9 = vshll.u32 %v10278_v24, 16 }
 0x154   : > { %v11195_v42 = vpop.f32.mrf.mxu0  ;;  %13019 = vst [vmem:[#allocation34_spill] sm:$0xff] %v11198_v19 }
 0x155   : > { %v11204_v62 = vpop.f32.mrf.mxu1  ;;  %9656 = vmatmul.mubr.msk.bf16.gmra.mxu1 %vm958_vm4, %v10267_v44  ;;  %v10271_v44 = vld [vmem:[#allocation2 + $0x3c] sm:$0xff]  }
 0x156   : > { %v11200_v46 = vpop.f32.mrf.mxu0  ;;  %9738 = vmatmul.mubr.msk.bf16.gmra.mxu0 %vm958_vm4, %v3675_v60  ;;  %13020 = vst [vmem:[#allocation35_spill] sm:$0xff] %v11204_v62  ;;  %9659 = vmatprep.mubr.msk.bf16.mxu1 %vm958_vm4, %v10269_v7  ;;  %v3700_v60 = vshrl.u32 %v10274_v26, 16  ;;  %v3699_v62 = vsel %vm633_vm3, %v3694_v54, %v3698_v55  ;;  %v3714_v54 = vrot.slane %v3712_v9, 1 }
 0x157   : > { %9741 = vmatprep.mubr.msk.bf16.mxu0 %vm958_vm4, %v3683_v35  ;;  %v11210_v19 = vpop.f32.mrf.mxu1 }
 0x158   : > { %v11207_v17 = vpop.f32.mrf.mxu0  ;;  %13021 = vst [vmem:[#allocation36_spill] sm:$0xff] %v11210_v19  ;;  %v3706_v19 = vrot.slane %v3704_v40, 1  ;;  %v3702_v59 = vor.u32 %v3700_v60, %v3698_v55  ;;  %v3720_v40 = vshll.u32 %v10280_v41, 16 }
 0x159   : > { %v11215_v56 = vpop.f32.mrf.mxu1 }
 0x15a   : > { %v11212_v57 = vpop.f32.mrf.mxu0  ;;  %13022 = vst [vmem:[#allocation37_spill] sm:$0xff] %v11215_v56  ;;  %v3710_v30 = vor.u32 %v3708_v39, %v3706_v19  ;;  %v10282_v56 = vld [vmem:[#allocation2 + $0x6c] sm:$0xff]   ;;  %v3707_v55 = vsel %vm633_vm3, %v3702_v59, %v3706_v19  ;;  %v3724_v39 = vshrl.u32 %v10280_v41, 16 }
 0x15b   : > { %v11220_v51 = vpop.f32.mrf.mxu1  ;;  %v3728_v9 = vshll.u32 %v10282_v56, 16 }
 0x15c   : > { %v11217_v35 = vpop.f32.mrf.mxu0  ;;  %13023 = vst [vmem:[#allocation38_spill] sm:$0xff] %v11220_v51 }
 0x15d   : > { %v11226_v26 = vpop.f32.mrf.mxu1  ;;  %9660 = vmatmul.mubr.msk.bf16.gmra.mxu1 %vm958_vm4, %v10271_v44  ;;  %v10275_v44 = vld [vmem:[#allocation2 + $0x4c] sm:$0xff]  }
 0x15e   : > { %v11222_v7 = vpop.f32.mrf.mxu0  ;;  %9742 = vmatmul.mubr.msk.bf16.gmra.mxu0 %vm958_vm4, %v3691_v50  ;;  %13024 = vst [vmem:[#allocation39_spill] sm:$0xff] %v11226_v26  ;;  %9663 = vmatprep.mubr.msk.bf16.mxu1 %vm958_vm4, %v10273_v53  ;;  %v3716_v50 = vshrl.u32 %v10278_v24, 16  ;;  %v3715_v26 = vsel %vm633_vm3, %v3710_v30, %v3714_v54  ;;  %v3730_v30 = vrot.slane %v3728_v9, 1 }
 0x15f   : > { %9745 = vmatprep.mubr.msk.bf16.mxu0 %vm958_vm4, %v3699_v62  ;;  %v11232_v51 = vpop.f32.mrf.mxu1 }
 0x160   : > { %v11229_v25 = vpop.f32.mrf.mxu0  ;;  %13025 = vst [vmem:[#allocation40_spill] sm:$0xff] %v11232_v51  ;;  %v3722_v51 = vrot.slane %v3720_v40, 1  ;;  %v3718_v19 = vor.u32 %v3716_v50, %v3714_v54  ;;  %v3736_v40 = vshll.u32 %v10284_v22, 16 }
 0x161   : > { %v11237_v62 = vpop.f32.mrf.mxu1 }
 0x162   : > { %v11234_v36 = vpop.f32.mrf.mxu0  ;;  %13026 = vst [vmem:[#allocation41_spill] sm:$0xff] %v11237_v62  ;;  %v3726_v41 = vor.u32 %v3724_v39, %v3722_v51  ;;  %v10286_v62 = vld [vmem:[#allocation2 + $0x7c] sm:$0xff]   ;;  %v3723_v54 = vsel %vm633_vm3, %v3718_v19, %v3722_v51  ;;  %v3740_v39 = vshrl.u32 %v10284_v22, 16 }
 0x163   : > { %v11242_v28 = vpop.f32.mrf.mxu1  ;;  %v3744_v9 = vshll.u32 %v10286_v62, 16 }
 0x164   : > { %v11239_v60 = vpop.f32.mrf.mxu0  ;;  %13027 = vst [vmem:[#allocation42_spill] sm:$0xff] %v11242_v28 }
 0x165   : > { %v11248_v24 = vpop.f32.mrf.mxu1  ;;  %9664 = vmatmul.mubr.msk.bf16.gmra.mxu1 %vm958_vm4, %v10275_v44  ;;  %v10279_v44 = vld [vmem:[#allocation2 + $0x5c] sm:$0xff]  }
 0x166   : > { %v11244_v53 = vpop.f32.mrf.mxu0  ;;  %9746 = vmatmul.mubr.msk.bf16.gmra.mxu0 %vm958_vm4, %v3707_v55  ;;  %13028 = vst [vmem:[#allocation43_spill] sm:$0xff] %v11248_v24  ;;  %9667 = vmatprep.mubr.msk.bf16.mxu1 %vm958_vm4, %v10277_v32  ;;  %v3732_v55 = vshrl.u32 %v10282_v56, 16  ;;  %v3731_v24 = vsel %vm633_vm3, %v3726_v41, %v3730_v30  ;;  %v11269_v41 = vld [vmem:[#allocation2 + $0x8c] sm:$0xff]  }
 0x167   : > { %9749 = vmatprep.mubr.msk.bf16.mxu0 %vm958_vm4, %v3715_v26  ;;  %v11254_v28 = vpop.f32.mrf.mxu1 }
 0x168   : > { %v11251_v59 = vpop.f32.mrf.mxu0  ;;  %13029 = vst [vmem:[#allocation44_spill] sm:$0xff] %v11254_v28  ;;  %v3738_v28 = vrot.slane %v3736_v40, 1  ;;  %v3734_v4 = vor.u32 %v3732_v55, %v3730_v30  ;;  %v8881_v40 = vld [vmem:[%s12985_s1 + $0xe] sm:$0x3]  ;;  %v3752_v55 = vshll.u32 %v10288_v8, 16 }
 0x169   : > { %v11259_v26 = vpop.f32.mrf.mxu1  ;;  %10151 = vmatprep.subr.msk.bf16.mxu1 %vm1079_vm2, %v8881_v40  ;;  %v3760_v40 = vshll.u32 %v11269_v41, 16 }
 0x16a   : > { %v11256_v15 = vpop.f32.mrf.mxu0  ;;  %13030 = vst [vmem:[#allocation45_spill] sm:$0xff] %v11259_v26  ;;  %v3742_v19 = vor.u32 %v3740_v39, %v3738_v28  ;;  %v3746_v26 = vrot.slane %v3744_v9, 1  ;;  %v3739_v39 = vsel %vm633_vm3, %v3734_v4, %v3738_v28  ;;  %v3748_v9 = vshrl.u32 %v10286_v62, 16  ;;  %v10285_v28 = vld [vmem:[#allocation2 + $0x74] sm:$0xff]  }
 0x16b   : > { %v11264_v11 = vpop.f32.mrf.mxu1 }
 0x16c   : > { %v11261_v50 = vpop.f32.mrf.mxu0  ;;  %13031 = vst [vmem:[#allocation46_spill] sm:$0xff] %v11264_v11  ;;  %v10283_v11 = vld [vmem:[#allocation2 + $0x6c] sm:$0xff]   ;;  %v3747_v0 = vsel %vm633_vm3, %v3742_v19, %v3746_v26  ;;  %v3750_v19 = vor.u32 %v3748_v9, %v3746_v26 }
 0x16d   : > { %v9489_v51 = vpop.f32.mrf.mxu1  ;;  %9668 = vmatmul.mubr.msk.bf16.gmra.mxu1 %vm958_vm4, %v10279_v44 }
 0x16e   : > { %v9571_v32 = vpop.f32.mrf.mxu0  ;;  %9750 = vmatmul.mubr.msk.bf16.gmra.mxu0 %vm958_vm4, %v3723_v54  ;;  %v1562_v22 = vadd.f32 %v9489_v51, %v11042_v45  ;;  %9671 = vmatprep.mubr.msk.bf16.mxu1 %vm958_vm4, %v10281_v29  ;;  %v11284_v45 = vld [vmem:[%s12985_s1 + $0x10] sm:$0x3] }
 0x16f   : > { %9753 = vmatprep.mubr.msk.bf16.mxu0 %vm958_vm4, %v3731_v24  ;;  %v1553_v54 = vpop.f32.mrf.mxu1  ;;  %10152 = vmatprep.subr.msk.bf16.mxu0 %vm1079_vm2, %v11284_v45 }
 0x170   : > { %v2117_v56 = vpop.f32.mrf.mxu0  ;;  %v11277_v24 = vadd.f32 %v9571_v32, %v1562_v22  ;;  %v1554_v44 = vadd.f32 %v1553_v54, %v11049_v12  ;;  %v3754_v22 = vrot.slane %v3752_v55, 1  ;;  %v10292_v54 = vld [vmem:[#allocation2 + $0x94] sm:$0xff]  }
 0x171   : > { %v9490_v29 = vpop.f32.mrf.mxu1 }
 0x172   : > { %v9572_v30 = vpop.f32.mrf.mxu0  ;;  %13032 = vst [vmem:[#allocation47_spill] sm:$0xff] %v11277_v24  ;;  %v11290_v12 = vadd.f32 %v2117_v56, %v1554_v44  ;;  %v1565_v4 = vadd.f32 %v9490_v29, %v11054_v33  ;;  %v3758_v44 = vor.u32 %v3756_v63, %v3754_v22  ;;  %v3762_v33 = vrot.slane %v3760_v40, 1  ;;  %v10294_v29 = vld [vmem:[#allocation2 + $0x9c] sm:$0xff]  }
 0x173   : > { %v1556_v62 = vpop.f32.mrf.mxu1  ;;  %v3755_v26 = vsel %vm633_vm3, %v3750_v19, %v3754_v22  ;;  %v10287_v40 = vld [vmem:[#allocation2 + $0x7c] sm:$0xff]   ;;  %v10296_v22 = vld [vmem:[#allocation2 + $0xa4] sm:$0xff]  }
 0x174   : > { %v2120_v51 = vpop.f32.mrf.mxu0  ;;  %13033 = vst [vmem:[#allocation48_spill] sm:$0xff] %v11290_v12  ;;  %v11294_v24 = vadd.f32 %v9572_v30, %v1565_v4  ;;  %v1557_v8 = vadd.f32 %v1556_v62, %v11059_v61  ;;  %v3768_v4 = vshll.u32 %v10292_v54, 16  ;;  %v3772_v62 = vshrl.u32 %v10292_v54, 16 }
 0x175   : > { %v9493_v58 = vpop.f32.mrf.mxu1  ;;  %9672 = vmatmul.mubr.msk.bf16.gmra.mxu1 %vm958_vm4, %v10283_v11  ;;  %v3764_v11 = vshrl.u32 %v11269_v41, 16 }
 0x176   : > { %v9575_v32 = vpop.f32.mrf.mxu0  ;;  %9754 = vmatmul.mubr.msk.bf16.gmra.mxu0 %vm958_vm4, %v3739_v39  ;;  %v11299_v12 = vadd.f32 %v2120_v51, %v1557_v8  ;;  %v1578_v39 = vadd.f32 %v9493_v58, %v11064_v14  ;;  %9675 = vmatprep.mubr.msk.bf16.mxu1 %vm958_vm4, %v10285_v28  ;;  %v3763_v51 = vsel %vm633_vm3, %v3758_v44, %v3762_v33  ;;  %v3776_v58 = vshll.u32 %v10294_v29, 16  ;;  %v10289_v8 = vld [vmem:[#allocation2 + $0x84] sm:$0xff]  }
 0x177   : > { %9757 = vmatprep.mubr.msk.bf16.mxu0 %vm958_vm4, %v3747_v0  ;;  %v1569_v30 = vpop.f32.mrf.mxu1 }
 0x178   : > { %v2133_v56 = vpop.f32.mrf.mxu0  ;;  %v11303_v61 = vadd.f32 %v9575_v32, %v1578_v39  ;;  %v1570_v0 = vadd.f32 %v1569_v30, %v11071_v10  ;;  %v3770_v10 = vrot.slane %v3768_v4, 1  ;;  %v3766_v30 = vor.u32 %v3764_v11, %v3762_v33 }
 0x179   : > { %v9494_v63 = vpop.f32.mrf.mxu1 }
 0x17a   : > { %v9576_v55 = vpop.f32.mrf.mxu0  ;;  %v11309_v14 = vadd.f32 %v2133_v56, %v1570_v0  ;;  %v1581_v28 = vadd.f32 %v9494_v63, %v11076_v13  ;;  %v3774_v44 = vor.u32 %v3772_v62, %v3770_v10  ;;  %v3778_v13 = vrot.slane %v3776_v58, 1  ;;  %v10298_v0 = vld [vmem:[#allocation2 + $0xac] sm:$0xff]  }
 0x17b   : > { %v1572_v32 = vpop.f32.mrf.mxu1  ;;  %v3771_v11 = vsel %vm633_vm3, %v3766_v30, %v3770_v10  ;;  %v10291_v58 = vld [vmem:[#allocation2 + $0x8c] sm:$0xff]  }
 0x17c   : > { %v2136_v9 = vpop.f32.mrf.mxu0  ;;  %v11313_v19 = vadd.f32 %v9576_v55, %v1581_v28  ;;  %v1573_v41 = vadd.f32 %v1572_v32, %v11081_v18  ;;  %v3784_v28 = vshll.u32 %v10296_v22, 16  ;;  %v3788_v32 = vshrl.u32 %v10296_v22, 16 }
 0x17d   : > { %v9497_v54 = vpop.f32.mrf.mxu1  ;;  %9676 = vmatmul.mubr.msk.bf16.gmra.mxu1 %vm958_vm4, %v10287_v40  ;;  %v3780_v40 = vshrl.u32 %v10294_v29, 16 }
 0x17e   : > { %v9579_v39 = vpop.f32.mrf.mxu0  ;;  %9758 = vmatmul.mubr.msk.bf16.gmra.mxu0 %vm958_vm4, %v3755_v26  ;;  %v11318_v63 = vadd.f32 %v2136_v9, %v1573_v41  ;;  %v1594_v26 = vadd.f32 %v9497_v54, %v11086_v20  ;;  %9679 = vmatprep.mubr.msk.bf16.mxu1 %vm958_vm4, %v10289_v8  ;;  %v3779_v9 = vsel %vm633_vm3, %v3774_v44, %v3778_v13  ;;  %v3792_v41 = vshll.u32 %v10298_v0, 16  ;;  %v10293_v54 = vld [vmem:[#allocation2 + $0x94] sm:$0xff]  }
 0x17f   : > { %9761 = vmatprep.mubr.msk.bf16.mxu0 %vm958_vm4, %v3763_v51  ;;  %v1585_v55 = vpop.f32.mrf.mxu1  ;;  %v3782_v30 = vor.u32 %v3780_v40, %v3778_v13  ;;  %v3796_v40 = vshrl.u32 %v10298_v0, 16 }
 0x180   : > { %v2149_v56 = vpop.f32.mrf.mxu0  ;;  %13034 = vst [vmem:[#allocation49_spill] sm:$0xff] %v11318_v63  ;;  %v11322_v18 = vadd.f32 %v9579_v39, %v1594_v26  ;;  %v1586_v33 = vadd.f32 %v1585_v55, %v11093_v23  ;;  %v3786_v23 = vrot.slane %v3784_v28, 1  ;;  %v10300_v26 = vld [vmem:[#allocation2 + $0xb4] sm:$0xff]   ;;  %v10302_v55 = vld [vmem:[#allocation2 + $0xbc] sm:$0xff]  }
 0x181   : > { %v9498_v51 = vpop.f32.mrf.mxu1 }
 0x182   : > { %v9580_v4 = vpop.f32.mrf.mxu0  ;;  %v11327_v20 = vadd.f32 %v2149_v56, %v1586_v33  ;;  %v1597_v8 = vadd.f32 %v9498_v51, %v11098_v27  ;;  %v3790_v44 = vor.u32 %v3788_v32, %v3786_v23  ;;  %v3794_v27 = vrot.slane %v3792_v41, 1  ;;  %v10295_v32 = vld [vmem:[#allocation2 + $0x9c] sm:$0xff]  }
 0x183   : > { %v1588_v63 = vpop.f32.mrf.mxu1  ;;  %v3800_v51 = vshll.u32 %v10300_v26, 16  ;;  %v3804_v41 = vshrl.u32 %v10300_v26, 16 }
 0x184   : > { %v2152_v62 = vpop.f32.mrf.mxu0  ;;  %v11331_v10 = vadd.f32 %v9580_v4, %v1597_v8  ;;  %v1589_v29 = vadd.f32 %v1588_v63, %v11103_v34  ;;  %v3787_v63 = vsel %vm633_vm3, %v3782_v30, %v3786_v23  ;;  %v3808_v8 = vshll.u32 %v10302_v55, 16 }
 0x185   : > { %v9501_v22 = vpop.f32.mrf.mxu1  ;;  %9680 = vmatmul.mubr.msk.bf16.gmra.mxu1 %vm958_vm4, %v10291_v58  ;;  %v3798_v30 = vor.u32 %v3796_v40, %v3794_v27 }
 0x186   : > { %v9583_v39 = vpop.f32.mrf.mxu0  ;;  %9762 = vmatmul.mubr.msk.bf16.gmra.mxu0 %vm958_vm4, %v3771_v11  ;;  %v11336_v33 = vadd.f32 %v2152_v62, %v1589_v29  ;;  %v1610_v11 = vadd.f32 %v9501_v22, %v11108_v38  ;;  %9683 = vmatprep.mubr.msk.bf16.mxu1 %vm958_vm4, %v10293_v54  ;;  %v3795_v62 = vsel %vm633_vm3, %v3790_v44, %v3794_v27  ;;  %v10297_v29 = vld [vmem:[#allocation2 + $0xa4] sm:$0xff]  }
 0x187   : > { %9765 = vmatprep.mubr.msk.bf16.mxu0 %vm958_vm4, %v3779_v9  ;;  %v1601_v4 = vpop.f32.mrf.mxu1 }
 0x188   : > { %v2165_v56 = vpop.f32.mrf.mxu0  ;;  %v11340_v34 = vadd.f32 %v9583_v39, %v1610_v11  ;;  %v1602_v13 = vadd.f32 %v1601_v4, %v11115_v43  ;;  %v3802_v43 = vrot.slane %v3800_v51, 1  ;;  %v10304_v11 = vld [vmem:[#allocation2 + $0xc4] sm:$0xff]   ;;  %v10306_v4 = vld [vmem:[#allocation2 + $0xcc] sm:$0xff]  }
 0x189   : > { %v9502_v58 = vpop.f32.mrf.mxu1 }
 0x18a   : > { %v9584_v28 = vpop.f32.mrf.mxu0  ;;  %v11345_v38 = vadd.f32 %v2165_v56, %v1602_v13  ;;  %v1613_v54 = vadd.f32 %v9502_v58, %v11120_v52  ;;  %v3806_v44 = vor.u32 %v3804_v41, %v3802_v43  ;;  %v3810_v52 = vrot.slane %v3808_v8, 1  ;;  %v10299_v8 = vld [vmem:[#allocation2 + $0xac] sm:$0xff]  }
 0x18b   : > { %v1604_v22 = vpop.f32.mrf.mxu1  ;;  %v3816_v58 = vshll.u32 %v10304_v11, 16  ;;  %v3803_v40 = vsel %vm633_vm3, %v3798_v30, %v3802_v43 }
 0x18c   : > { %v2168_v9 = vpop.f32.mrf.mxu0  ;;  %v11349_v23 = vadd.f32 %v9584_v28, %v1613_v54  ;;  %v1605_v0 = vadd.f32 %v1604_v22, %v11125_v48  ;;  %v3820_v54 = vshrl.u32 %v10304_v11, 16  ;;  %v3824_v22 = vshll.u32 %v10306_v4, 16 }
 0x18d   : > { %v9505_v26 = vpop.f32.mrf.mxu1  ;;  %9684 = vmatmul.mubr.msk.bf16.gmra.mxu1 %vm958_vm4, %v10295_v32  ;;  %v3812_v32 = vshrl.u32 %v10302_v55, 16 }
 0x18e   : > { %v9587_v39 = vpop.f32.mrf.mxu0  ;;  %9766 = vmatmul.mubr.msk.bf16.gmra.mxu0 %vm958_vm4, %v3787_v63  ;;  %v11354_v13 = vadd.f32 %v2168_v9, %v1605_v0  ;;  %v1626_v63 = vadd.f32 %v9505_v26, %v11130_v21  ;;  %9687 = vmatprep.mubr.msk.bf16.mxu1 %vm958_vm4, %v10297_v29  ;;  %v3811_v9 = vsel %vm633_vm3, %v3806_v44, %v3810_v52  ;;  %v10301_v0 = vld [vmem:[#allocation2 + $0xb4] sm:$0xff]  }
 0x18f   : > { %9769 = vmatprep.mubr.msk.bf16.mxu0 %vm958_vm4, %v3795_v62  ;;  %v1617_v28 = vpop.f32.mrf.mxu1  ;;  %v3814_v30 = vor.u32 %v3812_v32, %v3810_v52 }
 0x190   : > { %v2181_v56 = vpop.f32.mrf.mxu0  ;;  %v11358_v48 = vadd.f32 %v9587_v39, %v1626_v63  ;;  %v1618_v27 = vadd.f32 %v1617_v28, %v11137_v5  ;;  %v3818_v5 = vrot.slane %v3816_v58, 1  ;;  %v10308_v63 = vld [vmem:[#allocation2 + $0xd4] sm:$0xff]   ;;  %v10310_v28 = vld [vmem:[#allocation2 + $0xdc] sm:$0xff]  }
 0x191   : > { %v9506_v62 = vpop.f32.mrf.mxu1 }
 0x192   : > { %v9588_v51 = vpop.f32.mrf.mxu0  ;;  %v11363_v21 = vadd.f32 %v2181_v56, %v1618_v27  ;;  %v1629_v29 = vadd.f32 %v9506_v62, %v11142_v37  ;;  %v3822_v44 = vor.u32 %v3820_v54, %v3818_v5  ;;  %v3826_v37 = vrot.slane %v3824_v22, 1  ;;  %v10303_v22 = vld [vmem:[#allocation2 + $0xbc] sm:$0xff]  }
 0x193   : > { %v1620_v26 = vpop.f32.mrf.mxu1  ;;  %v3832_v62 = vshll.u32 %v10308_v63, 16  ;;  %v3819_v32 = vsel %vm633_vm3, %v3814_v30, %v3818_v5 }
 0x194   : > { %v2184_v41 = vpop.f32.mrf.mxu0  ;;  %v11367_v43 = vadd.f32 %v9588_v51, %v1629_v29  ;;  %v1621_v55 = vadd.f32 %v1620_v26, %v11147_v31  ;;  %v3836_v29 = vshrl.u32 %v10308_v63, 16  ;;  %v3840_v26 = vshll.u32 %v10310_v28, 16 }
 0x195   : > { %v9509_v11 = vpop.f32.mrf.mxu1  ;;  %9688 = vmatmul.mubr.msk.bf16.gmra.mxu1 %vm958_vm4, %v10299_v8  ;;  %v3828_v8 = vshrl.u32 %v10306_v4, 16 }
 0x196   : > { %v9591_v39 = vpop.f32.mrf.mxu0  ;;  %9770 = vmatmul.mubr.msk.bf16.gmra.mxu0 %vm958_vm4, %v3803_v40  ;;  %v11372_v27 = vadd.f32 %v2184_v41, %v1621_v55  ;;  %v1642_v40 = vadd.f32 %v9509_v11, %v11152_v47  ;;  %9691 = vmatprep.mubr.msk.bf16.mxu1 %vm958_vm4, %v10301_v0  ;;  %v3827_v41 = vsel %vm633_vm3, %v3822_v44, %v3826_v37  ;;  %v10305_v55 = vld [vmem:[#allocation2 + $0xc4] sm:$0xff]  }
 0x197   : > { %9773 = vmatprep.mubr.msk.bf16.mxu0 %vm958_vm4, %v3811_v9  ;;  %v1633_v51 = vpop.f32.mrf.mxu1  ;;  %v3830_v30 = vor.u32 %v3828_v8, %v3826_v37 }
 0x198   : > { %v2197_v56 = vpop.f32.mrf.mxu0  ;;  %v11376_v31 = vadd.f32 %v9591_v39, %v1642_v40  ;;  %v1634_v52 = vadd.f32 %v1633_v51, %v11159_v49  ;;  %v3834_v49 = vrot.slane %v3832_v62, 1  ;;  %v10312_v40 = vld [vmem:[#allocation2 + $0xe4] sm:$0xff]   ;;  %v10314_v51 = vld [vmem:[#allocation2 + $0xec] sm:$0xff]  }
 0x199   : > { %v9510_v9 = vpop.f32.mrf.mxu1 }
 0x19a   : > { %v9592_v58 = vpop.f32.mrf.mxu0  ;;  %v11381_v47 = vadd.f32 %v2197_v56, %v1634_v52  ;;  %v1645_v0 = vadd.f32 %v9510_v9, %v11164_v3  ;;  %v3838_v44 = vor.u32 %v3836_v29, %v3834_v49  ;;  %v3842_v3 = vrot.slane %v3840_v26, 1  ;;  %v10307_v26 = vld [vmem:[#allocation2 + $0xcc] sm:$0xff]  }
 0x19b   : > { %v1636_v11 = vpop.f32.mrf.mxu1  ;;  %v3848_v9 = vshll.u32 %v10312_v40, 16  ;;  %v3835_v8 = vsel %vm633_vm3, %v3830_v30, %v3834_v49 }
 0x19c   : > { %v2200_v54 = vpop.f32.mrf.mxu0  ;;  %v11385_v5 = vadd.f32 %v9592_v58, %v1645_v0  ;;  %v1637_v4 = vadd.f32 %v1636_v11, %v11169_v6  ;;  %v3852_v0 = vshrl.u32 %v10312_v40, 16  ;;  %v3856_v11 = vshll.u32 %v10314_v51, 16 }
 0x19d   : > { %v9513_v63 = vpop.f32.mrf.mxu1  ;;  %9692 = vmatmul.mubr.msk.bf16.gmra.mxu1 %vm958_vm4, %v10303_v22  ;;  %v3844_v22 = vshrl.u32 %v10310_v28, 16 }
 0x19e   : > { %v9595_v39 = vpop.f32.mrf.mxu0  ;;  %9774 = vmatmul.mubr.msk.bf16.gmra.mxu0 %vm958_vm4, %v3819_v32  ;;  %v11390_v52 = vadd.f32 %v2200_v54, %v1637_v4  ;;  %v1658_v32 = vadd.f32 %v9513_v63, %v11176_v1  ;;  %9695 = vmatprep.mubr.msk.bf16.mxu1 %vm958_vm4, %v10305_v55  ;;  %v3843_v54 = vsel %vm633_vm3, %v3838_v44, %v3842_v3  ;;  %v10309_v4 = vld [vmem:[#allocation2 + $0xd4] sm:$0xff]  }
 0x19f   : > { %9777 = vmatprep.mubr.msk.bf16.mxu0 %vm958_vm4, %v3827_v41  ;;  %v1649_v58 = vpop.f32.mrf.mxu1  ;;  %v3846_v30 = vor.u32 %v3844_v22, %v3842_v3 }
 0x1a0   : > { %v2213_v56 = vpop.f32.mrf.mxu0  ;;  %v11394_v6 = vadd.f32 %v9595_v39, %v1658_v32  ;;  %v1650_v37 = vadd.f32 %v1649_v58, %v11185_v16  ;;  %v3850_v16 = vrot.slane %v3848_v9, 1  ;;  %v10316_v32 = vld [vmem:[#allocation2 + $0xf4] sm:$0xff]   ;;  %v10318_v58 = vld [vmem:[#allocation2 + $0xfc] sm:$0xff]  }
 0x1a1   : > { %v9514_v41 = vpop.f32.mrf.mxu1 }
 0x1a2   : > { %v9596_v62 = vpop.f32.mrf.mxu0  ;;  %v11399_v1 = vadd.f32 %v2213_v56, %v1650_v37  ;;  %v1661_v55 = vadd.f32 %v9514_v41, %v11190_v2  ;;  %v3854_v44 = vor.u32 %v3852_v0, %v3850_v16  ;;  %v3858_v2 = vrot.slane %v3856_v11, 1  ;;  %v10311_v11 = vld [vmem:[#allocation2 + $0xdc] sm:$0xff]  }
 0x1a3   : > { %v1652_v63 = vpop.f32.mrf.mxu1  ;;  %v3864_v41 = vshll.u32 %v10316_v32, 16  ;;  %v3851_v22 = vsel %vm633_vm3, %v3846_v30, %v3850_v16 }
 0x1a4   : > { %v2216_v29 = vpop.f32.mrf.mxu0  ;;  %v11403_v49 = vadd.f32 %v9596_v62, %v1661_v55  ;;  %v1653_v28 = vadd.f32 %v1652_v63, %v11195_v42  ;;  %v3868_v55 = vshrl.u32 %v10316_v32, 16  ;;  %v3872_v63 = vshll.u32 %v10318_v58, 16 }
 0x1a5   : > { %v9517_v40 = vpop.f32.mrf.mxu1  ;;  %9696 = vmatmul.mubr.msk.bf16.gmra.mxu1 %vm958_vm4, %v10307_v26  ;;  %v3860_v26 = vshrl.u32 %v10314_v51, 16 }
 0x1a6   : > { %v9599_v39 = vpop.f32.mrf.mxu0  ;;  %9778 = vmatmul.mubr.msk.bf16.gmra.mxu0 %vm958_vm4, %v3835_v8  ;;  %v11408_v37 = vadd.f32 %v2216_v29, %v1653_v28  ;;  %v1674_v8 = vadd.f32 %v9517_v40, %v11200_v46  ;;  %9699 = vmatprep.mubr.msk.bf16.mxu1 %vm958_vm4, %v10309_v4  ;;  %v3859_v29 = vsel %vm633_vm3, %v3854_v44, %v3858_v2  ;;  %v10313_v28 = vld [vmem:[#allocation2 + $0xe4] sm:$0xff]  }
 0x1a7   : > { %9781 = vmatprep.mubr.msk.bf16.mxu0 %vm958_vm4, %v3843_v54  ;;  %v1665_v62 = vpop.f32.mrf.mxu1  ;;  %v3862_v30 = vor.u32 %v3860_v26, %v3858_v2 }
 0x1a8   : > { %v2229_v56 = vpop.f32.mrf.mxu0  ;;  %v11412_v42 = vadd.f32 %v9599_v39, %v1674_v8  ;;  %v1666_v3 = vadd.f32 %v1665_v62, %v11207_v17  ;;  %v3866_v17 = vrot.slane %v3864_v41, 1  ;;  %v10320_v8 = vld [vmem:[#allocation2 + $0x104] sm:$0xff]   ;;  %v10322_v62 = vld [vmem:[#allocation2 + $0x10c] sm:$0xff]  }
 0x1a9   : > { %v9518_v54 = vpop.f32.mrf.mxu1 }
 0x1aa   : > { %v9600_v9 = vpop.f32.mrf.mxu0  ;;  %v11417_v46 = vadd.f32 %v2229_v56, %v1666_v3  ;;  %v1677_v4 = vadd.f32 %v9518_v54, %v11212_v57  ;;  %v3870_v44 = vor.u32 %v3868_v55, %v3866_v17  ;;  %v3874_v57 = vrot.slane %v3872_v63, 1  ;;  %v10315_v63 = vld [vmem:[#allocation2 + $0xec] sm:$0xff]  }
 0x1ab   : > { %v1668_v40 = vpop.f32.mrf.mxu1  ;;  %v3880_v54 = vshll.u32 %v10320_v8, 16  ;;  %v3867_v26 = vsel %vm633_vm3, %v3862_v30, %v3866_v17 }
 0x1ac   : > { %v2232_v0 = vpop.f32.mrf.mxu0  ;;  %v11421_v16 = vadd.f32 %v9600_v9, %v1677_v4  ;;  %v1669_v51 = vadd.f32 %v1668_v40, %v11217_v35  ;;  %v3884_v4 = vshrl.u32 %v10320_v8, 16  ;;  %v3888_v40 = vshll.u32 %v10322_v62, 16 }
 0x1ad   : > { %v9521_v32 = vpop.f32.mrf.mxu1  ;;  %9700 = vmatmul.mubr.msk.bf16.gmra.mxu1 %vm958_vm4, %v10311_v11  ;;  %v3876_v11 = vshrl.u32 %v10318_v58, 16 }
 0x1ae   : > { %v9603_v39 = vpop.f32.mrf.mxu0  ;;  %9782 = vmatmul.mubr.msk.bf16.gmra.mxu0 %vm958_vm4, %v3851_v22  ;;  %v11426_v3 = vadd.f32 %v2232_v0, %v1669_v51  ;;  %v1690_v22 = vadd.f32 %v9521_v32, %v11222_v7  ;;  %9703 = vmatprep.mubr.msk.bf16.mxu1 %vm958_vm4, %v10313_v28  ;;  %v3875_v0 = vsel %vm633_vm3, %v3870_v44, %v3874_v57  ;;  %v10317_v51 = vld [vmem:[#allocation2 + $0xf4] sm:$0xff]  }
 0x1af   : > { %9785 = vmatprep.mubr.msk.bf16.mxu0 %vm958_vm4, %v3859_v29  ;;  %v1681_v9 = vpop.f32.mrf.mxu1  ;;  %v3878_v30 = vor.u32 %v3876_v11, %v3874_v57 }
 0x1b0   : > { %v2245_v56 = vpop.f32.mrf.mxu0  ;;  %v11430_v35 = vadd.f32 %v9603_v39, %v1690_v22  ;;  %v1682_v2 = vadd.f32 %v1681_v9, %v11229_v25  ;;  %v3882_v25 = vrot.slane %v3880_v54, 1  ;;  %v10324_v22 = vld [vmem:[#allocation2 + $0x114] sm:$0xff]   ;;  %v10326_v9 = vld [vmem:[#allocation2 + $0x11c] sm:$0xff]  }
 0x1b1   : > { %v9522_v29 = vpop.f32.mrf.mxu1 }
 0x1b2   : > { %v9604_v41 = vpop.f32.mrf.mxu0  ;;  %v11435_v7 = vadd.f32 %v2245_v56, %v1682_v2  ;;  %v1693_v28 = vadd.f32 %v9522_v29, %v11234_v36  ;;  %v3886_v44 = vor.u32 %v3884_v4, %v3882_v25  ;;  %v3890_v36 = vrot.slane %v3888_v40, 1  ;;  %v10319_v40 = vld [vmem:[#allocation2 + $0xfc] sm:$0xff]  }
 0x1b3   : > { %v1684_v32 = vpop.f32.mrf.mxu1  ;;  %v3896_v29 = vshll.u32 %v10324_v22, 16  ;;  %v3883_v11 = vsel %vm633_vm3, %v3878_v30, %v3882_v25 }
 0x1b4   : > { %v2248_v55 = vpop.f32.mrf.mxu0  ;;  %v11439_v17 = vadd.f32 %v9604_v41, %v1693_v28  ;;  %v1685_v58 = vadd.f32 %v1684_v32, %v11239_v60  ;;  %v3900_v28 = vshrl.u32 %v10324_v22, 16  ;;  %v3904_v32 = vshll.u32 %v10326_v9, 16 }
 0x1b5   : > { %v9525_v8 = vpop.f32.mrf.mxu1  ;;  %9704 = vmatmul.mubr.msk.bf16.gmra.mxu1 %vm958_vm4, %v10315_v63  ;;  %v3892_v63 = vshrl.u32 %v10322_v62, 16 }
 0x1b6   : > { %v9607_v39 = vpop.f32.mrf.mxu0  ;;  %9786 = vmatmul.mubr.msk.bf16.gmra.mxu0 %vm958_vm4, %v3867_v26  ;;  %v11444_v2 = vadd.f32 %v2248_v55, %v1685_v58  ;;  %v1706_v26 = vadd.f32 %v9525_v8, %v11244_v53  ;;  %9707 = vmatprep.mubr.msk.bf16.mxu1 %vm958_vm4, %v10317_v51  ;;  %v3891_v55 = vsel %vm633_vm3, %v3886_v44, %v3890_v36  ;;  %v10321_v58 = vld [vmem:[#allocation2 + $0x104] sm:$0xff]  }
 0x1b7   : > { %9789 = vmatprep.mubr.msk.bf16.mxu0 %vm958_vm4, %v3875_v0  ;;  %v1697_v41 = vpop.f32.mrf.mxu1  ;;  %v3894_v30 = vor.u32 %v3892_v63, %v3890_v36  ;;  %v13040_v36 = vld [vmem:[#allocation8_spill] sm:$0xff] }
 0x1b8   : > { %v2261_v56 = vpop.f32.mrf.mxu0  ;;  %v11448_v60 = vadd.f32 %v9607_v39, %v1706_v26  ;;  %v1698_v57 = vadd.f32 %v1697_v41, %v11251_v59  ;;  %v3898_v59 = vrot.slane %v3896_v29, 1  ;;  %v10328_v26 = vld [vmem:[#allocation2 + $0x124] sm:$0xff]   ;;  %v10330_v41 = vld [vmem:[#allocation2 + $0x12c] sm:$0xff]  }
 0x1b9   : > { %v9526_v0 = vpop.f32.mrf.mxu1 }
 0x1ba   : > { %v9608_v54 = vpop.f32.mrf.mxu0  ;;  %v11453_v53 = vadd.f32 %v2261_v56, %v1698_v57  ;;  %v1709_v51 = vadd.f32 %v9526_v0, %v11256_v15  ;;  %v3902_v44 = vor.u32 %v3900_v28, %v3898_v59  ;;  %v3906_v15 = vrot.slane %v3904_v32, 1  ;;  %v13038_v0 = vld [vmem:[#allocation7_spill] sm:$0xff] }
 0x1bb   : > { %v1700_v8 = vpop.f32.mrf.mxu1  ;;  %v10323_v32 = vld [vmem:[#allocation2 + $0x10c] sm:$0xff]  }
 0x1bc   : > { %v2264_v4 = vpop.f32.mrf.mxu0  ;;  %13035 = vst [vmem:[#allocation50_spill] sm:$0xff] %v11453_v53  ;;  %v11457_v25 = vadd.f32 %v9608_v54, %v1709_v51  ;;  %v1701_v62 = vadd.f32 %v1700_v8, %v11261_v50  ;;  %v3912_v51 = vshll.u32 %v10328_v26, 16 }
 0x1bd   : > { %v9529_v22 = vpop.f32.mrf.mxu1  ;;  %9708 = vmatmul.mubr.msk.bf16.gmra.mxu1 %vm958_vm4, %v10319_v40  ;;  %v3908_v40 = vshrl.u32 %v10326_v9, 16  ;;  %v13044_v9 = vld [vmem:[#allocation10_spill] sm:$0xff] }
 0x1be   : > { %v9611_v39 = vpop.f32.mrf.mxu0  ;;  %9790 = vmatmul.mubr.msk.bf16.gmra.mxu0 %vm958_vm4, %v3883_v11  ;;  %13036 = vst [vmem:[#allocation51_spill] sm:$0xff] %v11457_v25  ;;  %v11462_v57 = vadd.f32 %v2264_v4, %v1701_v62  ;;  %v1722_v11 = vadd.f32 %v9529_v22, %v13038_v0  ;;  %9711 = vmatprep.mubr.msk.bf16.mxu1 %vm958_vm4, %v10321_v58  ;;  %v3916_v62 = vshrl.u32 %v10328_v26, 16  ;;  %v13042_v58 = vld [vmem:[#allocation9_spill] sm:$0xff]  ;;  %v10325_v25 = vld [vmem:[#allocation2 + $0x114] sm:$0xff]  }
 0x1bf   : > { %9793 = vmatprep.mubr.msk.bf16.mxu0 %vm958_vm4, %v3891_v55  ;;  %v1713_v54 = vpop.f32.mrf.mxu1  ;;  %v3899_v55 = vsel %vm633_vm3, %v3894_v30, %v3898_v59  ;;  %v3907_v4 = vsel %vm633_vm3, %v3902_v44, %v3906_v15 }
 0x1c0   : > { %v2277_v56 = vpop.f32.mrf.mxu0  ;;  %13037 = vst [vmem:[#allocation52_spill] sm:$0xff] %v11462_v57  ;;  %v11466_v50 = vadd.f32 %v9611_v39, %v1722_v11  ;;  %v1714_v63 = vadd.f32 %v1713_v54, %v13040_v36  ;;  %v3920_v57 = vshll.u32 %v10330_v41, 16  ;;  %v3914_v11 = vrot.slane %v3912_v51, 1  ;;  %v10332_v54 = vld [vmem:[#allocation2 + $0x134] sm:$0xff]  }
 0x1c1   : > { %v9530_v8 = vpop.f32.mrf.mxu1  ;;  %v3910_v36 = vor.u32 %v3908_v40, %v3906_v15  ;;  %v13048_v15 = vld [vmem:[#allocation12_spill] sm:$0xff] }
 0x1c2   : > { %v9612_v29 = vpop.f32.mrf.mxu0  ;;  %13039 = vst [vmem:[#allocation7_spill] sm:$0xff] %v11466_v50  ;;  %v11471_v22 = vadd.f32 %v2277_v56, %v1714_v63  ;;  %v1725_v0 = vadd.f32 %v9530_v8, %v13042_v58  ;;  %v3918_v44 = vor.u32 %v3916_v62, %v3914_v11  ;;  %v3922_v63 = vrot.slane %v3920_v57, 1  ;;  %v10334_v8 = vld [vmem:[#allocation2 + $0x13c] sm:$0xff]  }
 0x1c3   : > { %v1716_v53 = vpop.f32.mrf.mxu1  ;;  %v10327_v57 = vld [vmem:[#allocation2 + $0x11c] sm:$0xff]  }
 0x1c4   : > { %v2280_v28 = vpop.f32.mrf.mxu0  ;;  %13041 = vst [vmem:[#allocation8_spill] sm:$0xff] %v11471_v22  ;;  %v11475_v59 = vadd.f32 %v9612_v29, %v1725_v0  ;;  %v1717_v30 = vadd.f32 %v1716_v53, %v13044_v9  ;;  %v13046_v22 = vld [vmem:[#allocation11_spill] sm:$0xff]  ;;  %v3928_v0 = vshll.u32 %v10332_v54, 16 }
 0x1c5   : > { %v9533_v26 = vpop.f32.mrf.mxu1  ;;  %9712 = vmatmul.mubr.msk.bf16.gmra.mxu1 %vm958_vm4, %v10323_v32  ;;  %v3924_v32 = vshrl.u32 %v10330_v41, 16  ;;  %v13052_v41 = vld [vmem:[#allocation14_spill] sm:$0xff] }
 0x1c6   : > { %v9615_v39 = vpop.f32.mrf.mxu0  ;;  %9794 = vmatmul.mubr.msk.bf16.gmra.mxu0 %vm958_vm4, %v3899_v55  ;;  %13043 = vst [vmem:[#allocation9_spill] sm:$0xff] %v11475_v59  ;;  %v11480_v58 = vadd.f32 %v2280_v28, %v1717_v30  ;;  %v1738_v55 = vadd.f32 %v9533_v26, %v13046_v22  ;;  %9715 = vmatprep.mubr.msk.bf16.mxu1 %vm958_vm4, %v10325_v25  ;;  %v3932_v30 = vshrl.u32 %v10332_v54, 16  ;;  %v13050_v25 = vld [vmem:[#allocation13_spill] sm:$0xff] }
 0x1c7   : > { %9797 = vmatprep.mubr.msk.bf16.mxu0 %vm958_vm4, %v3907_v4  ;;  %v1729_v29 = vpop.f32.mrf.mxu1  ;;  %v3915_v4 = vsel %vm633_vm3, %v3910_v36, %v3914_v11  ;;  %v3923_v28 = vsel %vm633_vm3, %v3918_v44, %v3922_v63  ;;  %v10329_v59 = vld [vmem:[#allocation2 + $0x124] sm:$0xff]  }
 0x1c8   : > { %v2293_v56 = vpop.f32.mrf.mxu0  ;;  %13045 = vst [vmem:[#allocation10_spill] sm:$0xff] %v11480_v58  ;;  %v11484_v53 = vadd.f32 %v9615_v39, %v1738_v55  ;;  %v1730_v40 = vadd.f32 %v1729_v29, %v13048_v15  ;;  %v3936_v58 = vshll.u32 %v10334_v8, 16  ;;  %v3930_v55 = vrot.slane %v3928_v0, 1  ;;  %v10336_v29 = vld [vmem:[#allocation2 + $0x144] sm:$0xff]  }
 0x1c9   : > { %v9534_v9 = vpop.f32.mrf.mxu1  ;;  %v3926_v15 = vor.u32 %v3924_v32, %v3922_v63  ;;  %v13055_v32 = vld [vmem:[#allocation16_spill] sm:$0xff] }
 0x1ca   : > { %v9616_v51 = vpop.f32.mrf.mxu0  ;;  %13047 = vst [vmem:[#allocation11_spill] sm:$0xff] %v11484_v53  ;;  %v11489_v22 = vadd.f32 %v2293_v56, %v1730_v40  ;;  %v1741_v26 = vadd.f32 %v9534_v9, %v13050_v25  ;;  %v3934_v44 = vor.u32 %v3932_v30, %v3930_v55  ;;  %v3938_v40 = vrot.slane %v3936_v58, 1  ;;  %v10338_v9 = vld [vmem:[#allocation2 + $0x14c] sm:$0xff]  }
 0x1cb   : > { %v1732_v50 = vpop.f32.mrf.mxu1  ;;  %v10331_v58 = vld [vmem:[#allocation2 + $0x12c] sm:$0xff]  }
 0x1cc   : > { %v2296_v62 = vpop.f32.mrf.mxu0  ;;  %13049 = vst [vmem:[#allocation12_spill] sm:$0xff] %v11489_v22  ;;  %v11493_v11 = vadd.f32 %v9616_v51, %v1741_v26  ;;  %v1733_v36 = vadd.f32 %v1732_v50, %v13052_v41  ;;  %v13054_v22 = vld [vmem:[#allocation15_spill] sm:$0xff]  ;;  %v3940_v26 = vshrl.u32 %v10334_v8, 16  ;;  %v3944_v50 = vshll.u32 %v10336_v29, 16 }
 0x1cd   : > { %v9537_v54 = vpop.f32.mrf.mxu1  ;;  %9716 = vmatmul.mubr.msk.bf16.gmra.mxu1 %vm958_vm4, %v10327_v57  ;;  %v3931_v57 = vsel %vm633_vm3, %v3926_v15, %v3930_v55  ;;  %v13059_v55 = vld [vmem:[#allocation18_spill] sm:$0xff] }
 0x1ce   : > { %v9619_v39 = vpop.f32.mrf.mxu0  ;;  %9798 = vmatmul.mubr.msk.bf16.gmra.mxu0 %vm958_vm4, %v3915_v4  ;;  %13051 = vst [vmem:[#allocation13_spill] sm:$0xff] %v11493_v11  ;;  %v11498_v25 = vadd.f32 %v2296_v62, %v1733_v36  ;;  %v1754_v4 = vadd.f32 %v9537_v54, %v13054_v22  ;;  %9719 = vmatprep.mubr.msk.bf16.mxu1 %vm958_vm4, %v10329_v59  ;;  %v3948_v36 = vshrl.u32 %v10336_v29, 16  ;;  %v13057_v59 = vld [vmem:[#allocation17_spill] sm:$0xff]  ;;  %v10333_v11 = vld [vmem:[#allocation2 + $0x134] sm:$0xff]  }
 0x1cf   : > { %9801 = vmatprep.mubr.msk.bf16.mxu0 %vm958_vm4, %v3923_v28  ;;  %v1745_v51 = vpop.f32.mrf.mxu1  ;;  %v3939_v62 = vsel %vm633_vm3, %v3934_v44, %v3938_v40  ;;  %v10340_v44 = vld [vmem:[#allocation2 + $0x154] ss:$0 sps:$4 sm:$0x11]  }
 0x1d0   : > { %v2309_v56 = vpop.f32.mrf.mxu0  ;;  %13053 = vst [vmem:[#allocation14_spill] sm:$0xff] %v11498_v25  ;;  %v11502_v63 = vadd.f32 %v9619_v39, %v1754_v4  ;;  %v1746_v28 = vadd.f32 %v1745_v51, %v13055_v32  ;;  %v3952_v25 = vshll.u32 %v10338_v9, 16  ;;  %v3942_v39 = vor.u32 %v3940_v26, %v3938_v40 }
 0x1d1   : > { %v9538_v41 = vpop.f32.mrf.mxu1  ;;  %v3946_v4 = vrot.slane %v3944_v50, 1 }
 0x1d2   : > { %v9620_v0 = vpop.f32.mrf.mxu0  ;;  %v11507_v22 = vadd.f32 %v2309_v56, %v1746_v28  ;;  %v1757_v54 = vadd.f32 %v9538_v41, %v13057_v59  ;;  %v3954_v28 = vrot.slane %v3952_v25, 1  ;;  %v13061_v59 = vld [vmem:[#allocation19_spill] sm:$0xff]  ;;  %v10335_v25 = vld [vmem:[#allocation2 + $0x13c] sm:$0xff]  }
 0x1d3   : > { %v1748_v8 = vpop.f32.mrf.mxu1  ;;  %v3950_v32 = vor.u32 %v3948_v36, %v3946_v4  ;;  %v3947_v26 = vsel %vm633_vm3, %v3942_v39, %v3946_v4 }
 0x1d4   : > { %v2312_v30 = vpop.f32.mrf.mxu0  ;;  %13056 = vst [vmem:[#allocation15_spill] sm:$0xff] %v11507_v22  ;;  %v11511_v51 = vadd.f32 %v9620_v0, %v1757_v54  ;;  %v1749_v15 = vadd.f32 %v1748_v8, %v13059_v55  ;;  %v3956_v54 = vshrl.u32 %v10338_v9, 16  ;;  %v3960_v8 = vshll.u32 %v10340_v44, 16  ;;  %v13064_v9 = vld [vmem:[#allocation22_spill] sm:$0xff] }
 0x1d5   : > { %v9541_v29 = vpop.f32.mrf.mxu1  ;;  %9720 = vmatmul.mubr.msk.bf16.gmra.mxu1 %vm958_vm4, %v10331_v58  ;;  %v4520_v58 = vld [vmem:[#allocation2 + $0x14] sm:$0xe] }
 0x1d6   : > { %v9623_v53 = vpop.f32.mrf.mxu0  ;;  %9802 = vmatmul.mubr.msk.bf16.gmra.mxu0 %vm958_vm4, %v3931_v57  ;;  %13058 = vst [vmem:[#allocation16_spill] sm:$0xff] %v11511_v51  ;;  %v11516_v41 = vadd.f32 %v2312_v30, %v1749_v15  ;;  %v1770_v22 = vadd.f32 %v9541_v29, %v13061_v59  ;;  %9723 = vmatprep.mubr.msk.bf16.mxu1 %vm958_vm4, %v10333_v11  ;;  %v13062_v57 = vld [vmem:[#allocation20_spill] sm:$0xff]  ;;  %v13063_v29 = vld [vmem:[#allocation21_spill] sm:$0xff] }
 0x1d7   : > { %9805 = vmatprep.mubr.msk.bf16.mxu0 %vm958_vm4, %v3939_v62  ;;  %v1761_v40 = vpop.f32.mrf.mxu1  ;;  %v3955_v30 = vsel %vm633_vm3, %v3950_v32, %v3954_v28  ;;  %v10337_v59 = vld [vmem:[#allocation2 + $0x144] sm:$0xff]   ;;  %v3958_v44 = vor.u32 %v3956_v54, %v3954_v28  ;;  %v13066_v28 = vld [vmem:[#allocation24_spill] sm:$0xff] }
 0x1d8   : > { %v2325_v56 = vpop.f32.mrf.mxu0  ;;  %13060 = vst [vmem:[#allocation17_spill] sm:$0xff] %v11516_v41  ;;  %v11521_v50 = vadd.f32 %v9623_v53, %v1770_v22  ;;  %v1762_v62 = vadd.f32 %v1761_v40, %v13062_v57  ;;  %v10445_v53 = vld [vmem:[#allocation2 + $0x18] sm:$0xf]  ;;  %v3962_v40 = vrot.slane %v3960_v8, 1 }
 0x1d9   : > { %v9542_v55 = vpop.f32.mrf.mxu1  ;;  %v8759_v22 = vcombine.low %v4520_v58, %v10445_v53 }
 0x1da   : > { %v9624_v0 = vpop.f32.mrf.mxu0  ;;  %v11525_v15 = vadd.f32 %v2325_v56, %v1762_v62  ;;  %v1773_v11 = vadd.f32 %v9542_v55, %v13063_v29  ;;  %v13065_v62 = vld [vmem:[#allocation23_spill] sm:$0xff]  ;;  %v10446_v29 = vld [vmem:[#allocation2 + $0x1c] sm:$0xff]   ;;  %v3963_v8 = vsel %vm633_vm3, %v3958_v44, %v3962_v40 }
 0x1db   : > { %v1764_v41 = vpop.f32.mrf.mxu1 }
 0x1dc   : > { %v2328_v36 = vpop.f32.mrf.mxu0  ;;  %v11529_v39 = vadd.f32 %v9624_v0, %v1773_v11  ;;  %v1765_v4 = vadd.f32 %v1764_v41, %v13064_v9  ;;  %v4526_v0 = vrot.slane %v8759_v22, 1  ;;  %v4527_v11 = vrot.slane %v10446_v29, 1  ;;  %v13072_v29 = vld [vmem:[#allocation27_spill] sm:$0xff] }
 0x1dd   : > { %v9545_v32 = vpop.f32.mrf.mxu1  ;;  %9724 = vmatmul.mubr.msk.bf16.gmra.mxu1 %vm958_vm4, %v10335_v25 }
 0x1de   : > { %v9627_v51 = vpop.f32.mrf.mxu0  ;;  %9806 = vmatmul.mubr.msk.bf16.gmra.mxu0 %vm958_vm4, %v3947_v26  ;;  %v11534_v57 = vadd.f32 %v2328_v36, %v1765_v4  ;;  %v1786_v55 = vadd.f32 %v9545_v32, %v13065_v62  ;;  %9727 = vmatprep.mubr.msk.bf16.mxu1 %vm958_vm4, %v10337_v59  ;;  %v10339_v36 = vld [vmem:[#allocation2 + $0x14c] sm:$0xff]   ;;  %v13068_v4 = vld [vmem:[#allocation25_spill] sm:$0xff]  ;;  %v4528_v22 = vsel %vm1878_vm5, %v4526_v0, %v4527_v11 }
 0x1df   : > { %9809 = vmatprep.mubr.msk.bf16.mxu0 %vm958_vm4, %v3955_v30  ;;  %v1777_v26 = vpop.f32.mrf.mxu1  ;;  %v10342_v30 = vld [vmem:[#allocation2 + $0x28] sm:$0xff]  }
 0x1e0   : > { %v2341_v56 = vpop.f32.mrf.mxu0  ;;  %v11538_v41 = vadd.f32 %v9627_v51, %v1786_v55  ;;  %v1778_v54 = vadd.f32 %v1777_v26, %v13066_v28  ;;  %v13070_v55 = vld [vmem:[#allocation26_spill] sm:$0xff] }
 0x1e1   : > { %v9546_v25 = vpop.f32.mrf.mxu1 }
 0x1e2   : > { %v9628_v58 = vpop.f32.mrf.mxu0  ;;  %v11542_v9 = vadd.f32 %v2341_v56, %v1778_v54  ;;  %v1789_v32 = vadd.f32 %v9546_v25, %v13068_v4  ;;  %v10447_v54 = vld [vmem:[#allocation2 + $0x24] sm:$0xff]   ;;  %v10448_v4 = vld [vmem:[#allocation2 + $0x2c] sm:$0xff]  }
 0x1e3   : > { %v1780_v59 = vpop.f32.mrf.mxu1 }
 0x1e4   : > { %v2344_v53 = vpop.f32.mrf.mxu0  ;;  %13067 = vst [vmem:[#allocation18_spill] sm:$0xff] %v11542_v9  ;;  %v11547_v51 = vadd.f32 %v9628_v58, %v1789_v32  ;;  %v1781_v26 = vadd.f32 %v1780_v59, %v13070_v55  ;;  %v10343_v58 = vld [vmem:[#allocation2 + $0x30] sm:$0xff]   ;;  %v4531_v32 = vrot.slane %v10448_v4, 1 }
 0x1e5   : > { %v9549_v44 = vpop.f32.mrf.mxu1  ;;  %9728 = vmatmul.mubr.msk.bf16.gmra.mxu1 %vm958_vm4, %v10339_v36 }
 0x1e6   : > { %v9631_v62 = vpop.f32.mrf.mxu0  ;;  %9810 = vmatmul.mubr.msk.bf16.gmra.mxu0 %vm958_vm4, %v3963_v8  ;;  %13069 = vst [vmem:[#allocation19_spill] sm:$0xff] %v11547_v51  ;;  %v11552_v56 = vadd.f32 %v2344_v53, %v1781_v26  ;;  %v1802_v28 = vadd.f32 %v9549_v44, %v13072_v29  ;;  %9815 = vmatprep.mubr.msk.bf16.mxu1 %vm958_vm4, %v4528_v22  ;;  %v4529_v8 = vrot.slane %v10447_v54, 1  ;;  %v10344_v51 = vld [vmem:[#allocation2 + $0x38] sm:$0xff]   ;;  %v7375_v53 = vsel %vm1079_vm2, %v11284_v45, 0  ;;  %v13077_v45 = vld [vmem:[#allocation30_spill] sm:$0xff] }
 0x1e7   : > { %9897 = vmatprep.mubr.msk.bf16.mxu0 %vm958_vm4, %v10342_v30  ;;  %v1793_v25 = vpop.f32.mrf.mxu1  ;;  %v13073_v30 = vld [vmem:[#allocation28_spill] sm:$0xff]  ;;  %v13075_v22 = vld [vmem:[#allocation29_spill] sm:$0xff] }
 0x1e8   : > { %v2357_v40 = vpop.f32.mrf.mxu0  ;;  %13071 = vst [vmem:[#allocation20_spill] sm:$0xff] %v11552_v56  ;;  %v11556_v59 = vadd.f32 %v9631_v62, %v1802_v28  ;;  %v1794_v55 = vadd.f32 %v1793_v25, %v13073_v30  ;;  %v4530_v29 = vsel %vm1878_vm5, %v4527_v11, %v4529_v8  ;;  %v10449_v62 = vld [vmem:[%s12985_s1 + $0xe] sm:$0x3]  ;;  %v4532_v25 = vsel %vm1878_vm5, %v4529_v8, %v4531_v32 }
 0x1e9   : > { %v9550_v36 = vpop.f32.mrf.mxu1  ;;  %v6732_v28 = vsel %vm1079_vm2, %v10449_v62, 0  ;;  %v10345_v62 = vld [vmem:[#allocation2 + $0x40] sm:$0xff]  }
 0x1ea   : > { %v9632_v0 = vpop.f32.mrf.mxu0  ;;  %v11561_v26 = vadd.f32 %v2357_v40, %v1794_v55  ;;  %v1805_v44 = vadd.f32 %v9550_v36, %v13075_v22  ;;  %v13079_v55 = vld [vmem:[#allocation31_spill] sm:$0xff] }
 0x1eb   : > { %v1796_v54 = vpop.f32.mrf.mxu1  ;;  %v10450_v22 = vld [vmem:[#allocation2 + $0x34] sm:$0xff]  }
 0x1ec   : > { %v2360_v9 = vpop.f32.mrf.mxu0  ;;  %13074 = vst [vmem:[#allocation21_spill] sm:$0xff] %v11561_v26  ;;  %v11571_v4 = vadd.f32 %v9632_v0, %v1805_v44  ;;  %v1797_v40 = vadd.f32 %v1796_v54, %v13077_v45  ;;  %v4533_v8 = vrot.slane %v10450_v22, 1  ;;  %v10451_v54 = vld [vmem:[#allocation2 + $0x3c] sm:$0xff]  }
 0x1ed   : > { %v9553_v11 = vpop.f32.mrf.mxu1  ;;  %9816 = vmatmul.mubr.msk.bf16.vlgmr.msra.gmra.mxu1 %vm958_vm4, %v4530_v29  ;;  %v10346_v29 = vld [vmem:[#allocation2 + $0x48] sm:$0xff]  }
 0x1ee   : > { %v9635_v56 = vpop.f32.mrf.mxu0  ;;  %9898 = vmatmul.mubr.msk.bf16.vlgmr.msra.gmra.mxu0 %vm958_vm4, %v10343_v58  ;;  %13076 = vst [vmem:[#allocation22_spill] sm:$0xff] %v11571_v4  ;;  %v11576_v58 = vadd.f32 %v2360_v9, %v1797_v40  ;;  %v1818_v36 = vadd.f32 %v9553_v11, %v13079_v55  ;;  %9978 = vmatpush3.bf16.msra.mxu1 %v6732_v28  ;;  %v13083_v11 = vld [vmem:[#allocation33_spill] sm:$0xff] }
 0x1ef   : > { %10060 = vmatpush3.bf16.msra.mxu0 %v7375_v53  ;;  %9901 = vmatprep.mubr.msk.bf16.mxu0 %vm958_vm4, %v10344_v51  ;;  %v1809_v0 = vpop.f32.mrf.mxu1  ;;  %v4535_v53 = vrot.slane %v10451_v54, 1  ;;  %v13081_v51 = vld [vmem:[#allocation32_spill] sm:$0xff] }
 0x1f0   : > { %v2373_v30 = vpop.f32.mrf.mxu0  ;;  %13078 = vst [vmem:[#allocation23_spill] sm:$0xff] %v11576_v58  ;;  %9819 = vmatprep.mubr.msk.bf16.mxu1 %vm958_vm4, %v4532_v25  ;;  %v11580_v45 = vadd.f32 %v9635_v56, %v1818_v36  ;;  %v1810_v4 = vadd.f32 %v1809_v0, %v13081_v51  ;;  %v4534_v25 = vsel %vm1878_vm5, %v4531_v32, %v4533_v8  ;;  %v13085_v56 = vld [vmem:[#allocation34_spill] sm:$0xff] }
 0x1f1   : > { %v9554_v26 = vpop.f32.mrf.mxu1  ;;  %v4536_v58 = vsel %vm1878_vm5, %v4533_v8, %v4535_v53  ;;  %v10452_v51 = vld [vmem:[#allocation2 + $0x44] sm:$0xff]  }
 0x1f2   : > { %v9636_v44 = vpop.f32.mrf.mxu0  ;;  %13080 = vst [vmem:[#allocation24_spill] sm:$0xff] %v11580_v45  ;;  %v11583_v40 = vadd.f32 %v2373_v30, %v1810_v4  ;;  %v1821_v28 = vadd.f32 %v9554_v26, %v13083_v11  ;;  %v13087_v26 = vld [vmem:[#allocation35_spill] sm:$0xff] }
 0x1f3   : > { %v1812_v55 = vpop.f32.mrf.mxu1 }
 0x1f4   : > { %v2376_v9 = vpop.f32.mrf.mxu0  ;;  %13082 = vst [vmem:[#allocation25_spill] sm:$0xff] %v11583_v40  ;;  %v11589_v54 = vadd.f32 %v9636_v44, %v1821_v28  ;;  %v1813_v36 = vadd.f32 %v1812_v55, %v13085_v56  ;;  %v10347_v44 = vld [vmem:[#allocation2 + $0x50] sm:$0xff]   ;;  %v10348_v40 = vld [vmem:[#allocation2 + $0x58] sm:$0xff]  }
 0x1f5   : > { %v9557_v0 = vpop.f32.mrf.mxu1  ;;  %9820 = vmatmul.mubr.msk.bf16.gmra.mxu1 %vm958_vm4, %v4534_v25  ;;  %v10453_v28 = vld [vmem:[#allocation2 + $0x4c] sm:$0xff]  }
 0x1f6   : > { %v9639_v22 = vpop.f32.mrf.mxu0  ;;  %9902 = vmatmul.mubr.msk.bf16.gmra.mxu0 %vm958_vm4, %v10345_v62  ;;  %13084 = vst [vmem:[#allocation26_spill] sm:$0xff] %v11589_v54  ;;  %v11594_v30 = vadd.f32 %v2376_v9, %v1813_v36  ;;  %v1834_v32 = vadd.f32 %v9557_v0, %v13087_v26  ;;  %9823 = vmatprep.mubr.msk.bf16.mxu1 %vm958_vm4, %v4536_v58  ;;  %v4537_v62 = vrot.slane %v10452_v51, 1  ;;  %v4539_v54 = vrot.slane %v10453_v28, 1  ;;  %v13091_v36 = vld [vmem:[#allocation37_spill] sm:$0xff] }
 0x1f7   : > { %9905 = vmatprep.mubr.msk.bf16.mxu0 %vm958_vm4, %v10346_v29  ;;  %v1825_v11 = vpop.f32.mrf.mxu1  ;;  %v13089_v29 = vld [vmem:[#allocation36_spill] sm:$0xff] }
 0x1f8   : > { %v2389_v4 = vpop.f32.mrf.mxu0  ;;  %13086 = vst [vmem:[#allocation27_spill] sm:$0xff] %v11594_v30  ;;  %v11598_v55 = vadd.f32 %v9639_v22, %v1834_v32  ;;  %v1826_v56 = vadd.f32 %v1825_v11, %v13089_v29  ;;  %v4538_v58 = vsel %vm1878_vm5, %v4535_v53, %v4537_v62  ;;  %v4540_v30 = vsel %vm1878_vm5, %v4537_v62, %v4539_v54  ;;  %v13093_v22 = vld [vmem:[#allocation38_spill] sm:$0xff] }
 0x1f9   : > { %v9558_v25 = vpop.f32.mrf.mxu1 }
 0x1fa   : > { %v9640_v8 = vpop.f32.mrf.mxu0  ;;  %13088 = vst [vmem:[#allocation28_spill] sm:$0xff] %v11598_v55  ;;  %v11601_v9 = vadd.f32 %v2389_v4, %v1826_v56  ;;  %v1837_v0 = vadd.f32 %v9558_v25, %v13091_v36  ;;  %v13095_v56 = vld [vmem:[#allocation39_spill] sm:$0xff] }
 0x1fb   : > { %v1828_v26 = vpop.f32.mrf.mxu1  ;;  %v10454_v25 = vld [vmem:[#allocation2 + $0x54] sm:$0xff]  }
 0x1fc   : > { %v2392_v45 = vpop.f32.mrf.mxu0  ;;  %13090 = vst [vmem:[#allocation29_spill] sm:$0xff] %v11601_v9  ;;  %v11607_v28 = vadd.f32 %v9640_v8, %v1837_v0  ;;  %v1829_v32 = vadd.f32 %v1828_v26, %v13093_v22  ;;  %v10349_v8 = vld [vmem:[#allocation2 + $0x60] sm:$0xff]   ;;  %v10350_v9 = vld [vmem:[#allocation2 + $0x68] sm:$0xff]  }
 0x1fd   : > { %v9561_v11 = vpop.f32.mrf.mxu1  ;;  %9824 = vmatmul.mubr.msk.bf16.gmra.mxu1 %vm958_vm4, %v4538_v58  ;;  %v10455_v0 = vld [vmem:[#allocation2 + $0x5c] sm:$0xff]  }
 0x1fe   : > { %v9643_v51 = vpop.f32.mrf.mxu0  ;;  %9906 = vmatmul.mubr.msk.bf16.gmra.mxu0 %vm958_vm4, %v10347_v44  ;;  %13092 = vst [vmem:[#allocation30_spill] sm:$0xff] %v11607_v28  ;;  %v11612_v29 = vadd.f32 %v2392_v45, %v1829_v32  ;;  %v1850_v53 = vadd.f32 %v9561_v11, %v13095_v56  ;;  %9827 = vmatprep.mubr.msk.bf16.mxu1 %vm958_vm4, %v4540_v30  ;;  %v4541_v44 = vrot.slane %v10454_v25, 1  ;;  %v4543_v28 = vrot.slane %v10455_v0, 1  ;;  %v13099_v32 = vld [vmem:[#allocation41_spill] sm:$0xff] }
 0x1ff   : > { %9909 = vmatprep.mubr.msk.bf16.mxu0 %vm958_vm4, %v10348_v40  ;;  %v1841_v36 = vpop.f32.mrf.mxu1  ;;  %v13097_v40 = vld [vmem:[#allocation40_spill] sm:$0xff] }
 0x200   : > { %v2405_v4 = vpop.f32.mrf.mxu0  ;;  %13094 = vst [vmem:[#allocation31_spill] sm:$0xff] %v11612_v29  ;;  %v11616_v26 = vadd.f32 %v9643_v51, %v1850_v53  ;;  %v1842_v22 = vadd.f32 %v1841_v36, %v13097_v40  ;;  %v4542_v30 = vsel %vm1878_vm5, %v4539_v54, %v4541_v44  ;;  %v4544_v29 = vsel %vm1878_vm5, %v4541_v44, %v4543_v28  ;;  %v13101_v51 = vld [vmem:[#allocation42_spill] sm:$0xff] }
 0x201   : > { %v9562_v58 = vpop.f32.mrf.mxu1 }
 0x202   : > { %v9644_v62 = vpop.f32.mrf.mxu0  ;;  %13096 = vst [vmem:[#allocation32_spill] sm:$0xff] %v11616_v26  ;;  %v11619_v45 = vadd.f32 %v2405_v4, %v1842_v22  ;;  %v1853_v11 = vadd.f32 %v9562_v58, %v13099_v32  ;;  %v13103_v22 = vld [vmem:[#allocation43_spill] sm:$0xff]  ;;  %v10456_v58 = vld [vmem:[#allocation2 + $0x64] sm:$0xff]  }
 0x203   : > { %v1844_v56 = vpop.f32.mrf.mxu1 }
 0x204   : > { %v2408_v55 = vpop.f32.mrf.mxu0  ;;  %13098 = vst [vmem:[#allocation33_spill] sm:$0xff] %v11619_v45  ;;  %v11625_v0 = vadd.f32 %v9644_v62, %v1853_v11  ;;  %v1845_v53 = vadd.f32 %v1844_v56, %v13101_v51  ;;  %v10351_v62 = vld [vmem:[#allocation2 + $0x70] sm:$0xff]   ;;  %v10352_v45 = vld [vmem:[#allocation2 + $0x78] sm:$0xff]  }
 0x205   : > { %v9565_v36 = vpop.f32.mrf.mxu1  ;;  %9828 = vmatmul.mubr.msk.bf16.gmra.mxu1 %vm958_vm4, %v4542_v30  ;;  %v10457_v11 = vld [vmem:[#allocation2 + $0x6c] sm:$0xff]  }
 0x206   : > { %v9647_v25 = vpop.f32.mrf.mxu0  ;;  %9910 = vmatmul.mubr.msk.bf16.gmra.mxu0 %vm958_vm4, %v10349_v8  ;;  %13100 = vst [vmem:[#allocation34_spill] sm:$0xff] %v11625_v0  ;;  %v11630_v40 = vadd.f32 %v2408_v55, %v1845_v53  ;;  %v1866_v54 = vadd.f32 %v9565_v36, %v13103_v22  ;;  %9831 = vmatprep.mubr.msk.bf16.mxu1 %vm958_vm4, %v4544_v29  ;;  %v4545_v8 = vrot.slane %v10456_v58, 1  ;;  %v4547_v0 = vrot.slane %v10457_v11, 1  ;;  %v13107_v53 = vld [vmem:[#allocation45_spill] sm:$0xff] }
 0x207   : > { %9913 = vmatprep.mubr.msk.bf16.mxu0 %vm958_vm4, %v10350_v9  ;;  %v1857_v32 = vpop.f32.mrf.mxu1  ;;  %v13105_v9 = vld [vmem:[#allocation44_spill] sm:$0xff] }
 0x208   : > { %v2421_v4 = vpop.f32.mrf.mxu0  ;;  %13102 = vst [vmem:[#allocation35_spill] sm:$0xff] %v11630_v40  ;;  %v11634_v56 = vadd.f32 %v9647_v25, %v1866_v54  ;;  %v1858_v51 = vadd.f32 %v1857_v32, %v13105_v9  ;;  %v4546_v29 = vsel %vm1878_vm5, %v4543_v28, %v4545_v8  ;;  %v4548_v40 = vsel %vm1878_vm5, %v4545_v8, %v4547_v0  ;;  %v13109_v25 = vld [vmem:[#allocation46_spill] sm:$0xff] }
 0x209   : > { %v9566_v30 = vpop.f32.mrf.mxu1 }
 0x20a   : > { %v9648_v44 = vpop.f32.mrf.mxu0  ;;  %13104 = vst [vmem:[#allocation36_spill] sm:$0xff] %v11634_v56  ;;  %v11637_v55 = vadd.f32 %v2421_v4, %v1858_v51  ;;  %v1869_v36 = vadd.f32 %v9566_v30, %v13107_v53  ;;  %v13110_v51 = vld [vmem:[#allocation47_spill] sm:$0xff] }
 0x20b   : > { %v1860_v22 = vpop.f32.mrf.mxu1  ;;  %v10458_v30 = vld [vmem:[#allocation2 + $0x74] sm:$0xff]  }
 0x20c   : > { %v2424_v26 = vpop.f32.mrf.mxu0  ;;  %13106 = vst [vmem:[#allocation37_spill] sm:$0xff] %v11637_v55  ;;  %v11643_v11 = vadd.f32 %v9648_v44, %v1869_v36  ;;  %v1861_v54 = vadd.f32 %v1860_v22, %v13109_v25  ;;  %v10353_v44 = vld [vmem:[#allocation2 + $0x80] sm:$0xff]   ;;  %v10354_v55 = vld [vmem:[#allocation2 + $0x88] sm:$0xff]  }
 0x20d   : > { %v9653_v32 = vpop.f32.mrf.mxu1  ;;  %9832 = vmatmul.mubr.msk.bf16.gmra.mxu1 %vm958_vm4, %v4546_v29  ;;  %v10459_v36 = vld [vmem:[#allocation2 + $0x7c] sm:$0xff]  }
 0x20e   : > { %v9735_v58 = vpop.f32.mrf.mxu0  ;;  %9914 = vmatmul.mubr.msk.bf16.gmra.mxu0 %vm958_vm4, %v10351_v62  ;;  %13108 = vst [vmem:[#allocation38_spill] sm:$0xff] %v11643_v11  ;;  %v11648_v9 = vadd.f32 %v2424_v26, %v1861_v54  ;;  %v3276_v28 = vadd.f32 %v9653_v32, %v13110_v51  ;;  %9835 = vmatprep.mubr.msk.bf16.mxu1 %vm958_vm4, %v4548_v40  ;;  %v4549_v62 = vrot.slane %v10458_v30, 1  ;;  %v4551_v11 = vrot.slane %v10459_v36, 1 }
 0x20f   : > { %9917 = vmatprep.mubr.msk.bf16.mxu0 %vm958_vm4, %v10352_v45  ;;  %v2955_v53 = vpop.f32.mrf.mxu1  ;;  %v13111_v45 = vld [vmem:[#allocation48_spill] sm:$0xff] }
 0x210   : > { %v4121_v4 = vpop.f32.mrf.mxu0  ;;  %v11652_v22 = vadd.f32 %v9735_v58, %v3276_v28  ;;  %v3274_v25 = vadd.f32 %v2955_v53, %v13111_v45  ;;  %v4550_v40 = vsel %vm1878_vm5, %v4547_v0, %v4549_v62  ;;  %v4552_v30 = vsel %vm1878_vm5, %v4549_v62, %v4551_v11  ;;  %v10460_v0 = vld [vmem:[#allocation2 + $0x84] sm:$0xff]  }
 0x211   : > { %v9654_v29 = vpop.f32.mrf.mxu1 }
 0x212   : > { %v9736_v8 = vpop.f32.mrf.mxu0  ;;  %v11655_v26 = vadd.f32 %v4121_v4, %v3274_v25  ;;  %v3277_v54 = vadd.f32 %v9654_v29, %v11294_v24  ;;  %v10461_v25 = vld [vmem:[#allocation2 + $0x8c] sm:$0xff]  }
 0x213   : > { %v2958_v32 = vpop.f32.mrf.mxu1  ;;  %v4555_v29 = vrot.slane %v10461_v25, 1 }
 0x214   : > { %v4124_v56 = vpop.f32.mrf.mxu0  ;;  %v11661_v36 = vadd.f32 %v9736_v8, %v3277_v54  ;;  %v3275_v58 = vadd.f32 %v2958_v32, %v11299_v12  ;;  %v10355_v8 = vld [vmem:[#allocation2 + $0x90] sm:$0xff]   ;;  %v10356_v54 = vld [vmem:[#allocation2 + $0x98] sm:$0xff]  }
 0x215   : > { %v9657_v28 = vpop.f32.mrf.mxu1  ;;  %9836 = vmatmul.mubr.msk.bf16.gmra.mxu1 %vm958_vm4, %v4550_v40 }
 0x216   : > { %v9739_v51 = vpop.f32.mrf.mxu0  ;;  %9918 = vmatmul.mubr.msk.bf16.gmra.mxu0 %vm958_vm4, %v10353_v44  ;;  %v11666_v53 = vadd.f32 %v4124_v56, %v3275_v58  ;;  %v3280_v24 = vadd.f32 %v9657_v28, %v11303_v61  ;;  %9839 = vmatprep.mubr.msk.bf16.mxu1 %vm958_vm4, %v4552_v30  ;;  %v4553_v44 = vrot.slane %v10460_v0, 1 }
 0x217   : > { %9921 = vmatprep.mubr.msk.bf16.mxu0 %vm958_vm4, %v10354_v55  ;;  %v2971_v45 = vpop.f32.mrf.mxu1 }
 0x218   : > { %v4137_v4 = vpop.f32.mrf.mxu0  ;;  %v11670_v12 = vadd.f32 %v9739_v51, %v3280_v24  ;;  %v3278_v55 = vadd.f32 %v2971_v45, %v11309_v14  ;;  %v4554_v30 = vsel %vm1878_vm5, %v4551_v11, %v4553_v44  ;;  %v4556_v0 = vsel %vm1878_vm5, %v4553_v44, %v4555_v29  ;;  %v13113_v51 = vld [vmem:[#allocation49_spill] sm:$0xff]  ;;  %v10462_v11 = vld [vmem:[#allocation2 + $0x94] sm:$0xff]  }
 0x219   : > { %v9658_v40 = vpop.f32.mrf.mxu1 }
 0x21a   : > { %v9740_v62 = vpop.f32.mrf.mxu0  ;;  %v11673_v56 = vadd.f32 %v4137_v4, %v3278_v55  ;;  %v3281_v61 = vadd.f32 %v9658_v40, %v11313_v19  ;;  %v10463_v40 = vld [vmem:[#allocation2 + $0x9c] sm:$0xff]  }
 0x21b   : > { %v2974_v58 = vpop.f32.mrf.mxu1 }
 0x21c   : > { %v4140_v32 = vpop.f32.mrf.mxu0  ;;  %v11679_v25 = vadd.f32 %v9740_v62, %v3281_v61  ;;  %v3279_v24 = vadd.f32 %v2974_v58, %v13113_v51  ;;  %v10357_v62 = vld [vmem:[#allocation2 + $0xa0] sm:$0xff]   ;;  %v4559_v61 = vrot.slane %v10463_v40, 1  ;;  %v10358_v51 = vld [vmem:[#allocation2 + $0xa8] sm:$0xff]  }
 0x21d   : > { %v9661_v14 = vpop.f32.mrf.mxu1  ;;  %9840 = vmatmul.mubr.msk.bf16.gmra.mxu1 %vm958_vm4, %v4554_v30 }
 0x21e   : > { %v9743_v28 = vpop.f32.mrf.mxu0  ;;  %9922 = vmatmul.mubr.msk.bf16.gmra.mxu0 %vm958_vm4, %v10355_v8  ;;  %13112 = vst [vmem:[#allocation39_spill] sm:$0xff] %v11679_v25  ;;  %v11684_v45 = vadd.f32 %v4140_v32, %v3279_v24  ;;  %v3284_v19 = vadd.f32 %v9661_v14, %v11322_v18  ;;  %9843 = vmatprep.mubr.msk.bf16.mxu1 %vm958_vm4, %v4556_v0  ;;  %v4557_v8 = vrot.slane %v10462_v11, 1 }
 0x21f   : > { %9925 = vmatprep.mubr.msk.bf16.mxu0 %vm958_vm4, %v10356_v54  ;;  %v2987_v55 = vpop.f32.mrf.mxu1 }
 0x220   : > { %v4153_v4 = vpop.f32.mrf.mxu0  ;;  %v11688_v58 = vadd.f32 %v9743_v28, %v3284_v19  ;;  %v3282_v54 = vadd.f32 %v2987_v55, %v11327_v20  ;;  %v4558_v0 = vsel %vm1878_vm5, %v4555_v29, %v4557_v8  ;;  %v4560_v11 = vsel %vm1878_vm5, %v4557_v8, %v4559_v61  ;;  %v10464_v29 = vld [vmem:[#allocation2 + $0xa4] sm:$0xff]  }
 0x221   : > { %v9662_v30 = vpop.f32.mrf.mxu1  ;;  %v4561_v55 = vrot.slane %v10464_v29, 1 }
 0x222   : > { %v9744_v44 = vpop.f32.mrf.mxu0  ;;  %v11691_v32 = vadd.f32 %v4153_v4, %v3282_v54  ;;  %v3285_v18 = vadd.f32 %v9662_v30, %v11331_v10  ;;  %v10465_v54 = vld [vmem:[#allocation2 + $0xac] sm:$0xff]  }
 0x223   : > { %v2990_v24 = vpop.f32.mrf.mxu1  ;;  %v4563_v30 = vrot.slane %v10465_v54, 1 }
 0x224   : > { %v4156_v25 = vpop.f32.mrf.mxu0  ;;  %v11697_v40 = vadd.f32 %v9744_v44, %v3285_v18  ;;  %v3283_v28 = vadd.f32 %v2990_v24, %v11336_v33  ;;  %v10359_v44 = vld [vmem:[#allocation2 + $0xb0] sm:$0xff]   ;;  %v10360_v18 = vld [vmem:[#allocation2 + $0xb8] sm:$0xff]  }
 0x225   : > { %v9665_v20 = vpop.f32.mrf.mxu1  ;;  %9844 = vmatmul.mubr.msk.bf16.gmra.mxu1 %vm958_vm4, %v4558_v0  ;;  %v4564_v29 = vsel %vm1878_vm5, %v4561_v55, %v4563_v30 }
 0x226   : > { %v9747_v14 = vpop.f32.mrf.mxu0  ;;  %9926 = vmatmul.mubr.msk.bf16.gmra.mxu0 %vm958_vm4, %v10357_v62  ;;  %v11702_v19 = vadd.f32 %v4156_v25, %v3283_v28  ;;  %v3288_v10 = vadd.f32 %v9665_v20, %v11340_v34  ;;  %9847 = vmatprep.mubr.msk.bf16.mxu1 %vm958_vm4, %v4560_v11  ;;  %v4562_v11 = vsel %vm1878_vm5, %v4559_v61, %v4561_v55  ;;  %v10466_v61 = vld [vmem:[#allocation2 + $0xb4] sm:$0xff]  }
 0x227   : > { %9929 = vmatprep.mubr.msk.bf16.mxu0 %vm958_vm4, %v10358_v51  ;;  %v3003_v62 = vpop.f32.mrf.mxu1 }
 0x228   : > { %v4169_v4 = vpop.f32.mrf.mxu0  ;;  %v11706_v33 = vadd.f32 %v9747_v14, %v3288_v10  ;;  %v3286_v51 = vadd.f32 %v3003_v62, %v11345_v38  ;;  %v4565_v62 = vrot.slane %v10466_v61, 1 }
 0x229   : > { %v9666_v0 = vpop.f32.mrf.mxu1 }
 0x22a   : > { %v9748_v8 = vpop.f32.mrf.mxu0  ;;  %v11709_v25 = vadd.f32 %v4169_v4, %v3286_v51  ;;  %v3289_v34 = vadd.f32 %v9666_v0, %v11349_v23  ;;  %v10467_v51 = vld [vmem:[#allocation2 + $0xbc] sm:$0xff]  }
 0x22b   : > { %v3006_v28 = vpop.f32.mrf.mxu1  ;;  %v4567_v0 = vrot.slane %v10467_v51, 1 }
 0x22c   : > { %v4172_v24 = vpop.f32.mrf.mxu0  ;;  %v11715_v54 = vadd.f32 %v9748_v8, %v3289_v34  ;;  %v3287_v14 = vadd.f32 %v3006_v28, %v11354_v13  ;;  %v10361_v8 = vld [vmem:[#allocation2 + $0xc0] sm:$0xff]   ;;  %v10362_v34 = vld [vmem:[#allocation2 + $0xc8] sm:$0xff]  }
 0x22d   : > { %v9669_v38 = vpop.f32.mrf.mxu1  ;;  %9848 = vmatmul.mubr.msk.bf16.gmra.mxu1 %vm958_vm4, %v4562_v11  ;;  %v4568_v61 = vsel %vm1878_vm5, %v4565_v62, %v4567_v0 }
 0x22e   : > { %v9751_v20 = vpop.f32.mrf.mxu0  ;;  %9930 = vmatmul.mubr.msk.bf16.gmra.mxu0 %vm958_vm4, %v10359_v44  ;;  %v11720_v10 = vadd.f32 %v4172_v24, %v3287_v14  ;;  %v3292_v23 = vadd.f32 %v9669_v38, %v11358_v48  ;;  %9851 = vmatprep.mubr.msk.bf16.mxu1 %vm958_vm4, %v4564_v29  ;;  %v4566_v29 = vsel %vm1878_vm5, %v4563_v30, %v4565_v62  ;;  %v10468_v30 = vld [vmem:[#allocation2 + $0xc4] sm:$0xff]  }
 0x22f   : > { %9933 = vmatprep.mubr.msk.bf16.mxu0 %vm958_vm4, %v10360_v18  ;;  %v3019_v44 = vpop.f32.mrf.mxu1 }
 0x230   : > { %v4185_v4 = vpop.f32.mrf.mxu0  ;;  %v11724_v13 = vadd.f32 %v9751_v20, %v3292_v23  ;;  %v3290_v18 = vadd.f32 %v3019_v44, %v11363_v21  ;;  %v4569_v44 = vrot.slane %v10468_v30, 1 }
 0x231   : > { %v9670_v11 = vpop.f32.mrf.mxu1 }
 0x232   : > { %v9752_v55 = vpop.f32.mrf.mxu0  ;;  %v11727_v24 = vadd.f32 %v4185_v4, %v3290_v18  ;;  %v3293_v48 = vadd.f32 %v9670_v11, %v11367_v43  ;;  %v10469_v18 = vld [vmem:[#allocation2 + $0xcc] sm:$0xff]  }
 0x233   : > { %v3022_v14 = vpop.f32.mrf.mxu1  ;;  %v4571_v11 = vrot.slane %v10469_v18, 1 }
 0x234   : > { %v4188_v28 = vpop.f32.mrf.mxu0  ;;  %v11733_v51 = vadd.f32 %v9752_v55, %v3293_v48  ;;  %v3291_v20 = vadd.f32 %v3022_v14, %v11372_v27  ;;  %v10363_v55 = vld [vmem:[#allocation2 + $0xd0] sm:$0xff]   ;;  %v10364_v48 = vld [vmem:[#allocation2 + $0xd8] sm:$0xff]  }
 0x235   : > { %v9673_v21 = vpop.f32.mrf.mxu1  ;;  %9852 = vmatmul.mubr.msk.bf16.gmra.mxu1 %vm958_vm4, %v4566_v29  ;;  %v4572_v30 = vsel %vm1878_vm5, %v4569_v44, %v4571_v11 }
 0x236   : > { %v9755_v38 = vpop.f32.mrf.mxu0  ;;  %9934 = vmatmul.mubr.msk.bf16.gmra.mxu0 %vm958_vm4, %v10361_v8  ;;  %v11738_v23 = vadd.f32 %v4188_v28, %v3291_v20  ;;  %v3296_v43 = vadd.f32 %v9673_v21, %v11376_v31  ;;  %9855 = vmatprep.mubr.msk.bf16.mxu1 %vm958_vm4, %v4568_v61  ;;  %v4570_v61 = vsel %vm1878_vm5, %v4567_v0, %v4569_v44  ;;  %v10470_v0 = vld [vmem:[#allocation2 + $0xd4] sm:$0xff]  }
 0x237   : > { %9937 = vmatprep.mubr.msk.bf16.mxu0 %vm958_vm4, %v10362_v34  ;;  %v3035_v8 = vpop.f32.mrf.mxu1 }
 0x238   : > { %v4201_v4 = vpop.f32.mrf.mxu0  ;;  %v11742_v27 = vadd.f32 %v9755_v38, %v3296_v43  ;;  %v3294_v34 = vadd.f32 %v3035_v8, %v11381_v47  ;;  %v4573_v8 = vrot.slane %v10470_v0, 1 }
 0x239   : > { %v9674_v29 = vpop.f32.mrf.mxu1 }
 0x23a   : > { %v9756_v62 = vpop.f32.mrf.mxu0  ;;  %v11745_v28 = vadd.f32 %v4201_v4, %v3294_v34  ;;  %v3297_v31 = vadd.f32 %v9674_v29, %v11385_v5  ;;  %v10471_v34 = vld [vmem:[#allocation2 + $0xdc] sm:$0xff]  }
 0x23b   : > { %v3038_v20 = vpop.f32.mrf.mxu1  ;;  %v4575_v29 = vrot.slane %v10471_v34, 1 }
 0x23c   : > { %v4204_v14 = vpop.f32.mrf.mxu0  ;;  %v11751_v18 = vadd.f32 %v9756_v62, %v3297_v31  ;;  %v3295_v38 = vadd.f32 %v3038_v20, %v11390_v52  ;;  %v10365_v62 = vld [vmem:[#allocation2 + $0xe0] sm:$0xff]   ;;  %v10366_v31 = vld [vmem:[#allocation2 + $0xe8] sm:$0xff]  }
 0x23d   : > { %v9677_v47 = vpop.f32.mrf.mxu1  ;;  %9856 = vmatmul.mubr.msk.bf16.gmra.mxu1 %vm958_vm4, %v4570_v61  ;;  %v4576_v0 = vsel %vm1878_vm5, %v4573_v8, %v4575_v29 }
 0x23e   : > { %v9759_v21 = vpop.f32.mrf.mxu0  ;;  %9938 = vmatmul.mubr.msk.bf16.gmra.mxu0 %vm958_vm4, %v10363_v55  ;;  %v11756_v43 = vadd.f32 %v4204_v14, %v3295_v38  ;;  %v3300_v5 = vadd.f32 %v9677_v47, %v11394_v6  ;;  %9859 = vmatprep.mubr.msk.bf16.mxu1 %vm958_vm4, %v4572_v30  ;;  %v4574_v30 = vsel %vm1878_vm5, %v4571_v11, %v4573_v8  ;;  %v10472_v11 = vld [vmem:[#allocation2 + $0xe4] sm:$0xff]  }
 0x23f   : > { %9941 = vmatprep.mubr.msk.bf16.mxu0 %vm958_vm4, %v10364_v48  ;;  %v3051_v55 = vpop.f32.mrf.mxu1 }
 0x240   : > { %v4217_v4 = vpop.f32.mrf.mxu0  ;;  %v11760_v52 = vadd.f32 %v9759_v21, %v3300_v5  ;;  %v3298_v48 = vadd.f32 %v3051_v55, %v11399_v1  ;;  %v4577_v55 = vrot.slane %v10472_v11, 1 }
 0x241   : > { %v9678_v61 = vpop.f32.mrf.mxu1 }
 0x242   : > { %v9760_v44 = vpop.f32.mrf.mxu0  ;;  %v11763_v14 = vadd.f32 %v4217_v4, %v3298_v48  ;;  %v3301_v6 = vadd.f32 %v9678_v61, %v11403_v49  ;;  %v10473_v48 = vld [vmem:[#allocation2 + $0xec] sm:$0xff]  }
 0x243   : > { %v3054_v38 = vpop.f32.mrf.mxu1  ;;  %v4579_v61 = vrot.slane %v10473_v48, 1 }
 0x244   : > { %v4220_v20 = vpop.f32.mrf.mxu0  ;;  %v11769_v34 = vadd.f32 %v9760_v44, %v3301_v6  ;;  %v3299_v21 = vadd.f32 %v3054_v38, %v11408_v37  ;;  %v10367_v44 = vld [vmem:[#allocation2 + $0xf0] sm:$0xff]   ;;  %v10368_v6 = vld [vmem:[#allocation2 + $0xf8] sm:$0xff]  }
 0x245   : > { %v9681_v1 = vpop.f32.mrf.mxu1  ;;  %9860 = vmatmul.mubr.msk.bf16.gmra.mxu1 %vm958_vm4, %v4574_v30  ;;  %v4580_v11 = vsel %vm1878_vm5, %v4577_v55, %v4579_v61 }
 0x246   : > { %v9763_v47 = vpop.f32.mrf.mxu0  ;;  %9942 = vmatmul.mubr.msk.bf16.gmra.mxu0 %vm958_vm4, %v10365_v62  ;;  %v11774_v5 = vadd.f32 %v4220_v20, %v3299_v21  ;;  %v3304_v49 = vadd.f32 %v9681_v1, %v11412_v42  ;;  %9863 = vmatprep.mubr.msk.bf16.mxu1 %vm958_vm4, %v4576_v0  ;;  %v4578_v0 = vsel %vm1878_vm5, %v4575_v29, %v4577_v55  ;;  %v10474_v29 = vld [vmem:[#allocation2 + $0xf4] sm:$0xff]  }
 0x247   : > { %9945 = vmatprep.mubr.msk.bf16.mxu0 %vm958_vm4, %v10366_v31  ;;  %v3067_v62 = vpop.f32.mrf.mxu1 }
 0x248   : > { %v4233_v4 = vpop.f32.mrf.mxu0  ;;  %v11778_v37 = vadd.f32 %v9763_v47, %v3304_v49  ;;  %v3302_v31 = vadd.f32 %v3067_v62, %v11417_v46  ;;  %v4581_v62 = vrot.slane %v10474_v29, 1 }
 0x249   : > { %v9682_v30 = vpop.f32.mrf.mxu1 }
 0x24a   : > { %v9764_v8 = vpop.f32.mrf.mxu0  ;;  %v11781_v20 = vadd.f32 %v4233_v4, %v3302_v31  ;;  %v3305_v42 = vadd.f32 %v9682_v30, %v11421_v16  ;;  %v10475_v31 = vld [vmem:[#allocation2 + $0xfc] sm:$0xff]  }
 0x24b   : > { %v3070_v21 = vpop.f32.mrf.mxu1  ;;  %v4583_v30 = vrot.slane %v10475_v31, 1 }
 0x24c   : > { %v4236_v38 = vpop.f32.mrf.mxu0  ;;  %v11787_v48 = vadd.f32 %v9764_v8, %v3305_v42  ;;  %v3303_v47 = vadd.f32 %v3070_v21, %v11426_v3  ;;  %v10369_v8 = vld [vmem:[#allocation2 + $0x100] sm:$0xff]   ;;  %v10370_v42 = vld [vmem:[#allocation2 + $0x108] sm:$0xff]  }
 0x24d   : > { %v9685_v46 = vpop.f32.mrf.mxu1  ;;  %9864 = vmatmul.mubr.msk.bf16.gmra.mxu1 %vm958_vm4, %v4578_v0  ;;  %v4584_v29 = vsel %vm1878_vm5, %v4581_v62, %v4583_v30 }
 0x24e   : > { %v9767_v1 = vpop.f32.mrf.mxu0  ;;  %9946 = vmatmul.mubr.msk.bf16.gmra.mxu0 %vm958_vm4, %v10367_v44  ;;  %v11792_v49 = vadd.f32 %v4236_v38, %v3303_v47  ;;  %v3308_v16 = vadd.f32 %v9685_v46, %v11430_v35  ;;  %9867 = vmatprep.mubr.msk.bf16.mxu1 %vm958_vm4, %v4580_v11  ;;  %v4582_v11 = vsel %vm1878_vm5, %v4579_v61, %v4581_v62  ;;  %v10476_v61 = vld [vmem:[#allocation2 + $0x104] sm:$0xff]  }
 0x24f   : > { %9949 = vmatprep.mubr.msk.bf16.mxu0 %vm958_vm4, %v10368_v6  ;;  %v3083_v44 = vpop.f32.mrf.mxu1 }
 0x250   : > { %v4249_v4 = vpop.f32.mrf.mxu0  ;;  %v11796_v3 = vadd.f32 %v9767_v1, %v3308_v16  ;;  %v3306_v6 = vadd.f32 %v3083_v44, %v11435_v7  ;;  %v4585_v44 = vrot.slane %v10476_v61, 1 }
 0x251   : > { %v9686_v0 = vpop.f32.mrf.mxu1 }
 0x252   : > { %v9768_v55 = vpop.f32.mrf.mxu0  ;;  %v11799_v38 = vadd.f32 %v4249_v4, %v3306_v6  ;;  %v3309_v35 = vadd.f32 %v9686_v0, %v11439_v17  ;;  %v10477_v6 = vld [vmem:[#allocation2 + $0x10c] sm:$0xff]  }
 0x253   : > { %v3086_v47 = vpop.f32.mrf.mxu1  ;;  %v4587_v0 = vrot.slane %v10477_v6, 1 }
 0x254   : > { %v4252_v21 = vpop.f32.mrf.mxu0  ;;  %13114 = vst [vmem:[#allocation40_spill] sm:$0xff] %v11799_v38  ;;  %v11805_v31 = vadd.f32 %v9768_v55, %v3309_v35  ;;  %v3307_v1 = vadd.f32 %v3086_v47, %v11444_v2  ;;  %v10371_v55 = vld [vmem:[#allocation2 + $0x110] sm:$0xff]   ;;  %v10372_v47 = vld [vmem:[#allocation2 + $0x118] sm:$0xff]  }
 0x255   : > { %v9689_v7 = vpop.f32.mrf.mxu1  ;;  %9868 = vmatmul.mubr.msk.bf16.gmra.mxu1 %vm958_vm4, %v4582_v11 }
 0x256   : > { %v9771_v46 = vpop.f32.mrf.mxu0  ;;  %9950 = vmatmul.mubr.msk.bf16.gmra.mxu0 %vm958_vm4, %v10369_v8  ;;  %13115 = vst [vmem:[#allocation41_spill] sm:$0xff] %v11805_v31  ;;  %v11810_v16 = vadd.f32 %v4252_v21, %v3307_v1  ;;  %v3312_v17 = vadd.f32 %v9689_v7, %v11448_v60  ;;  %9871 = vmatprep.mubr.msk.bf16.mxu1 %vm958_vm4, %v4584_v29  ;;  %v13120_v1 = vld [vmem:[#allocation51_spill] sm:$0xff] }
 0x257   : > { %9953 = vmatprep.mubr.msk.bf16.mxu0 %vm958_vm4, %v10370_v42  ;;  %v3099_v8 = vpop.f32.mrf.mxu1  ;;  %v13118_v42 = vld [vmem:[#allocation50_spill] sm:$0xff]  ;;  %v4586_v29 = vsel %vm1878_vm5, %v4583_v30, %v4585_v44 }
 0x258   : > { %v4265_v4 = vpop.f32.mrf.mxu0  ;;  %13116 = vst [vmem:[#allocation42_spill] sm:$0xff] %v11810_v16  ;;  %v11814_v2 = vadd.f32 %v9771_v46, %v3312_v17  ;;  %v3310_v35 = vadd.f32 %v3099_v8, %v13118_v42  ;;  %v4588_v16 = vsel %vm1878_vm5, %v4585_v44, %v4587_v0  ;;  %v13122_v46 = vld [vmem:[#allocation52_spill] sm:$0xff] }
 0x259   : > { %v9690_v11 = vpop.f32.mrf.mxu1 }
 0x25a   : > { %v9772_v62 = vpop.f32.mrf.mxu0  ;;  %13117 = vst [vmem:[#allocation43_spill] sm:$0xff] %v11814_v2  ;;  %v11817_v21 = vadd.f32 %v4265_v4, %v3310_v35  ;;  %v3313_v60 = vadd.f32 %v9690_v11, %v13120_v1  ;;  %v13124_v35 = vld [vmem:[#allocation7_spill] sm:$0xff] }
 0x25b   : > { %v3102_v7 = vpop.f32.mrf.mxu1  ;;  %v10478_v11 = vld [vmem:[#allocation2 + $0x114] sm:$0xff]  }
 0x25c   : > { %v4268_v31 = vpop.f32.mrf.mxu0  ;;  %13119 = vst [vmem:[#allocation44_spill] sm:$0xff] %v11817_v21  ;;  %v11823_v6 = vadd.f32 %v9772_v62, %v3313_v60  ;;  %v3311_v17 = vadd.f32 %v3102_v7, %v13122_v46  ;;  %v10373_v62 = vld [vmem:[#allocation2 + $0x120] sm:$0xff]   ;;  %v10374_v21 = vld [vmem:[#allocation2 + $0x128] sm:$0xff]  }
 0x25d   : > { %v9693_v8 = vpop.f32.mrf.mxu1  ;;  %9872 = vmatmul.mubr.msk.bf16.gmra.mxu1 %vm958_vm4, %v4586_v29  ;;  %v10479_v60 = vld [vmem:[#allocation2 + $0x11c] sm:$0xff]  }
 0x25e   : > { %v9775_v61 = vpop.f32.mrf.mxu0  ;;  %9954 = vmatmul.mubr.msk.bf16.gmra.mxu0 %vm958_vm4, %v10371_v55  ;;  %13121 = vst [vmem:[#allocation45_spill] sm:$0xff] %v11823_v6  ;;  %v11828_v42 = vadd.f32 %v4268_v31, %v3311_v17  ;;  %v3316_v30 = vadd.f32 %v9693_v8, %v13124_v35  ;;  %9875 = vmatprep.mubr.msk.bf16.mxu1 %vm958_vm4, %v4588_v16  ;;  %v4589_v55 = vrot.slane %v10478_v11, 1  ;;  %v4591_v6 = vrot.slane %v10479_v60, 1  ;;  %v13128_v17 = vld [vmem:[#allocation9_spill] sm:$0xff] }
 0x25f   : > { %9957 = vmatprep.mubr.msk.bf16.mxu0 %vm958_vm4, %v10372_v47  ;;  %v3115_v1 = vpop.f32.mrf.mxu1  ;;  %v13126_v47 = vld [vmem:[#allocation8_spill] sm:$0xff] }
 0x260   : > { %v4281_v4 = vpop.f32.mrf.mxu0  ;;  %13123 = vst [vmem:[#allocation46_spill] sm:$0xff] %v11828_v42  ;;  %v11832_v7 = vadd.f32 %v9775_v61, %v3316_v30  ;;  %v3314_v46 = vadd.f32 %v3115_v1, %v13126_v47  ;;  %v4590_v16 = vsel %vm1878_vm5, %v4587_v0, %v4589_v55  ;;  %v4592_v42 = vsel %vm1878_vm5, %v4589_v55, %v4591_v6  ;;  %v13130_v61 = vld [vmem:[#allocation10_spill] sm:$0xff] }
 0x261   : > { %v9694_v29 = vpop.f32.mrf.mxu1 }
 0x262   : > { %v9776_v44 = vpop.f32.mrf.mxu0  ;;  %13125 = vst [vmem:[#allocation47_spill] sm:$0xff] %v11832_v7  ;;  %v11835_v31 = vadd.f32 %v4281_v4, %v3314_v46  ;;  %v3317_v8 = vadd.f32 %v9694_v29, %v13128_v17  ;;  %v13132_v46 = vld [vmem:[#allocation11_spill] sm:$0xff]  ;;  %v10480_v29 = vld [vmem:[#allocation2 + $0x124] sm:$0xff]  }
 0x263   : > { %v3118_v35 = vpop.f32.mrf.mxu1 }
 0x264   : > { %v4284_v2 = vpop.f32.mrf.mxu0  ;;  %13127 = vst [vmem:[#allocation48_spill] sm:$0xff] %v11835_v31  ;;  %v11841_v60 = vadd.f32 %v9776_v44, %v3317_v8  ;;  %v3315_v30 = vadd.f32 %v3118_v35, %v13130_v61  ;;  %v10375_v44 = vld [vmem:[#allocation2 + $0x130] sm:$0xff]   ;;  %v10376_v31 = vld [vmem:[#allocation2 + $0x138] sm:$0xff]  }
 0x265   : > { %v9697_v1 = vpop.f32.mrf.mxu1  ;;  %9876 = vmatmul.mubr.msk.bf16.gmra.mxu1 %vm958_vm4, %v4590_v16  ;;  %v10481_v8 = vld [vmem:[#allocation2 + $0x12c] sm:$0xff]  }
 0x266   : > { %v9779_v11 = vpop.f32.mrf.mxu0  ;;  %9958 = vmatmul.mubr.msk.bf16.gmra.mxu0 %vm958_vm4, %v10373_v62  ;;  %13129 = vst [vmem:[#allocation49_spill] sm:$0xff] %v11841_v60  ;;  %v11846_v47 = vadd.f32 %v4284_v2, %v3315_v30  ;;  %v3320_v0 = vadd.f32 %v9697_v1, %v13132_v46  ;;  %9879 = vmatprep.mubr.msk.bf16.mxu1 %vm958_vm4, %v4592_v42  ;;  %v4593_v62 = vrot.slane %v10480_v29, 1  ;;  %v4595_v60 = vrot.slane %v10481_v8, 1  ;;  %v13136_v30 = vld [vmem:[#allocation13_spill] sm:$0xff] }
 0x267   : > { %9961 = vmatprep.mubr.msk.bf16.mxu0 %vm958_vm4, %v10374_v21  ;;  %v3131_v17 = vpop.f32.mrf.mxu1  ;;  %v13134_v21 = vld [vmem:[#allocation12_spill] sm:$0xff] }
 0x268   : > { %v4297_v4 = vpop.f32.mrf.mxu0  ;;  %13131 = vst [vmem:[#allocation50_spill] sm:$0xff] %v11846_v47  ;;  %v11850_v35 = vadd.f32 %v9779_v11, %v3320_v0  ;;  %v3318_v61 = vadd.f32 %v3131_v17, %v13134_v21  ;;  %v4594_v42 = vsel %vm1878_vm5, %v4591_v6, %v4593_v62  ;;  %v4596_v47 = vsel %vm1878_vm5, %v4593_v62, %v4595_v60  ;;  %v13138_v11 = vld [vmem:[#allocation14_spill] sm:$0xff] }
 0x269   : > { %v9698_v16 = vpop.f32.mrf.mxu1 }
 0x26a   : > { %v9780_v55 = vpop.f32.mrf.mxu0  ;;  %13133 = vst [vmem:[#allocation51_spill] sm:$0xff] %v11850_v35  ;;  %v11853_v2 = vadd.f32 %v4297_v4, %v3318_v61  ;;  %v3321_v1 = vadd.f32 %v9698_v16, %v13136_v30  ;;  %v10482_v61 = vld [vmem:[#allocation2 + $0x134] sm:$0xff]   ;;  %v10483_v30 = vld [vmem:[#allocation2 + $0x13c] sm:$0xff]  }
 0x26b   : > { %v3134_v46 = vpop.f32.mrf.mxu1 }
 0x26c   : > { %v4300_v7 = vpop.f32.mrf.mxu0  ;;  %13135 = vst [vmem:[#allocation52_spill] sm:$0xff] %v11853_v2  ;;  %v11859_v8 = vadd.f32 %v9780_v55, %v3321_v1  ;;  %v3319_v0 = vadd.f32 %v3134_v46, %v13138_v11  ;;  %v10377_v55 = vld [vmem:[#allocation2 + $0x140] sm:$0xff]   ;;  %v4599_v1 = vrot.slane %v10483_v30, 1  ;;  %v6002_v2 = vld [vmem:[#allocation2 + $0x2c] sm:$0xf] }
 0x26d   : > { %v9701_v17 = vpop.f32.mrf.mxu1  ;;  %9880 = vmatmul.mubr.msk.bf16.gmra.mxu1 %vm958_vm4, %v4594_v42  ;;  %v6001_v42 = vld [vmem:[#allocation2 + $0x28] sm:$0xf] }
 0x26e   : > { %v9783_v29 = vpop.f32.mrf.mxu0  ;;  %9962 = vmatmul.mubr.msk.bf16.gmra.mxu0 %vm958_vm4, %v10375_v44  ;;  %13137 = vst [vmem:[#allocation7_spill] sm:$0xff] %v11859_v8  ;;  %v11864_v21 = vadd.f32 %v4300_v7, %v3319_v0  ;;  %v3324_v6 = vadd.f32 %v9701_v17, %v11502_v63  ;;  %9883 = vmatprep.mubr.msk.bf16.mxu1 %vm958_vm4, %v4596_v47  ;;  %v4597_v44 = vrot.slane %v10482_v61, 1  ;;  %v10378_v8 = vld [vmem:[#allocation2 + $0x148] sm:$0xff]   ;;  %v13143_v63 = vld [vmem:[#allocation16_spill] sm:$0xff] }
 0x26f   : > { %9965 = vmatprep.mubr.msk.bf16.mxu0 %vm958_vm4, %v10376_v31  ;;  %v3147_v16 = vpop.f32.mrf.mxu1  ;;  %v13141_v31 = vld [vmem:[#allocation15_spill] sm:$0xff] }
 0x270   : > { %v4313_v4 = vpop.f32.mrf.mxu0  ;;  %13139 = vst [vmem:[#allocation8_spill] sm:$0xff] %v11864_v21  ;;  %v11868_v46 = vadd.f32 %v9783_v29, %v3324_v6  ;;  %v3322_v11 = vadd.f32 %v3147_v16, %v13141_v31  ;;  %v4598_v17 = vsel %vm1878_vm5, %v4595_v60, %v4597_v44  ;;  %v4600_v29 = vsel %vm1878_vm5, %v4597_v44, %v4599_v1  ;;  %v13145_v16 = vld [vmem:[#allocation17_spill] sm:$0xff]  ;;  %v7167_v44 = vld [vmem:[#allocation2 + $0x28] sm:$0xe] }
 0x271   : > { %v9702_v7 = vpop.f32.mrf.mxu1  ;;  %v8882_v6 = vcombine.low %v6001_v42, %v6002_v2 }
 0x272   : > { %v9784_v62 = vpop.f32.mrf.mxu0  ;;  %13140 = vst [vmem:[#allocation9_spill] sm:$0xff] %v11868_v46  ;;  %v11871_v21 = vadd.f32 %v4313_v4, %v3322_v11  ;;  %v3325_v47 = vadd.f32 %v9702_v7, %v13143_v63  ;;  %v10379_v63 = vld [vmem:[#allocation2 + $0x150] sm:$0xff]  }
 0x273   : > { %v3150_v61 = vpop.f32.mrf.mxu1 }
 0x274   : > { %v4316_v0 = vpop.f32.mrf.mxu0  ;;  %13142 = vst [vmem:[#allocation10_spill] sm:$0xff] %v11871_v21  ;;  %v11877_v30 = vadd.f32 %v9784_v62, %v3325_v47  ;;  %v3323_v31 = vadd.f32 %v3150_v61, %v13145_v16  ;;  %v10485_v47 = vld [vmem:[#allocation2 + $0x14c] sm:$0xff]  }
 0x275   : > { %v9705_v46 = vpop.f32.mrf.mxu1  ;;  %9884 = vmatmul.mubr.msk.bf16.gmra.mxu1 %vm958_vm4, %v4598_v17  ;;  %v4603_v61 = vrot.slane %v10485_v47, 1  ;;  %v11886_v16 = vld [vmem:[#allocation2 + $0x30] sm:$0xff]   ;;  %v10380_v17 = vld [vmem:[#allocation2 + $0x158] sm:$0xff]  }
 0x276   : > { %v9787_v35 = vpop.f32.mrf.mxu0  ;;  %9966 = vmatmul.mubr.msk.bf16.gmra.mxu0 %vm958_vm4, %v10377_v55  ;;  %13144 = vst [vmem:[#allocation11_spill] sm:$0xff] %v11877_v30  ;;  %v11882_v11 = vadd.f32 %v4316_v0, %v3323_v31  ;;  %v3328_v60 = vadd.f32 %v9705_v46, %v11521_v50  ;;  %9887 = vmatprep.mubr.msk.bf16.mxu1 %vm958_vm4, %v4600_v29  ;;  %v10484_v55 = vld [vmem:[#allocation2 + $0x144] sm:$0xff]  }
 0x277   : > { %9969 = vmatprep.mubr.msk.bf16.mxu0 %vm958_vm4, %v10378_v8  ;;  %v4601_v7 = vrot.slane %v10484_v55, 1  ;;  %v3163_v42 = vpop.f32.mrf.mxu1  ;;  %v6290_v8 = vshll.u32 %v8882_v6, 16  ;;  %v8964_v46 = vcombine.low %v7167_v44, %v6002_v2  ;;  %v7174_v44 = vrot.slane %v11886_v16, 1 }
 0x278   : > { %v4329_v4 = vpop.f32.mrf.mxu0  ;;  %13146 = vst [vmem:[#allocation12_spill] sm:$0xff] %v11882_v11  ;;  %v11888_v30 = vadd.f32 %v9787_v35, %v3328_v60  ;;  %v3326_v0 = vadd.f32 %v3163_v42, %v11525_v15  ;;  %v6288_v35 = vshrl.u32 %v8882_v6, 16  ;;  %v6295_v15 = vshll.u32 %v11886_v16, 16 }
 0x279   : > { %v9706_v31 = vpop.f32.mrf.mxu1  ;;  %v4602_v11 = vsel %vm1878_vm5, %v4599_v1, %v4601_v7  ;;  %v4604_v47 = vsel %vm1878_vm5, %v4601_v7, %v4603_v61  ;;  %v6292_v60 = vrot.slane %v6290_v8, 1  ;;  %v7173_v1 = vrot.slane %v8964_v46, 1  ;;  %v10486_v7 = vld [vmem:[#allocation2 + $0x154] ss:$0 sps:$4 sm:$0x11]   ;;  %v13151_v46 = vld [vmem:[#allocation18_spill] sm:$0xff] }
 0x27a   : > { %v9788_v62 = vpop.f32.mrf.mxu0  ;;  %v11891_v29 = vadd.f32 %v4329_v4, %v3326_v0  ;;  %v3329_v55 = vadd.f32 %v9706_v31, %v11529_v39  ;;  %v6297_v31 = vrot.slane %v6295_v15, 1 }
 0x27b   : > { %v3166_v21 = vpop.f32.mrf.mxu1 }
 0x27c   : > { %v4332_v50 = vpop.f32.mrf.mxu0  ;;  %13147 = vst [vmem:[#allocation13_spill] sm:$0xff] %v11891_v29  ;;  %v11898_v42 = vadd.f32 %v9788_v62, %v3329_v55  ;;  %v3327_v2 = vadd.f32 %v3166_v21, %v11534_v57  ;;  %v4605_v62 = vrot.slane %v10486_v7, 1  ;;  %v10381_v21 = vld [vmem:[#allocation2 + $0x160] sm:$0xff]  }
 0x27d   : > { %v9709_v4 = vpop.f32.mrf.mxu1  ;;  %9888 = vmatmul.mubr.msk.bf16.gmra.mxu1 %vm958_vm4, %v4602_v11  ;;  %v11908_v55 = vld [vmem:[#allocation2 + $0x40] sm:$0xff]  }
 0x27e   : > { %v9791_v38 = vpop.f32.mrf.mxu0  ;;  %9970 = vmatmul.mubr.msk.bf16.gmra.mxu0 %vm958_vm4, %v10379_v63  ;;  %13148 = vst [vmem:[#allocation14_spill] sm:$0xff] %v11898_v42  ;;  %v10385_v63 = vld [vmem:[#allocation2 + $0x38] sm:$0xff]   ;;  %v11904_v0 = vadd.f32 %v4332_v50, %v3327_v2  ;;  %v3332_v6 = vadd.f32 %v9709_v4, %v11538_v41  ;;  %9891 = vmatprep.mubr.msk.bf16.mxu1 %vm958_vm4, %v4604_v47  ;;  %v13153_v47 = vld [vmem:[#allocation19_spill] sm:$0xff] }
 0x27f   : > { %9973 = vmatprep.mubr.msk.bf16.mxu0 %vm958_vm4, %v10380_v17  ;;  %v3179_v8 = vpop.f32.mrf.mxu1  ;;  %v6293_v17 = vor.u32 %v6292_v60, %v6288_v35  ;;  %v7175_v2 = vsel %vm1878_vm5, %v7173_v1, %v7174_v44  ;;  %v6303_v41 = vshll.u32 %v10385_v63, 16  ;;  %v6299_v35 = vshrl.u32 %v11886_v16, 16  ;;  %v13155_v1 = vld [vmem:[#allocation20_spill] sm:$0xff] }
 0x280   : > { %v4345_v39 = vpop.f32.mrf.mxu0  ;;  %13149 = vst [vmem:[#allocation15_spill] sm:$0xff] %v11904_v0  ;;  %v11910_v11 = vadd.f32 %v9791_v38, %v3332_v6  ;;  %v3330_v42 = vadd.f32 %v3179_v8, %v13151_v46  ;;  %v4606_v0 = vsel %vm1878_vm5, %v4603_v61, %v4605_v62  ;;  %v6307_v6 = vshrl.u32 %v10385_v63, 16 }
 0x281   : > { %v9710_v29 = vpop.f32.mrf.mxu1  ;;  %v6298_v38 = vsel %vm633_vm3, %v6293_v17, %v6297_v31  ;;  %v6311_v8 = vshll.u32 %v11908_v55, 16  ;;  %v6305_v16 = vrot.slane %v6303_v41, 1  ;;  %v7178_v62 = vrot.slane %v11908_v55, 1 }
 0x282   : > { %v9792_v57 = vpop.f32.mrf.mxu0  ;;  %13150 = vst [vmem:[#allocation16_spill] sm:$0xff] %v11910_v11  ;;  %v11914_v4 = vadd.f32 %v4345_v39, %v3330_v42  ;;  %v3333_v7 = vadd.f32 %v9710_v29, %v13153_v47  ;;  %v7176_v29 = vrot.slane %v10385_v63, 1  ;;  %v11932_v63 = vld [vmem:[#allocation2 + $0x50] sm:$0xff]  }
 0x283   : > { %v3182_v60 = vpop.f32.mrf.mxu1 }
 0x284   : > { %v4348_v50 = vpop.f32.mrf.mxu0  ;;  %13152 = vst [vmem:[#allocation17_spill] sm:$0xff] %v11914_v4  ;;  %v11922_v46 = vadd.f32 %v9792_v57, %v3333_v7  ;;  %v3331_v42 = vadd.f32 %v3182_v60, %v13155_v1  ;;  %v6301_v4 = vor.u32 %v6299_v35, %v6297_v31  ;;  %v6309_v60 = vor.u32 %v6307_v6, %v6305_v16  ;;  %v13160_v35 = vld [vmem:[#allocation22_spill] sm:$0xff] }
 0x285   : > { %v9713_v39 = vpop.f32.mrf.mxu1  ;;  %9892 = vmatmul.mubr.msk.bf16.gmra.mxu1 %vm958_vm4, %v4606_v0  ;;  %v13158_v0 = vld [vmem:[#allocation21_spill] sm:$0xff] }
 0x286   : > { %v9795_v15 = vpop.f32.mrf.mxu0  ;;  %9974 = vmatmul.mubr.msk.bf16.gmra.mxu0 %vm958_vm4, %v10381_v21  ;;  %13154 = vst [vmem:[#allocation18_spill] sm:$0xff] %v11922_v46  ;;  %v10387_v21 = vld [vmem:[#allocation2 + $0x48] sm:$0xff]   ;;  %v11928_v47 = vadd.f32 %v4348_v50, %v3331_v42  ;;  %v3336_v17 = vadd.f32 %v9713_v39, %v11556_v59  ;;  %9979 = vmatprep.mubr.msk.bf16.mxu1 %vm958_vm4, %v6298_v38 }
 0x287   : > { %10061 = vmatprep.mubr.msk.bf16.mxu0 %vm958_vm4, %v7175_v2  ;;  %v3195_v57 = vpop.f32.mrf.mxu1  ;;  %v6313_v2 = vrot.slane %v6311_v8, 1  ;;  %v7177_v46 = vsel %vm1878_vm5, %v7174_v44, %v7176_v29  ;;  %v7179_v42 = vsel %vm1878_vm5, %v7176_v29, %v7178_v62  ;;  %v6319_v59 = vshll.u32 %v10387_v21, 16  ;;  %v13162_v29 = vld [vmem:[#allocation23_spill] sm:$0xff] }
 0x288   : > { %v4361_v61 = vpop.f32.mrf.mxu0  ;;  %13156 = vst [vmem:[#allocation19_spill] sm:$0xff] %v11928_v47  ;;  %v11934_v1 = vadd.f32 %v9795_v15, %v3336_v17  ;;  %v3334_v41 = vadd.f32 %v3195_v57, %v13158_v0  ;;  %v6306_v6 = vsel %vm633_vm3, %v6301_v4, %v6305_v16  ;;  %v6315_v8 = vshrl.u32 %v11908_v55, 16 }
 0x289   : > { %v9714_v11 = vpop.f32.mrf.mxu1  ;;  %v6314_v17 = vsel %vm633_vm3, %v6309_v60, %v6313_v2  ;;  %v6323_v44 = vshrl.u32 %v10387_v21, 16  ;;  %v6327_v57 = vshll.u32 %v11932_v63, 16  ;;  %v6321_v4 = vrot.slane %v6319_v59, 1  ;;  %v13164_v60 = vld [vmem:[#allocation24_spill] sm:$0xff] }
 0x28a   : > { %v9796_v7 = vpop.f32.mrf.mxu0  ;;  %13157 = vst [vmem:[#allocation20_spill] sm:$0xff] %v11934_v1  ;;  %v11939_v31 = vadd.f32 %v4361_v61, %v3334_v41  ;;  %v3337_v38 = vadd.f32 %v9714_v11, %v13160_v35  ;;  %v7180_v11 = vrot.slane %v10387_v21, 1  ;;  %v7182_v16 = vrot.slane %v11932_v63, 1  ;;  %v11957_v21 = vld [vmem:[#allocation2 + $0x60] sm:$0xff]  }
 0x28b   : > { %v3198_v39 = vpop.f32.mrf.mxu1  ;;  %v6317_v1 = vor.u32 %v6315_v8, %v6313_v2  ;;  %v13168_v8 = vld [vmem:[#allocation26_spill] sm:$0xff] }
 0x28c   : > { %v4364_v50 = vpop.f32.mrf.mxu0  ;;  %13159 = vst [vmem:[#allocation21_spill] sm:$0xff] %v11939_v31  ;;  %v11947_v0 = vadd.f32 %v9796_v7, %v3337_v38  ;;  %v3335_v61 = vadd.f32 %v3198_v39, %v13162_v29  ;;  %v6325_v39 = vor.u32 %v6323_v44, %v6321_v4 }
 0x28d   : > { %v9717_v41 = vpop.f32.mrf.mxu1  ;;  %9980 = vmatmul.mubr.msk.bf16.vlgmr.msra.gmra.mxu1 %vm958_vm4, %v6306_v6  ;;  %v13166_v6 = vld [vmem:[#allocation25_spill] sm:$0xff]  ;;  %v6322_v44 = vsel %vm633_vm3, %v6317_v1, %v6321_v4  ;;  %v7186_v4 = vrot.slane %v11957_v21, 1 }
 0x28e   : > { %v9799_v15 = vpop.f32.mrf.mxu0  ;;  %10062 = vmatmul.mubr.msk.bf16.vlgmr.msra.gmra.mxu0 %vm958_vm4, %v7177_v46  ;;  %13161 = vst [vmem:[#allocation22_spill] sm:$0xff] %v11947_v0  ;;  %v10389_v46 = vld [vmem:[#allocation2 + $0x58] sm:$0xff]   ;;  %v11953_v35 = vadd.f32 %v4364_v50, %v3335_v61  ;;  %v3340_v31 = vadd.f32 %v9717_v41, %v13164_v60  ;;  %9983 = vmatprep.mubr.msk.bf16.mxu1 %vm958_vm4, %v6314_v17 }
 0x28f   : > { %10065 = vmatprep.mubr.msk.bf16.mxu0 %vm958_vm4, %v7179_v42  ;;  %v3211_v7 = vpop.f32.mrf.mxu1  ;;  %v6329_v42 = vrot.slane %v6327_v57, 1  ;;  %v7181_v0 = vsel %vm1878_vm5, %v7178_v62, %v7180_v11  ;;  %v7183_v61 = vsel %vm1878_vm5, %v7180_v11, %v7182_v16  ;;  %v6335_v41 = vshll.u32 %v10389_v46, 16  ;;  %v13170_v11 = vld [vmem:[#allocation27_spill] sm:$0xff] }
 0x290   : > { %v4377_v55 = vpop.f32.mrf.mxu0  ;;  %13163 = vst [vmem:[#allocation23_spill] sm:$0xff] %v11953_v35  ;;  %v11959_v29 = vadd.f32 %v9799_v15, %v3340_v31  ;;  %v3338_v59 = vadd.f32 %v3211_v7, %v13166_v6  ;;  %v6331_v57 = vshrl.u32 %v11932_v63, 16  ;;  %v6339_v62 = vshrl.u32 %v10389_v46, 16 }
 0x291   : > { %v9718_v47 = vpop.f32.mrf.mxu1  ;;  %v6330_v15 = vsel %vm633_vm3, %v6325_v39, %v6329_v42  ;;  %v6343_v7 = vshll.u32 %v11957_v21, 16  ;;  %v6337_v1 = vrot.slane %v6335_v41, 1  ;;  %v13172_v39 = vld [vmem:[#allocation28_spill] sm:$0xff] }
 0x292   : > { %v9800_v38 = vpop.f32.mrf.mxu0  ;;  %13165 = vst [vmem:[#allocation24_spill] sm:$0xff] %v11959_v29  ;;  %v11964_v2 = vadd.f32 %v4377_v55, %v3338_v59  ;;  %v3341_v17 = vadd.f32 %v9718_v47, %v13168_v8  ;;  %v7184_v47 = vrot.slane %v10389_v46, 1  ;;  %v6333_v29 = vor.u32 %v6331_v57, %v6329_v42  ;;  %v11982_v46 = vld [vmem:[#allocation2 + $0x70] sm:$0xff]  }
 0x293   : > { %v3214_v60 = vpop.f32.mrf.mxu1 }
 0x294   : > { %v4380_v50 = vpop.f32.mrf.mxu0  ;;  %13167 = vst [vmem:[#allocation25_spill] sm:$0xff] %v11964_v2  ;;  %v11972_v6 = vadd.f32 %v9800_v38, %v3341_v17  ;;  %v3339_v55 = vadd.f32 %v3214_v60, %v13170_v11  ;;  %v6341_v60 = vor.u32 %v6339_v62, %v6337_v1  ;;  %v10569_v11 = vmov 0   ;;  %v13176_v62 = vld [vmem:[#allocation30_spill] sm:$0xff] }
 0x295   : > { %v9721_v59 = vpop.f32.mrf.mxu1  ;;  %9984 = vmatmul.mubr.msk.bf16.gmra.mxu1 %vm958_vm4, %v6322_v44  ;;  %345 = vst.msk [vmem:[#allocation2 + $0x168] sm:$0xf] %vm338_vm1, %v10569_v11  ;;  %v13174_v44 = vld [vmem:[#allocation29_spill] sm:$0xff]  ;;  %v7187_v42 = vsel %vm1878_vm5, %v7184_v47, %v7186_v4 }
 0x296   : > { %v9803_v31 = vpop.f32.mrf.mxu0  ;;  %10066 = vmatmul.mubr.msk.bf16.gmra.mxu0 %vm958_vm4, %v7181_v0  ;;  %13169 = vst [vmem:[#allocation26_spill] sm:$0xff] %v11972_v6  ;;  %v10391_v0 = vld [vmem:[#allocation2 + $0x68] sm:$0xff]   ;;  %v11978_v8 = vadd.f32 %v4380_v50, %v3339_v55  ;;  %v3344_v2 = vadd.f32 %v9721_v59, %v13172_v39  ;;  %9987 = vmatprep.mubr.msk.bf16.mxu1 %vm958_vm4, %v6330_v15 }
 0x297   : > { %10069 = vmatprep.mubr.msk.bf16.mxu0 %vm958_vm4, %v7183_v61  ;;  %v3227_v38 = vpop.f32.mrf.mxu1  ;;  %v6345_v61 = vrot.slane %v6343_v7, 1  ;;  %v7185_v50 = vsel %vm1878_vm5, %v7182_v16, %v7184_v47  ;;  %v6351_v57 = vshll.u32 %v10391_v0, 16  ;;  %v6338_v39 = vsel %vm633_vm3, %v6333_v29, %v6337_v1  ;;  %v13178_v47 = vld [vmem:[#allocation31_spill] sm:$0xff] }
 0x298   : > { %v4393_v63 = vpop.f32.mrf.mxu0  ;;  %13171 = vst [vmem:[#allocation27_spill] sm:$0xff] %v11978_v8  ;;  %v11985_v41 = vadd.f32 %v9803_v31, %v3344_v2  ;;  %v3342_v6 = vadd.f32 %v3227_v38, %v13174_v44  ;;  %v6347_v8 = vshrl.u32 %v11957_v21, 16  ;;  %v6355_v16 = vshrl.u32 %v10391_v0, 16 }
 0x299   : > { %v9722_v55 = vpop.f32.mrf.mxu1  ;;  %v6346_v31 = vsel %vm633_vm3, %v6341_v60, %v6345_v61  ;;  %v6359_v38 = vshll.u32 %v11982_v46, 16  ;;  %v6353_v29 = vrot.slane %v6351_v57, 1  ;;  %v7190_v1 = vrot.slane %v11982_v46, 1  ;;  %v13180_v60 = vld [vmem:[#allocation32_spill] sm:$0xff] }
 0x29a   : > { %v9804_v17 = vpop.f32.mrf.mxu0  ;;  %13173 = vst [vmem:[#allocation28_spill] sm:$0xff] %v11985_v41  ;;  %v11990_v15 = vadd.f32 %v4393_v63, %v3342_v6  ;;  %v3345_v7 = vadd.f32 %v9722_v55, %v13176_v62  ;;  %v7188_v63 = vrot.slane %v10391_v0, 1  ;;  %v6349_v41 = vor.u32 %v6347_v8, %v6345_v61  ;;  %v12008_v0 = vld [vmem:[#allocation2 + $0x80] sm:$0xff]  }
 0x29b   : > { %v3230_v11 = vpop.f32.mrf.mxu1  ;;  %v13184_v61 = vld [vmem:[#allocation34_spill] sm:$0xff] }
 0x29c   : > { %v4396_v59 = vpop.f32.mrf.mxu0  ;;  %13175 = vst [vmem:[#allocation29_spill] sm:$0xff] %v11990_v15  ;;  %v11998_v44 = vadd.f32 %v9804_v17, %v3345_v7  ;;  %v3343_v6 = vadd.f32 %v3230_v11, %v13178_v47  ;;  %v6357_v11 = vor.u32 %v6355_v16, %v6353_v29  ;;  %v6354_v16 = vsel %vm633_vm3, %v6349_v41, %v6353_v29 }
 0x29d   : > { %v9725_v55 = vpop.f32.mrf.mxu1  ;;  %9988 = vmatmul.mubr.msk.bf16.gmra.mxu1 %vm958_vm4, %v6338_v39  ;;  %v13182_v39 = vld [vmem:[#allocation33_spill] sm:$0xff]  ;;  %v7194_v29 = vrot.slane %v12008_v0, 1 }
 0x29e   : > { %v9807_v2 = vpop.f32.mrf.mxu0  ;;  %10070 = vmatmul.mubr.msk.bf16.gmra.mxu0 %vm958_vm4, %v7185_v50  ;;  %13177 = vst [vmem:[#allocation30_spill] sm:$0xff] %v11998_v44  ;;  %v10393_v50 = vld [vmem:[#allocation2 + $0x78] sm:$0xff]   ;;  %v12004_v62 = vadd.f32 %v4396_v59, %v3343_v6  ;;  %v3348_v15 = vadd.f32 %v9725_v55, %v13180_v60  ;;  %9991 = vmatprep.mubr.msk.bf16.mxu1 %vm958_vm4, %v6346_v31 }
 0x29f   : > { %10073 = vmatprep.mubr.msk.bf16.mxu0 %vm958_vm4, %v7187_v42  ;;  %v3243_v17 = vpop.f32.mrf.mxu1  ;;  %v6361_v42 = vrot.slane %v6359_v38, 1  ;;  %v7189_v44 = vsel %vm1878_vm5, %v7186_v4, %v7188_v63  ;;  %v7191_v6 = vsel %vm1878_vm5, %v7188_v63, %v7190_v1  ;;  %v6367_v55 = vshll.u32 %v10393_v50, 16  ;;  %v13186_v63 = vld [vmem:[#allocation35_spill] sm:$0xff] }
 0x2a0   : > { %v4409_v21 = vpop.f32.mrf.mxu0  ;;  %13179 = vst [vmem:[#allocation31_spill] sm:$0xff] %v12004_v62  ;;  %v12010_v47 = vadd.f32 %v9807_v2, %v3348_v15  ;;  %v3346_v57 = vadd.f32 %v3243_v17, %v13182_v39  ;;  %v6363_v38 = vshrl.u32 %v11982_v46, 16  ;;  %v6371_v4 = vshrl.u32 %v10393_v50, 16 }
 0x2a1   : > { %v9726_v35 = vpop.f32.mrf.mxu1  ;;  %v6362_v2 = vsel %vm633_vm3, %v6357_v11, %v6361_v42  ;;  %v6375_v17 = vshll.u32 %v12008_v0, 16  ;;  %v6369_v41 = vrot.slane %v6367_v55, 1  ;;  %v13187_v11 = vld [vmem:[#allocation36_spill] sm:$0xff] }
 0x2a2   : > { %v9808_v7 = vpop.f32.mrf.mxu0  ;;  %13181 = vst [vmem:[#allocation32_spill] sm:$0xff] %v12010_v47  ;;  %v12015_v8 = vadd.f32 %v4409_v21, %v3346_v57  ;;  %v3349_v31 = vadd.f32 %v9726_v35, %v13184_v61  ;;  %v7192_v35 = vrot.slane %v10393_v50, 1  ;;  %v6365_v47 = vor.u32 %v6363_v38, %v6361_v42  ;;  %v12033_v50 = vld [vmem:[#allocation2 + $0x90] sm:$0xff]   ;;  %v13189_v38 = vld [vmem:[#allocation38_spill] sm:$0xff] }
 0x2a3   : > { %v3246_v60 = vpop.f32.mrf.mxu1 }
 0x2a4   : > { %v4412_v59 = vpop.f32.mrf.mxu0  ;;  %13183 = vst [vmem:[#allocation33_spill] sm:$0xff] %v12015_v8  ;;  %v12023_v39 = vadd.f32 %v9808_v7, %v3349_v31  ;;  %v3347_v21 = vadd.f32 %v3246_v60, %v13186_v63  ;;  %v6373_v60 = vor.u32 %v6371_v4, %v6369_v41  ;;  %v6370_v4 = vsel %vm633_vm3, %v6365_v47, %v6369_v41 }
 0x2a5   : > { %v9729_v57 = vpop.f32.mrf.mxu1  ;;  %9992 = vmatmul.mubr.msk.bf16.gmra.mxu1 %vm958_vm4, %v6354_v16  ;;  %v13188_v16 = vld [vmem:[#allocation37_spill] sm:$0xff]  ;;  %v7198_v41 = vrot.slane %v12033_v50, 1 }
 0x2a6   : > { %v9811_v15 = vpop.f32.mrf.mxu0  ;;  %10074 = vmatmul.mubr.msk.bf16.gmra.mxu0 %vm958_vm4, %v7189_v44  ;;  %13185 = vst [vmem:[#allocation34_spill] sm:$0xff] %v12023_v39  ;;  %v10395_v44 = vld [vmem:[#allocation2 + $0x88] sm:$0xff]   ;;  %v12029_v61 = vadd.f32 %v4412_v59, %v3347_v21  ;;  %v3352_v8 = vadd.f32 %v9729_v57, %v13187_v11  ;;  %9995 = vmatprep.mubr.msk.bf16.mxu1 %vm958_vm4, %v6362_v2 }
 0x2a7   : > { %10077 = vmatprep.mubr.msk.bf16.mxu0 %vm958_vm4, %v7191_v6  ;;  %v3259_v7 = vpop.f32.mrf.mxu1  ;;  %v6377_v6 = vrot.slane %v6375_v17, 1  ;;  %v7193_v39 = vsel %vm1878_vm5, %v7190_v1, %v7192_v35  ;;  %v7195_v21 = vsel %vm1878_vm5, %v7192_v35, %v7194_v29  ;;  %v6383_v57 = vshll.u32 %v10395_v44, 16 }
 0x2a8   : > { %v4425_v46 = vpop.f32.mrf.mxu0  ;;  %v12035_v63 = vadd.f32 %v9811_v15, %v3352_v8  ;;  %v3350_v55 = vadd.f32 %v3259_v7, %v13188_v16  ;;  %v6379_v17 = vshrl.u32 %v12008_v0, 16  ;;  %v6387_v1 = vshrl.u32 %v10395_v44, 16 }
 0x2a9   : > { %v9730_v62 = vpop.f32.mrf.mxu1  ;;  %v6378_v15 = vsel %vm633_vm3, %v6373_v60, %v6377_v6  ;;  %v6391_v7 = vshll.u32 %v12033_v50, 16  ;;  %v6385_v47 = vrot.slane %v6383_v57, 1 }
 0x2aa   : > { %v9812_v31 = vpop.f32.mrf.mxu0  ;;  %v12040_v42 = vadd.f32 %v4425_v46, %v3350_v55  ;;  %v3353_v2 = vadd.f32 %v9730_v62, %v13189_v38  ;;  %v7196_v62 = vrot.slane %v10395_v44, 1  ;;  %v6381_v38 = vor.u32 %v6379_v17, %v6377_v6  ;;  %v12058_v44 = vld [vmem:[#allocation2 + $0xa0] sm:$0xff]  }
 0x2ab   : > { %v3262_v11 = vpop.f32.mrf.mxu1 }
 0x2ac   : > { %v4428_v59 = vpop.f32.mrf.mxu0  ;;  %v12048_v16 = vadd.f32 %v9812_v31, %v3353_v2  ;;  %v3351_v35 = vadd.f32 %v3262_v11, %v11648_v9  ;;  %v6389_v2 = vor.u32 %v6387_v1, %v6385_v47  ;;  %v6395_v1 = vshrl.u32 %v12033_v50, 16 }
 0x2ad   : > { %v9817_v46 = vpop.f32.mrf.mxu1  ;;  %9996 = vmatmul.mubr.msk.bf16.gmra.mxu1 %vm958_vm4, %v6370_v4  ;;  %v7197_v4 = vsel %vm1878_vm5, %v7194_v29, %v7196_v62 }
 0x2ae   : > { %v9899_v8 = vpop.f32.mrf.mxu0  ;;  %10078 = vmatmul.mubr.msk.bf16.gmra.mxu0 %vm958_vm4, %v7193_v39  ;;  %13190 = vst [vmem:[#allocation35_spill] sm:$0xff] %v12048_v16  ;;  %v10397_v39 = vld [vmem:[#allocation2 + $0x98] sm:$0xff]   ;;  %v12054_v55 = vadd.f32 %v4428_v59, %v3351_v35  ;;  %v5085_v60 = vadd.f32 %v9817_v46, %v11652_v22  ;;  %9999 = vmatprep.mubr.msk.bf16.mxu1 %vm958_vm4, %v6378_v15  ;;  %v6407_v46 = vshll.u32 %v12058_v44, 16 }
 0x2af   : > { %10081 = vmatprep.mubr.msk.bf16.mxu0 %vm958_vm4, %v7195_v21  ;;  %v4764_v31 = vpop.f32.mrf.mxu1  ;;  %v6393_v21 = vrot.slane %v6391_v7, 1  ;;  %v7199_v35 = vsel %vm1878_vm5, %v7196_v62, %v7198_v41  ;;  %v6399_v22 = vshll.u32 %v10397_v39, 16  ;;  %v6386_v15 = vsel %vm633_vm3, %v6381_v38, %v6385_v47  ;;  %v10399_v38 = vld [vmem:[#allocation2 + $0xa8] sm:$0xff]  }
 0x2b0   : > { %v5602_v0 = vpop.f32.mrf.mxu0  ;;  %v12060_v11 = vadd.f32 %v9899_v8, %v5085_v60  ;;  %v5083_v57 = vadd.f32 %v4764_v31, %v11655_v26  ;;  %v6403_v29 = vshrl.u32 %v10397_v39, 16  ;;  %v7202_v47 = vrot.slane %v12058_v44, 1 }
 0x2b1   : > { %v9818_v16 = vpop.f32.mrf.mxu1  ;;  %v6394_v26 = vsel %vm633_vm3, %v6389_v2, %v6393_v21 }
 0x2b2   : > { %v9900_v9 = vpop.f32.mrf.mxu0  ;;  %v12065_v6 = vadd.f32 %v5602_v0, %v5083_v57  ;;  %v5086_v17 = vadd.f32 %v9818_v16, %v11661_v36  ;;  %v7200_v36 = vrot.slane %v10397_v39, 1  ;;  %v6401_v0 = vrot.slane %v6399_v22, 1  ;;  %v12083_v39 = vld [vmem:[#allocation2 + $0xb0] sm:$0xff]  }
 0x2b3   : > { %v4767_v7 = vpop.f32.mrf.mxu1  ;;  %v6397_v57 = vor.u32 %v6395_v1, %v6393_v21  ;;  %v13191_v1 = vld [vmem:[#allocation39_spill] sm:$0xff] }
 0x2b4   : > { %v5605_v59 = vpop.f32.mrf.mxu0  ;;  %v12073_v60 = vadd.f32 %v9900_v9, %v5086_v17  ;;  %v5084_v62 = vadd.f32 %v4767_v7, %v11666_v53 }
 0x2b5   : > { %v9821_v16 = vpop.f32.mrf.mxu1  ;;  %10000 = vmatmul.mubr.msk.bf16.gmra.mxu1 %vm958_vm4, %v6386_v15  ;;  %v7201_v15 = vsel %vm1878_vm5, %v7198_v41, %v7200_v36  ;;  %v6419_v41 = vshrl.u32 %v10399_v38, 16 }
 0x2b6   : > { %v9903_v8 = vpop.f32.mrf.mxu0  ;;  %10082 = vmatmul.mubr.msk.bf16.gmra.mxu0 %vm958_vm4, %v7197_v4  ;;  %v12079_v31 = vadd.f32 %v5605_v59, %v5084_v62  ;;  %v5089_v2 = vadd.f32 %v9821_v16, %v11670_v12  ;;  %10003 = vmatprep.mubr.msk.bf16.mxu1 %vm958_vm4, %v6394_v26  ;;  %v6405_v4 = vor.u32 %v6403_v29, %v6401_v0  ;;  %v6415_v12 = vshll.u32 %v10399_v38, 16 }
 0x2b7   : > { %10085 = vmatprep.mubr.msk.bf16.mxu0 %vm958_vm4, %v7199_v35  ;;  %v4780_v9 = vpop.f32.mrf.mxu1  ;;  %v6409_v35 = vrot.slane %v6407_v46, 1  ;;  %v7203_v62 = vsel %vm1878_vm5, %v7200_v36, %v7202_v47  ;;  %v6402_v29 = vsel %vm633_vm3, %v6397_v57, %v6401_v0  ;;  %v6411_v46 = vshrl.u32 %v12058_v44, 16 }
 0x2b8   : > { %v5618_v50 = vpop.f32.mrf.mxu0  ;;  %v12085_v17 = vadd.f32 %v9903_v8, %v5089_v2  ;;  %v5087_v22 = vadd.f32 %v4780_v9, %v11673_v56  ;;  %v6423_v2 = vshll.u32 %v12083_v39, 16  ;;  %v6417_v0 = vrot.slane %v6415_v12, 1 }
 0x2b9   : > { %v9822_v7 = vpop.f32.mrf.mxu1  ;;  %v6410_v56 = vsel %vm633_vm3, %v6405_v4, %v6409_v35  ;;  %v7206_v57 = vrot.slane %v12083_v39, 1 }
 0x2ba   : > { %v9904_v53 = vpop.f32.mrf.mxu0  ;;  %v12090_v21 = vadd.f32 %v5618_v50, %v5087_v22  ;;  %v5090_v26 = vadd.f32 %v9822_v7, %v13191_v1  ;;  %v7204_v50 = vrot.slane %v10399_v38, 1  ;;  %v6413_v1 = vor.u32 %v6411_v46, %v6409_v35  ;;  %v12108_v38 = vld [vmem:[#allocation2 + $0xc0] sm:$0xff]  }
 0x2bb   : > { %v4783_v16 = vpop.f32.mrf.mxu1 }
 0x2bc   : > { %v5621_v59 = vpop.f32.mrf.mxu0  ;;  %v12098_v9 = vadd.f32 %v9904_v53, %v5090_v26  ;;  %v5088_v36 = vadd.f32 %v4783_v16, %v11684_v45  ;;  %v6421_v26 = vor.u32 %v6419_v41, %v6417_v0  ;;  %v6427_v41 = vshrl.u32 %v12083_v39, 16 }
 0x2bd   : > { %v9825_v22 = vpop.f32.mrf.mxu1  ;;  %10004 = vmatmul.mubr.msk.bf16.gmra.mxu1 %vm958_vm4, %v6402_v29  ;;  %v7205_v29 = vsel %vm1878_vm5, %v7202_v47, %v7204_v50 }
 0x2be   : > { %v9907_v8 = vpop.f32.mrf.mxu0  ;;  %10086 = vmatmul.mubr.msk.bf16.gmra.mxu0 %vm958_vm4, %v7201_v15  ;;  %13192 = vst [vmem:[#allocation36_spill] sm:$0xff] %v12098_v9  ;;  %v10401_v15 = vld [vmem:[#allocation2 + $0xb8] sm:$0xff]   ;;  %v12104_v7 = vadd.f32 %v5621_v59, %v5088_v36  ;;  %v5093_v4 = vadd.f32 %v9825_v22, %v11688_v58  ;;  %10007 = vmatprep.mubr.msk.bf16.mxu1 %vm958_vm4, %v6410_v56  ;;  %v6439_v22 = vshll.u32 %v12108_v38, 16 }
 0x2bf   : > { %10089 = vmatprep.mubr.msk.bf16.mxu0 %vm958_vm4, %v7203_v62  ;;  %v4796_v53 = vpop.f32.mrf.mxu1  ;;  %v6425_v62 = vrot.slane %v6423_v2, 1  ;;  %v7207_v36 = vsel %vm1878_vm5, %v7204_v50, %v7206_v57  ;;  %v6431_v58 = vshll.u32 %v10401_v15, 16  ;;  %v6418_v56 = vsel %vm633_vm3, %v6413_v1, %v6417_v0  ;;  %v10403_v1 = vld [vmem:[#allocation2 + $0xc8] sm:$0xff]  }
 0x2c0   : > { %v5634_v44 = vpop.f32.mrf.mxu0  ;;  %v12110_v16 = vadd.f32 %v9907_v8, %v5093_v4  ;;  %v5091_v12 = vadd.f32 %v4796_v53, %v11691_v32  ;;  %v6435_v47 = vshrl.u32 %v10401_v15, 16  ;;  %v7210_v0 = vrot.slane %v12108_v38, 1 }
 0x2c1   : > { %v9826_v9 = vpop.f32.mrf.mxu1  ;;  %v6426_v32 = vsel %vm633_vm3, %v6421_v26, %v6425_v62 }
 0x2c2   : > { %v9908_v45 = vpop.f32.mrf.mxu0  ;;  %v12115_v35 = vadd.f32 %v5634_v44, %v5091_v12  ;;  %v5094_v46 = vadd.f32 %v9826_v9, %v11697_v40  ;;  %v7208_v40 = vrot.slane %v10401_v15, 1  ;;  %v6433_v44 = vrot.slane %v6431_v58, 1  ;;  %v12133_v15 = vld [vmem:[#allocation2 + $0xd0] sm:$0xff]  }
 0x2c3   : > { %v4799_v2 = vpop.f32.mrf.mxu1  ;;  %v6429_v12 = vor.u32 %v6427_v41, %v6425_v62 }
 0x2c4   : > { %v5637_v59 = vpop.f32.mrf.mxu0  ;;  %v12123_v4 = vadd.f32 %v9908_v45, %v5094_v46  ;;  %v5092_v50 = vadd.f32 %v4799_v2, %v11702_v19 }
 0x2c5   : > { %v9829_v9 = vpop.f32.mrf.mxu1  ;;  %10008 = vmatmul.mubr.msk.bf16.gmra.mxu1 %vm958_vm4, %v6418_v56  ;;  %v7209_v56 = vsel %vm1878_vm5, %v7206_v57, %v7208_v40  ;;  %v6451_v57 = vshrl.u32 %v10403_v1, 16 }
 0x2c6   : > { %v9911_v8 = vpop.f32.mrf.mxu0  ;;  %10090 = vmatmul.mubr.msk.bf16.gmra.mxu0 %vm958_vm4, %v7205_v29  ;;  %v12129_v53 = vadd.f32 %v5637_v59, %v5092_v50  ;;  %v5097_v26 = vadd.f32 %v9829_v9, %v11706_v33  ;;  %10011 = vmatprep.mubr.msk.bf16.mxu1 %vm958_vm4, %v6426_v32  ;;  %v6437_v29 = vor.u32 %v6435_v47, %v6433_v44  ;;  %v6447_v33 = vshll.u32 %v10403_v1, 16 }
 0x2c7   : > { %10093 = vmatprep.mubr.msk.bf16.mxu0 %vm958_vm4, %v7207_v36  ;;  %v4812_v45 = vpop.f32.mrf.mxu1  ;;  %v6441_v36 = vrot.slane %v6439_v22, 1  ;;  %v7211_v50 = vsel %vm1878_vm5, %v7208_v40, %v7210_v0  ;;  %v6434_v32 = vsel %vm633_vm3, %v6429_v12, %v6433_v44  ;;  %v6443_v47 = vshrl.u32 %v12108_v38, 16 }
 0x2c8   : > { %v5650_v39 = vpop.f32.mrf.mxu0  ;;  %v12135_v46 = vadd.f32 %v9911_v8, %v5097_v26  ;;  %v5095_v58 = vadd.f32 %v4812_v45, %v11709_v25  ;;  %v6455_v9 = vshll.u32 %v12133_v15, 16  ;;  %v6449_v44 = vrot.slane %v6447_v33, 1  ;;  %v10405_v45 = vld [vmem:[#allocation2 + $0xd8] sm:$0xff]  }
 0x2c9   : > { %v9830_v2 = vpop.f32.mrf.mxu1  ;;  %v6442_v25 = vsel %vm633_vm3, %v6437_v29, %v6441_v36  ;;  %v7214_v12 = vrot.slane %v12133_v15, 1 }
 0x2ca   : > { %v9912_v19 = vpop.f32.mrf.mxu0  ;;  %v12140_v62 = vadd.f32 %v5650_v39, %v5095_v58  ;;  %v5098_v41 = vadd.f32 %v9830_v2, %v11715_v54  ;;  %v7212_v54 = vrot.slane %v10403_v1, 1  ;;  %v6453_v2 = vor.u32 %v6451_v57, %v6449_v44  ;;  %v12158_v1 = vld [vmem:[#allocation2 + $0xe0] sm:$0xff]  }
 0x2cb   : > { %v4815_v22 = vpop.f32.mrf.mxu1  ;;  %v6459_v57 = vshrl.u32 %v12133_v15, 16 }
 0x2cc   : > { %v5653_v59 = vpop.f32.mrf.mxu0  ;;  %v12148_v26 = vadd.f32 %v9912_v19, %v5098_v41  ;;  %v5096_v40 = vadd.f32 %v4815_v22, %v11720_v10 }
 0x2cd   : > { %v9833_v39 = vpop.f32.mrf.mxu1  ;;  %10012 = vmatmul.mubr.msk.bf16.gmra.mxu1 %vm958_vm4, %v6434_v32  ;;  %v7213_v32 = vsel %vm1878_vm5, %v7210_v0, %v7212_v54  ;;  %v6467_v0 = vshrl.u32 %v10405_v45, 16 }
 0x2ce   : > { %v9915_v8 = vpop.f32.mrf.mxu0  ;;  %10094 = vmatmul.mubr.msk.bf16.gmra.mxu0 %vm958_vm4, %v7209_v56  ;;  %v12154_v58 = vadd.f32 %v5653_v59, %v5096_v40  ;;  %v5101_v29 = vadd.f32 %v9833_v39, %v11724_v13  ;;  %v6445_v56 = vor.u32 %v6443_v47, %v6441_v36  ;;  %10015 = vmatprep.mubr.msk.bf16.mxu1 %vm958_vm4, %v6442_v25  ;;  %v6463_v13 = vshll.u32 %v10405_v45, 16 }
 0x2cf   : > { %10097 = vmatprep.mubr.msk.bf16.mxu0 %vm958_vm4, %v7211_v50  ;;  %v4828_v19 = vpop.f32.mrf.mxu1  ;;  %v6457_v50 = vrot.slane %v6455_v9, 1  ;;  %v7215_v40 = vsel %vm1878_vm5, %v7212_v54, %v7214_v12  ;;  %v6471_v39 = vshll.u32 %v12158_v1, 16 }
 0x2d0   : > { %v5666_v38 = vpop.f32.mrf.mxu0  ;;  %v12160_v41 = vadd.f32 %v9915_v8, %v5101_v29  ;;  %v5099_v33 = vadd.f32 %v4828_v19, %v11727_v24  ;;  %v6450_v25 = vsel %vm633_vm3, %v6445_v56, %v6449_v44  ;;  %v6465_v44 = vrot.slane %v6463_v13, 1  ;;  %v10407_v19 = vld [vmem:[#allocation2 + $0xe8] sm:$0xff]  }
 0x2d1   : > { %v9834_v22 = vpop.f32.mrf.mxu1  ;;  %v6458_v24 = vsel %vm633_vm3, %v6453_v2, %v6457_v50  ;;  %v7218_v56 = vrot.slane %v12158_v1, 1 }
 0x2d2   : > { %v9916_v10 = vpop.f32.mrf.mxu0  ;;  %v12165_v36 = vadd.f32 %v5666_v38, %v5099_v33  ;;  %v5102_v47 = vadd.f32 %v9834_v22, %v11733_v51  ;;  %v7216_v51 = vrot.slane %v10405_v45, 1  ;;  %v6469_v22 = vor.u32 %v6467_v0, %v6465_v44  ;;  %v12183_v45 = vld [vmem:[#allocation2 + $0xf0] sm:$0xff]  }
 0x2d3   : > { %v4831_v9 = vpop.f32.mrf.mxu1  ;;  %v6475_v0 = vshrl.u32 %v12158_v1, 16 }
 0x2d4   : > { %v5669_v59 = vpop.f32.mrf.mxu0  ;;  %v12173_v29 = vadd.f32 %v9916_v10, %v5102_v47  ;;  %v5100_v54 = vadd.f32 %v4831_v9, %v11738_v23 }
 0x2d5   : > { %v9837_v38 = vpop.f32.mrf.mxu1  ;;  %10016 = vmatmul.mubr.msk.bf16.gmra.mxu1 %vm958_vm4, %v6450_v25  ;;  %v7217_v25 = vsel %vm1878_vm5, %v7214_v12, %v7216_v51  ;;  %v6483_v12 = vshrl.u32 %v10407_v19, 16 }
 0x2d6   : > { %v9919_v8 = vpop.f32.mrf.mxu0  ;;  %10098 = vmatmul.mubr.msk.bf16.gmra.mxu0 %vm958_vm4, %v7213_v32  ;;  %v12179_v33 = vadd.f32 %v5669_v59, %v5100_v54  ;;  %v5105_v2 = vadd.f32 %v9837_v38, %v11742_v27  ;;  %v6461_v32 = vor.u32 %v6459_v57, %v6457_v50  ;;  %10019 = vmatprep.mubr.msk.bf16.mxu1 %vm958_vm4, %v6458_v24  ;;  %v6479_v27 = vshll.u32 %v10407_v19, 16 }
 0x2d7   : > { %10101 = vmatprep.mubr.msk.bf16.mxu0 %vm958_vm4, %v7215_v40  ;;  %v4844_v10 = vpop.f32.mrf.mxu1  ;;  %v6473_v40 = vrot.slane %v6471_v39, 1  ;;  %v7219_v54 = vsel %vm1878_vm5, %v7216_v51, %v7218_v56  ;;  %v6487_v38 = vshll.u32 %v12183_v45, 16 }
 0x2d8   : > { %v5682_v15 = vpop.f32.mrf.mxu0  ;;  %v12185_v47 = vadd.f32 %v9919_v8, %v5105_v2  ;;  %v5103_v13 = vadd.f32 %v4844_v10, %v11745_v28  ;;  %v6466_v24 = vsel %vm633_vm3, %v6461_v32, %v6465_v44  ;;  %v6481_v44 = vrot.slane %v6479_v27, 1  ;;  %v10409_v10 = vld [vmem:[#allocation2 + $0xf8] sm:$0xff]  }
 0x2d9   : > { %v9838_v9 = vpop.f32.mrf.mxu1  ;;  %v6474_v28 = vsel %vm633_vm3, %v6469_v22, %v6473_v40  ;;  %v7222_v32 = vrot.slane %v12183_v45, 1 }
 0x2da   : > { %v9920_v23 = vpop.f32.mrf.mxu0  ;;  %v12190_v50 = vadd.f32 %v5682_v15, %v5103_v13  ;;  %v5106_v57 = vadd.f32 %v9838_v9, %v11751_v18  ;;  %v7220_v18 = vrot.slane %v10407_v19, 1  ;;  %v6485_v9 = vor.u32 %v6483_v12, %v6481_v44  ;;  %v12208_v19 = vld [vmem:[#allocation2 + $0x100] sm:$0xff]  }
 0x2db   : > { %v4847_v39 = vpop.f32.mrf.mxu1  ;;  %v6491_v12 = vshrl.u32 %v12183_v45, 16 }
 0x2dc   : > { %v5685_v59 = vpop.f32.mrf.mxu0  ;;  %v12198_v2 = vadd.f32 %v9920_v23, %v5106_v57  ;;  %v5104_v51 = vadd.f32 %v4847_v39, %v11756_v43 }
 0x2dd   : > { %v9841_v15 = vpop.f32.mrf.mxu1  ;;  %10020 = vmatmul.mubr.msk.bf16.gmra.mxu1 %vm958_vm4, %v6466_v24  ;;  %v7221_v24 = vsel %vm1878_vm5, %v7218_v56, %v7220_v18  ;;  %v6499_v56 = vshrl.u32 %v10409_v10, 16 }
 0x2de   : > { %v9923_v8 = vpop.f32.mrf.mxu0  ;;  %10102 = vmatmul.mubr.msk.bf16.gmra.mxu0 %vm958_vm4, %v7217_v25  ;;  %v12204_v13 = vadd.f32 %v5685_v59, %v5104_v51  ;;  %v5109_v22 = vadd.f32 %v9841_v15, %v11760_v52  ;;  %v6477_v25 = vor.u32 %v6475_v0, %v6473_v40  ;;  %10023 = vmatprep.mubr.msk.bf16.mxu1 %vm958_vm4, %v6474_v28  ;;  %v6495_v52 = vshll.u32 %v10409_v10, 16 }
 0x2df   : > { %10105 = vmatprep.mubr.msk.bf16.mxu0 %vm958_vm4, %v7219_v54  ;;  %v4860_v23 = vpop.f32.mrf.mxu1  ;;  %v6489_v54 = vrot.slane %v6487_v38, 1  ;;  %v7223_v51 = vsel %vm1878_vm5, %v7220_v18, %v7222_v32  ;;  %v6503_v15 = vshll.u32 %v12208_v19, 16 }
 0x2e0   : > { %v5698_v1 = vpop.f32.mrf.mxu0  ;;  %v12210_v57 = vadd.f32 %v9923_v8, %v5109_v22  ;;  %v5107_v27 = vadd.f32 %v4860_v23, %v11763_v14  ;;  %v6482_v28 = vsel %vm633_vm3, %v6477_v25, %v6481_v44  ;;  %v6497_v44 = vrot.slane %v6495_v52, 1  ;;  %v10411_v23 = vld [vmem:[#allocation2 + $0x108] sm:$0xff]  }
 0x2e1   : > { %v9842_v39 = vpop.f32.mrf.mxu1  ;;  %v6490_v14 = vsel %vm633_vm3, %v6485_v9, %v6489_v54  ;;  %v7226_v25 = vrot.slane %v12208_v19, 1 }
 0x2e2   : > { %v9924_v43 = vpop.f32.mrf.mxu0  ;;  %v12215_v40 = vadd.f32 %v5698_v1, %v5107_v27  ;;  %v5110_v0 = vadd.f32 %v9842_v39, %v11769_v34  ;;  %v7224_v34 = vrot.slane %v10409_v10, 1  ;;  %v6501_v39 = vor.u32 %v6499_v56, %v6497_v44  ;;  %v12233_v10 = vld [vmem:[#allocation2 + $0x110] sm:$0xff]  }
 0x2e3   : > { %v4863_v38 = vpop.f32.mrf.mxu1  ;;  %v6507_v56 = vshrl.u32 %v12208_v19, 16 }
 0x2e4   : > { %v5701_v59 = vpop.f32.mrf.mxu0  ;;  %v12223_v22 = vadd.f32 %v9924_v43, %v5110_v0  ;;  %v5108_v18 = vadd.f32 %v4863_v38, %v11774_v5 }
 0x2e5   : > { %v9845_v1 = vpop.f32.mrf.mxu1  ;;  %10024 = vmatmul.mubr.msk.bf16.gmra.mxu1 %vm958_vm4, %v6482_v28  ;;  %v7225_v28 = vsel %vm1878_vm5, %v7222_v32, %v7224_v34  ;;  %v6515_v32 = vshrl.u32 %v10411_v23, 16 }
 0x2e6   : > { %v9927_v8 = vpop.f32.mrf.mxu0  ;;  %10106 = vmatmul.mubr.msk.bf16.gmra.mxu0 %vm958_vm4, %v7221_v24  ;;  %v12229_v27 = vadd.f32 %v5701_v59, %v5108_v18  ;;  %v5113_v9 = vadd.f32 %v9845_v1, %v11778_v37  ;;  %v6493_v24 = vor.u32 %v6491_v12, %v6489_v54  ;;  %10027 = vmatprep.mubr.msk.bf16.mxu1 %vm958_vm4, %v6490_v14  ;;  %v6511_v37 = vshll.u32 %v10411_v23, 16 }
 0x2e7   : > { %10109 = vmatprep.mubr.msk.bf16.mxu0 %vm958_vm4, %v7223_v51  ;;  %v4876_v43 = vpop.f32.mrf.mxu1  ;;  %v6505_v51 = vrot.slane %v6503_v15, 1  ;;  %v7227_v18 = vsel %vm1878_vm5, %v7224_v34, %v7226_v25  ;;  %v6519_v1 = vshll.u32 %v12233_v10, 16 }
 0x2e8   : > { %v5714_v45 = vpop.f32.mrf.mxu0  ;;  %v12235_v0 = vadd.f32 %v9927_v8, %v5113_v9  ;;  %v5111_v52 = vadd.f32 %v4876_v43, %v11781_v20  ;;  %v6498_v14 = vsel %vm633_vm3, %v6493_v24, %v6497_v44  ;;  %v6513_v44 = vrot.slane %v6511_v37, 1  ;;  %v10413_v43 = vld [vmem:[#allocation2 + $0x118] sm:$0xff]  }
 0x2e9   : > { %v9846_v38 = vpop.f32.mrf.mxu1  ;;  %v6506_v20 = vsel %vm633_vm3, %v6501_v39, %v6505_v51  ;;  %v7230_v24 = vrot.slane %v12233_v10, 1 }
 0x2ea   : > { %v9928_v5 = vpop.f32.mrf.mxu0  ;;  %v12240_v54 = vadd.f32 %v5714_v45, %v5111_v52  ;;  %v5114_v12 = vadd.f32 %v9846_v38, %v11787_v48  ;;  %v7228_v48 = vrot.slane %v10411_v23, 1  ;;  %v6517_v38 = vor.u32 %v6515_v32, %v6513_v44  ;;  %v12258_v23 = vld [vmem:[#allocation2 + $0x120] sm:$0xff]  }
 0x2eb   : > { %v4879_v15 = vpop.f32.mrf.mxu1 }
 0x2ec   : > { %v5717_v59 = vpop.f32.mrf.mxu0  ;;  %v12248_v9 = vadd.f32 %v9928_v5, %v5114_v12  ;;  %v5112_v34 = vadd.f32 %v4879_v15, %v11792_v49  ;;  %v7229_v15 = vsel %vm1878_vm5, %v7226_v25, %v7228_v48  ;;  %v6531_v25 = vshrl.u32 %v10413_v43, 16 }
 0x2ed   : > { %v9849_v45 = vpop.f32.mrf.mxu1  ;;  %10028 = vmatmul.mubr.msk.bf16.gmra.mxu1 %vm958_vm4, %v6498_v14  ;;  %v13196_v14 = vld [vmem:[#allocation40_spill] sm:$0xff] }
 0x2ee   : > { %v9931_v8 = vpop.f32.mrf.mxu0  ;;  %10110 = vmatmul.mubr.msk.bf16.gmra.mxu0 %vm958_vm4, %v7225_v28  ;;  %13193 = vst [vmem:[#allocation37_spill] sm:$0xff] %v12248_v9  ;;  %v12254_v52 = vadd.f32 %v5717_v59, %v5112_v34  ;;  %v5117_v39 = vadd.f32 %v9849_v45, %v11796_v3  ;;  %v6509_v28 = vor.u32 %v6507_v56, %v6505_v51  ;;  %v6527_v3 = vshll.u32 %v10413_v43, 16  ;;  %v13198_v56 = vld [vmem:[#allocation41_spill] sm:$0xff] }
 0x2ef   : > { %10113 = vmatprep.mubr.msk.bf16.mxu0 %vm958_vm4, %v7227_v18  ;;  %10031 = vmatprep.mubr.msk.bf16.mxu1 %vm958_vm4, %v6506_v20  ;;  %v4892_v5 = vpop.f32.mrf.mxu1  ;;  %v6521_v18 = vrot.slane %v6519_v1, 1  ;;  %v7231_v34 = vsel %vm1878_vm5, %v7228_v48, %v7230_v24  ;;  %v6523_v1 = vshrl.u32 %v12233_v10, 16  ;;  %v13200_v48 = vld [vmem:[#allocation42_spill] sm:$0xff] }
 0x2f0   : > { %v5730_v19 = vpop.f32.mrf.mxu0  ;;  %13194 = vst [vmem:[#allocation38_spill] sm:$0xff] %v12254_v52  ;;  %v12260_v12 = vadd.f32 %v9931_v8, %v5117_v39  ;;  %v5115_v37 = vadd.f32 %v4892_v5, %v13196_v14  ;;  %v6514_v32 = vsel %vm633_vm3, %v6509_v28, %v6513_v44  ;;  %v6535_v5 = vshll.u32 %v12258_v23, 16 }
 0x2f1   : > { %v9850_v9 = vpop.f32.mrf.mxu1  ;;  %v6522_v39 = vsel %vm633_vm3, %v6517_v38, %v6521_v18  ;;  %v6529_v44 = vrot.slane %v6527_v3, 1  ;;  %v7234_v28 = vrot.slane %v12258_v23, 1  ;;  %v13202_v38 = vld [vmem:[#allocation43_spill] sm:$0xff] }
 0x2f2   : > { %v9932_v49 = vpop.f32.mrf.mxu0  ;;  %13195 = vst [vmem:[#allocation39_spill] sm:$0xff] %v12260_v12  ;;  %v12265_v51 = vadd.f32 %v5730_v19, %v5115_v37  ;;  %v5118_v20 = vadd.f32 %v9850_v9, %v13198_v56  ;;  %v7232_v9 = vrot.slane %v10413_v43, 1  ;;  %v6525_v12 = vor.u32 %v6523_v1, %v6521_v18  ;;  %v12283_v43 = vld [vmem:[#allocation2 + $0x130] sm:$0xff]   ;;  %v13206_v1 = vld [vmem:[#allocation45_spill] sm:$0xff] }
 0x2f3   : > { %v4895_v45 = vpop.f32.mrf.mxu1 }
 0x2f4   : > { %v5733_v59 = vpop.f32.mrf.mxu0  ;;  %13197 = vst [vmem:[#allocation40_spill] sm:$0xff] %v12265_v51  ;;  %v12273_v14 = vadd.f32 %v9932_v49, %v5118_v20  ;;  %v5116_v19 = vadd.f32 %v4895_v45, %v13200_v48  ;;  %v6533_v45 = vor.u32 %v6531_v25, %v6529_v44  ;;  %v6530_v25 = vsel %vm633_vm3, %v6525_v12, %v6529_v44 }
 0x2f5   : > { %v9853_v37 = vpop.f32.mrf.mxu1  ;;  %10032 = vmatmul.mubr.msk.bf16.gmra.mxu1 %vm958_vm4, %v6514_v32  ;;  %v13204_v32 = vld [vmem:[#allocation44_spill] sm:$0xff]  ;;  %v7238_v44 = vrot.slane %v12283_v43, 1 }
 0x2f6   : > { %v9935_v8 = vpop.f32.mrf.mxu0  ;;  %10114 = vmatmul.mubr.msk.bf16.gmra.mxu0 %vm958_vm4, %v7229_v15  ;;  %13199 = vst [vmem:[#allocation41_spill] sm:$0xff] %v12273_v14  ;;  %v10415_v15 = vld [vmem:[#allocation2 + $0x128] sm:$0xff]   ;;  %v12279_v56 = vadd.f32 %v5733_v59, %v5116_v19  ;;  %v5121_v51 = vadd.f32 %v9853_v37, %v13202_v38  ;;  %10035 = vmatprep.mubr.msk.bf16.mxu1 %vm958_vm4, %v6522_v39 }
 0x2f7   : > { %10117 = vmatprep.mubr.msk.bf16.mxu0 %vm958_vm4, %v7231_v34  ;;  %v4908_v49 = vpop.f32.mrf.mxu1  ;;  %v6537_v34 = vrot.slane %v6535_v5, 1  ;;  %v7233_v14 = vsel %vm1878_vm5, %v7230_v24, %v7232_v9  ;;  %v7235_v19 = vsel %vm1878_vm5, %v7232_v9, %v7234_v28  ;;  %v6543_v37 = vshll.u32 %v10415_v15, 16  ;;  %v13208_v9 = vld [vmem:[#allocation46_spill] sm:$0xff] }
 0x2f8   : > { %v5746_v10 = vpop.f32.mrf.mxu0  ;;  %13201 = vst [vmem:[#allocation42_spill] sm:$0xff] %v12279_v56  ;;  %v12285_v48 = vadd.f32 %v9935_v8, %v5121_v51  ;;  %v5119_v3 = vadd.f32 %v4908_v49, %v13204_v32  ;;  %v6539_v5 = vshrl.u32 %v12258_v23, 16  ;;  %v6547_v24 = vshrl.u32 %v10415_v15, 16 }
 0x2f9   : > { %v9854_v52 = vpop.f32.mrf.mxu1  ;;  %v6538_v8 = vsel %vm633_vm3, %v6533_v45, %v6537_v34  ;;  %v6551_v49 = vshll.u32 %v12283_v43, 16  ;;  %v6545_v12 = vrot.slane %v6543_v37, 1  ;;  %v13210_v45 = vld [vmem:[#allocation47_spill] sm:$0xff] }
 0x2fa   : > { %v9936_v20 = vpop.f32.mrf.mxu0  ;;  %13203 = vst [vmem:[#allocation43_spill] sm:$0xff] %v12285_v48  ;;  %v12290_v18 = vadd.f32 %v5746_v10, %v5119_v3  ;;  %v5122_v39 = vadd.f32 %v9854_v52, %v13206_v1  ;;  %v7236_v52 = vrot.slane %v10415_v15, 1  ;;  %v6541_v48 = vor.u32 %v6539_v5, %v6537_v34  ;;  %v12308_v15 = vld [vmem:[#allocation2 + $0x140] sm:$0xff]  }
 0x2fb   : > { %v4911_v38 = vpop.f32.mrf.mxu1  ;;  %v13214_v5 = vld [vmem:[#allocation49_spill] sm:$0xff] }
 0x2fc   : > { %v5749_v59 = vpop.f32.mrf.mxu0  ;;  %13205 = vst [vmem:[#allocation44_spill] sm:$0xff] %v12290_v18  ;;  %v12298_v32 = vadd.f32 %v9936_v20, %v5122_v39  ;;  %v5120_v10 = vadd.f32 %v4911_v38, %v13208_v9  ;;  %v6549_v38 = vor.u32 %v6547_v24, %v6545_v12  ;;  %v6546_v24 = vsel %vm633_vm3, %v6541_v48, %v6545_v12 }
 0x2fd   : > { %v9857_v3 = vpop.f32.mrf.mxu1  ;;  %10036 = vmatmul.mubr.msk.bf16.gmra.mxu1 %vm958_vm4, %v6530_v25  ;;  %v13212_v25 = vld [vmem:[#allocation48_spill] sm:$0xff]  ;;  %v7242_v12 = vrot.slane %v12308_v15, 1 }
 0x2fe   : > { %v9939_v51 = vpop.f32.mrf.mxu0  ;;  %10118 = vmatmul.mubr.msk.bf16.gmra.mxu0 %vm958_vm4, %v7233_v14  ;;  %13207 = vst [vmem:[#allocation45_spill] sm:$0xff] %v12298_v32  ;;  %v10417_v14 = vld [vmem:[#allocation2 + $0x138] sm:$0xff]   ;;  %v12304_v1 = vadd.f32 %v5749_v59, %v5120_v10  ;;  %v5125_v18 = vadd.f32 %v9857_v3, %v13210_v45  ;;  %10039 = vmatprep.mubr.msk.bf16.mxu1 %vm958_vm4, %v6538_v8 }
 0x2ff   : > { %10121 = vmatprep.mubr.msk.bf16.mxu0 %vm958_vm4, %v7235_v19  ;;  %v4924_v20 = vpop.f32.mrf.mxu1  ;;  %v6553_v19 = vrot.slane %v6551_v49, 1  ;;  %v7237_v32 = vsel %vm1878_vm5, %v7234_v28, %v7236_v52  ;;  %v7239_v10 = vsel %vm1878_vm5, %v7236_v52, %v7238_v44  ;;  %v6559_v3 = vshll.u32 %v10417_v14, 16  ;;  %v13216_v52 = vld [vmem:[#allocation50_spill] sm:$0xff] }
 0x300   : > { %v5762_v23 = vpop.f32.mrf.mxu0  ;;  %13209 = vst [vmem:[#allocation46_spill] sm:$0xff] %v12304_v1  ;;  %v12310_v9 = vadd.f32 %v9939_v51, %v5125_v18  ;;  %v5123_v37 = vadd.f32 %v4924_v20, %v13212_v25  ;;  %v6555_v49 = vshrl.u32 %v12283_v43, 16  ;;  %v6563_v28 = vshrl.u32 %v10417_v14, 16 }
 0x301   : > { %v9858_v56 = vpop.f32.mrf.mxu1  ;;  %v6554_v51 = vsel %vm633_vm3, %v6549_v38, %v6553_v19  ;;  %v6567_v20 = vshll.u32 %v12308_v15, 16  ;;  %v6561_v48 = vrot.slane %v6559_v3, 1  ;;  %v13218_v38 = vld [vmem:[#allocation51_spill] sm:$0xff] }
 0x302   : > { %v9940_v39 = vpop.f32.mrf.mxu0  ;;  %13211 = vst [vmem:[#allocation47_spill] sm:$0xff] %v12310_v9  ;;  %v12315_v34 = vadd.f32 %v5762_v23, %v5123_v37  ;;  %v5126_v8 = vadd.f32 %v9858_v56, %v13214_v5  ;;  %v7240_v56 = vrot.slane %v10417_v14, 1  ;;  %v6557_v9 = vor.u32 %v6555_v49, %v6553_v19  ;;  %v12333_v14 = vld [vmem:[#allocation2 + $0x150] sm:$0xff]  }
 0x303   : > { %v4927_v45 = vpop.f32.mrf.mxu1  ;;  %v13222_v49 = vld [vmem:[#allocation7_spill] sm:$0xff] }
 0x304   : > { %v5765_v59 = vpop.f32.mrf.mxu0  ;;  %13213 = vst [vmem:[#allocation48_spill] sm:$0xff] %v12315_v34  ;;  %v12323_v25 = vadd.f32 %v9940_v39, %v5126_v8  ;;  %v5124_v23 = vadd.f32 %v4927_v45, %v13216_v52  ;;  %v6565_v45 = vor.u32 %v6563_v28, %v6561_v48  ;;  %v6562_v28 = vsel %vm633_vm3, %v6557_v9, %v6561_v48 }
 0x305   : > { %v9861_v37 = vpop.f32.mrf.mxu1  ;;  %10040 = vmatmul.mubr.msk.bf16.gmra.mxu1 %vm958_vm4, %v6546_v24  ;;  %v13220_v24 = vld [vmem:[#allocation52_spill] sm:$0xff]  ;;  %v7246_v48 = vrot.slane %v12333_v14, 1 }
 0x306   : > { %v9943_v18 = vpop.f32.mrf.mxu0  ;;  %10122 = vmatmul.mubr.msk.bf16.gmra.mxu0 %vm958_vm4, %v7237_v32  ;;  %13215 = vst [vmem:[#allocation49_spill] sm:$0xff] %v12323_v25  ;;  %v10419_v32 = vld [vmem:[#allocation2 + $0x148] sm:$0xff]   ;;  %v12329_v5 = vadd.f32 %v5765_v59, %v5124_v23  ;;  %v5129_v34 = vadd.f32 %v9861_v37, %v13218_v38  ;;  %10043 = vmatprep.mubr.msk.bf16.mxu1 %vm958_vm4, %v6554_v51 }
 0x307   : > { %10125 = vmatprep.mubr.msk.bf16.mxu0 %vm958_vm4, %v7239_v10  ;;  %v4940_v39 = vpop.f32.mrf.mxu1  ;;  %v6569_v10 = vrot.slane %v6567_v20, 1  ;;  %v7241_v25 = vsel %vm1878_vm5, %v7238_v44, %v7240_v56  ;;  %v7243_v23 = vsel %vm1878_vm5, %v7240_v56, %v7242_v12  ;;  %v6575_v37 = vshll.u32 %v10419_v32, 16  ;;  %v13224_v56 = vld [vmem:[#allocation8_spill] sm:$0xff] }
 0x308   : > { %v5778_v43 = vpop.f32.mrf.mxu0  ;;  %13217 = vst [vmem:[#allocation50_spill] sm:$0xff] %v12329_v5  ;;  %v12335_v52 = vadd.f32 %v9943_v18, %v5129_v34  ;;  %v5127_v3 = vadd.f32 %v4940_v39, %v13220_v24  ;;  %v6571_v20 = vshrl.u32 %v12308_v15, 16  ;;  %v6579_v44 = vshrl.u32 %v10419_v32, 16 }
 0x309   : > { %v9862_v1 = vpop.f32.mrf.mxu1  ;;  %v6570_v18 = vsel %vm633_vm3, %v6565_v45, %v6569_v10  ;;  %v6583_v39 = vshll.u32 %v12333_v14, 16  ;;  %v6577_v9 = vrot.slane %v6575_v37, 1  ;;  %v13225_v45 = vld [vmem:[#allocation9_spill] sm:$0xff] }
 0x30a   : > { %v9944_v8 = vpop.f32.mrf.mxu0  ;;  %13219 = vst [vmem:[#allocation51_spill] sm:$0xff] %v12335_v52  ;;  %v12340_v19 = vadd.f32 %v5778_v43, %v5127_v3  ;;  %v5130_v51 = vadd.f32 %v9862_v1, %v13222_v49  ;;  %v7244_v1 = vrot.slane %v10419_v32, 1  ;;  %v6573_v52 = vor.u32 %v6571_v20, %v6569_v10  ;;  %v12358_v32 = vld [vmem:[#allocation2 + $0x160] sm:$0xff]  }
 0x30b   : > { %v4943_v38 = vpop.f32.mrf.mxu1 }
 0x30c   : > { %v5781_v59 = vpop.f32.mrf.mxu0  ;;  %13221 = vst [vmem:[#allocation52_spill] sm:$0xff] %v12340_v19  ;;  %v12348_v24 = vadd.f32 %v9944_v8, %v5130_v51  ;;  %v5128_v43 = vadd.f32 %v4943_v38, %v13224_v56  ;;  %v6581_v38 = vor.u32 %v6579_v44, %v6577_v9  ;;  %v7247_v10 = vsel %vm1878_vm5, %v7244_v1, %v7246_v48 }
 0x30d   : > { %v9865_v3 = vpop.f32.mrf.mxu1  ;;  %10044 = vmatmul.mubr.msk.bf16.gmra.mxu1 %vm958_vm4, %v6562_v28  ;;  %v13226_v28 = vld [vmem:[#allocation10_spill] sm:$0xff] }
 0x30e   : > { %v9947_v34 = vpop.f32.mrf.mxu0  ;;  %10126 = vmatmul.mubr.msk.bf16.gmra.mxu0 %vm958_vm4, %v7241_v25  ;;  %13223 = vst [vmem:[#allocation7_spill] sm:$0xff] %v12348_v24  ;;  %v10421_v25 = vld [vmem:[#allocation2 + $0x158] sm:$0xff]   ;;  %v12354_v49 = vadd.f32 %v5781_v59, %v5128_v43  ;;  %v5133_v19 = vadd.f32 %v9865_v3, %v13225_v45  ;;  %10047 = vmatprep.mubr.msk.bf16.mxu1 %vm958_vm4, %v6570_v18  ;;  %v6587_v43 = vshrl.u32 %v12333_v14, 16  ;;  %v13227_v3 = vld [vmem:[#allocation11_spill] sm:$0xff] }
 0x30f   : > { %10129 = vmatprep.mubr.msk.bf16.mxu0 %vm958_vm4, %v7243_v23  ;;  %v4956_v8 = vpop.f32.mrf.mxu1  ;;  %v6585_v23 = vrot.slane %v6583_v39, 1  ;;  %v7245_v24 = vsel %vm1878_vm5, %v7242_v12, %v7244_v1  ;;  %v6591_v20 = vshll.u32 %v10421_v25, 16  ;;  %v6578_v39 = vsel %vm633_vm3, %v6573_v52, %v6577_v9  ;;  %v13229_v14 = vld [vmem:[#allocation12_spill] sm:$0xff] }
 0x310   : > { %v5794_v15 = vpop.f32.mrf.mxu0  ;;  %v12360_v56 = vadd.f32 %v9947_v34, %v5133_v19  ;;  %v5131_v37 = vadd.f32 %v4956_v8, %v13226_v28  ;;  %v6595_v12 = vshrl.u32 %v10421_v25, 16  ;;  %v6599_v8 = vshll.u32 %v12358_v32, 16 }
 0x311   : > { %v9866_v5 = vpop.f32.mrf.mxu1  ;;  %v6586_v34 = vsel %vm633_vm3, %v6581_v38, %v6585_v23  ;;  %v6589_v52 = vor.u32 %v6587_v43, %v6585_v23  ;;  %v6593_v9 = vrot.slane %v6591_v20, 1 }
 0x312   : > { %v9948_v51 = vpop.f32.mrf.mxu0  ;;  %v12366_v18 = vadd.f32 %v5794_v15, %v5131_v37  ;;  %v5134_v44 = vadd.f32 %v9866_v5, %v13227_v3  ;;  %v7248_v15 = vrot.slane %v10421_v25, 1 }
 0x313   : > { %v4959_v45 = vpop.f32.mrf.mxu1 }
 0x314   : > { %v5797_v59 = vpop.f32.mrf.mxu0  ;;  %v12373_v28 = vadd.f32 %v9948_v51, %v5134_v44  ;;  %v5132_v1 = vadd.f32 %v4959_v45, %v13229_v14  ;;  %v10423_v51 = vld [vmem:[#allocation2 + $0x168] ss:$0 sps:$4 sm:$0x11]   ;;  %v6597_v14 = vor.u32 %v6595_v12, %v6593_v9  ;;  %v7249_v23 = vsel %vm1878_vm5, %v7246_v48, %v7248_v15 }
 0x315   : > { %v9869_v37 = vpop.f32.mrf.mxu1  ;;  %10048 = vmatmul.mubr.msk.bf16.gmra.mxu1 %vm958_vm4, %v6578_v39  ;;  %v6607_v12 = vshll.u32 %v10423_v51, 16 }
 0x316   : > { %v9951_v19 = vpop.f32.mrf.mxu0  ;;  %10130 = vmatmul.mubr.msk.bf16.gmra.mxu0 %vm958_vm4, %v7245_v24  ;;  %13228 = vst [vmem:[#allocation8_spill] sm:$0xff] %v12373_v28  ;;  %v7250_v24 = vrot.slane %v12358_v32, 1  ;;  %v12379_v3 = vadd.f32 %v5797_v59, %v5132_v1  ;;  %v5137_v38 = vadd.f32 %v9869_v37, %v11888_v30  ;;  %10051 = vmatprep.mubr.msk.bf16.mxu1 %vm958_vm4, %v6586_v34  ;;  %v13231_v28 = vld [vmem:[#allocation13_spill] sm:$0xff]  ;;  %v13232_v34 = vld [vmem:[#allocation14_spill] sm:$0xff] }
 0x317   : > { %10133 = vmatprep.mubr.msk.bf16.mxu0 %vm958_vm4, %v7247_v10  ;;  %v4972_v44 = vpop.f32.mrf.mxu1  ;;  %v6601_v10 = vrot.slane %v6599_v8, 1  ;;  %v6594_v59 = vsel %vm633_vm3, %v6589_v52, %v6593_v9 }
 0x318   : > { %v5810_v5 = vpop.f32.mrf.mxu0  ;;  %13230 = vst [vmem:[#allocation9_spill] sm:$0xff] %v12379_v3  ;;  %v12383_v25 = vadd.f32 %v9951_v19, %v5137_v38  ;;  %v5135_v39 = vadd.f32 %v4972_v44, %v13231_v28  ;;  %v7251_v1 = vsel %vm1878_vm5, %v7248_v15, %v7250_v24  ;;  %v6603_v3 = vshrl.u32 %v12358_v32, 16  ;;  %v13233_v38 = vld [vmem:[#allocation15_spill] sm:$0xff]  ;;  %v13234_v32 = vld [vmem:[#allocation16_spill] sm:$0xff] }
 0x319   : > { %v9870_v43 = vpop.f32.mrf.mxu1  ;;  %v6602_v28 = vsel %vm633_vm3, %v6597_v14, %v6601_v10  ;;  %v7252_v15 = vrot.slane %v10423_v51, 1 }
 0x31a   : > { %v9952_v45 = vpop.f32.mrf.mxu0  ;;  %v12389_v30 = vadd.f32 %v5810_v5, %v5135_v39  ;;  %v5138_v37 = vadd.f32 %v9870_v43, %v13232_v34  ;;  %v6605_v43 = vor.u32 %v6603_v3, %v6601_v10 }
 0x31b   : > { %v4975_v8 = vpop.f32.mrf.mxu1  ;;  %v7253_v51 = vsel %vm1878_vm5, %v7250_v24, %v7252_v15 }
 0x31c   : > { %v5813_v20 = vpop.f32.mrf.mxu0  ;;  %v12395_v48 = vadd.f32 %v9952_v45, %v5138_v37  ;;  %v5136_v44 = vadd.f32 %v4975_v8, %v13233_v38  ;;  %v13235_v37 = vld [vmem:[#allocation17_spill] sm:$0xff] }
 0x31d   : > { %v9873_v5 = vpop.f32.mrf.mxu1  ;;  %10052 = vmatmul.mubr.msk.bf16.gmra.mxu1 %vm958_vm4, %v6594_v59 }
 0x31e   : > { %v9955_v19 = vpop.f32.mrf.mxu0  ;;  %10134 = vmatmul.mubr.msk.bf16.gmra.mxu0 %vm958_vm4, %v7249_v23  ;;  %v12400_v9 = vadd.f32 %v5813_v20, %v5136_v44  ;;  %v5141_v39 = vadd.f32 %v9873_v5, %v13234_v32  ;;  %10055 = vmatprep.mubr.msk.bf16.mxu1 %vm958_vm4, %v6602_v28  ;;  %v6609_v23 = vrot.slane %v6607_v12, 1  ;;  %v13236_v20 = vld [vmem:[#allocation18_spill] sm:$0xff] }
 0x31f   : > { %10137 = vmatprep.mubr.msk.bf16.mxu0 %vm958_vm4, %v7251_v1  ;;  %v4988_v14 = vpop.f32.mrf.mxu1 }
 0x320   : > { %v5826_v52 = vpop.f32.mrf.mxu0  ;;  %v12404_v34 = vadd.f32 %v9955_v19, %v5141_v39  ;;  %v5139_v8 = vadd.f32 %v4988_v14, %v13235_v37  ;;  %v6610_v5 = vsel %vm633_vm3, %v6605_v43, %v6609_v23  ;;  %v13237_v19 = vld [vmem:[#allocation19_spill] sm:$0xff]  ;;  %v13241_v43 = vld [vmem:[#allocation21_spill] sm:$0xff] }
 0x321   : > { %v9874_v1 = vpop.f32.mrf.mxu1 }
 0x322   : > { %v9956_v45 = vpop.f32.mrf.mxu0  ;;  %v12408_v59 = vadd.f32 %v5826_v52, %v5139_v8  ;;  %v5142_v44 = vadd.f32 %v9874_v1, %v13236_v20  ;;  %v13239_v52 = vld [vmem:[#allocation20_spill] sm:$0xff]  ;;  %v13243_v20 = vld [vmem:[#allocation22_spill] sm:$0xff] }
 0x323   : > { %v4991_v3 = vpop.f32.mrf.mxu1 }
 0x324   : > { %v5829_v38 = vpop.f32.mrf.mxu0  ;;  %v12413_v12 = vadd.f32 %v9956_v45, %v5142_v44  ;;  %v5140_v28 = vadd.f32 %v4991_v3, %v13237_v19 }
 0x325   : > { %v9877_v32 = vpop.f32.mrf.mxu1  ;;  %10056 = vmatmul.mubr.msk.bf16.gmra.mxu1 %vm958_vm4, %v6610_v5 }
 0x326   : > { %v9959_v10 = vpop.f32.mrf.mxu0  ;;  %10138 = vmatmul.mubr.msk.bf16.gmra.mxu0 %vm958_vm4, %v7253_v51  ;;  %v12417_v15 = vadd.f32 %v5829_v38, %v5140_v28  ;;  %v5145_v39 = vadd.f32 %v9877_v32, %v13239_v52  ;;  %v13245_v38 = vld [vmem:[#allocation23_spill] sm:$0xff] }
 0x327   : > { %v5004_v14 = vpop.f32.mrf.mxu1 }
 0x328   : > { %v5842_v24 = vpop.f32.mrf.mxu0  ;;  %13238 = vst [vmem:[#allocation10_spill] sm:$0xff] %v12417_v15  ;;  %v12420_v8 = vadd.f32 %v9959_v10, %v5145_v39  ;;  %v5143_v23 = vadd.f32 %v5004_v14, %v13241_v43  ;;  %v13247_v10 = vld [vmem:[#allocation24_spill] sm:$0xff] }
 0x329   : > { %v9878_v1 = vpop.f32.mrf.mxu1 }
 0x32a   : > { %v9960_v37 = vpop.f32.mrf.mxu0  ;;  %13240 = vst [vmem:[#allocation11_spill] sm:$0xff] %v12420_v8  ;;  %v12423_v45 = vadd.f32 %v5842_v24, %v5143_v23  ;;  %v5146_v44 = vadd.f32 %v9878_v1, %v13243_v20  ;;  %v13249_v24 = vld [vmem:[#allocation25_spill] sm:$0xff] }
 0x32b   : > { %v5007_v3 = vpop.f32.mrf.mxu1 }
 0x32c   : > { %v5845_v51 = vpop.f32.mrf.mxu0  ;;  %13242 = vst [vmem:[#allocation12_spill] sm:$0xff] %v12423_v45  ;;  %v12426_v5 = vadd.f32 %v9960_v37, %v5146_v44  ;;  %v5144_v28 = vadd.f32 %v5007_v3, %v13245_v38  ;;  %v13251_v37 = vld [vmem:[#allocation26_spill] sm:$0xff] }
 0x32d   : > { %v9881_v15 = vpop.f32.mrf.mxu1 }
 0x32e   : > { %v9963_v19 = vpop.f32.mrf.mxu0  ;;  %13244 = vst [vmem:[#allocation13_spill] sm:$0xff] %v12426_v5  ;;  %v12429_v52 = vadd.f32 %v5845_v51, %v5144_v28  ;;  %v5149_v39 = vadd.f32 %v9881_v15, %v13247_v10  ;;  %v13253_v51 = vld [vmem:[#allocation27_spill] sm:$0xff] }
 0x32f   : > { %v5020_v8 = vpop.f32.mrf.mxu1 }
 0x330   : > { %v5858_v32 = vpop.f32.mrf.mxu0  ;;  %13246 = vst [vmem:[#allocation14_spill] sm:$0xff] %v12429_v52  ;;  %v12432_v43 = vadd.f32 %v9963_v19, %v5149_v39  ;;  %v5147_v23 = vadd.f32 %v5020_v8, %v13249_v24  ;;  %v13255_v19 = vld [vmem:[#allocation28_spill] sm:$0xff] }
 0x331   : > { %v9882_v45 = vpop.f32.mrf.mxu1 }
 0x332   : > { %v9964_v14 = vpop.f32.mrf.mxu0  ;;  %13248 = vst [vmem:[#allocation15_spill] sm:$0xff] %v12432_v43  ;;  %v12435_v20 = vadd.f32 %v5858_v32, %v5147_v23  ;;  %v5150_v44 = vadd.f32 %v9882_v45, %v13251_v37  ;;  %v13257_v32 = vld [vmem:[#allocation29_spill] sm:$0xff] }
 0x333   : > { %v5023_v5 = vpop.f32.mrf.mxu1 }
 0x334   : > { %v5861_v1 = vpop.f32.mrf.mxu0  ;;  %13250 = vst [vmem:[#allocation16_spill] sm:$0xff] %v12435_v20  ;;  %v12438_v38 = vadd.f32 %v9964_v14, %v5150_v44  ;;  %v5148_v28 = vadd.f32 %v5023_v5, %v13253_v51  ;;  %v13259_v14 = vld [vmem:[#allocation30_spill] sm:$0xff] }
 0x335   : > { %v9885_v52 = vpop.f32.mrf.mxu1 }
 0x336   : > { %v9967_v3 = vpop.f32.mrf.mxu0  ;;  %13252 = vst [vmem:[#allocation17_spill] sm:$0xff] %v12438_v38  ;;  %v12441_v10 = vadd.f32 %v5861_v1, %v5148_v28  ;;  %v5153_v39 = vadd.f32 %v9885_v52, %v13255_v19  ;;  %v13261_v1 = vld [vmem:[#allocation31_spill] sm:$0xff] }
 0x337   : > { %v5036_v43 = vpop.f32.mrf.mxu1 }
 0x338   : > { %v5874_v15 = vpop.f32.mrf.mxu0  ;;  %13254 = vst [vmem:[#allocation18_spill] sm:$0xff] %v12441_v10  ;;  %v12444_v24 = vadd.f32 %v9967_v3, %v5153_v39  ;;  %v5151_v23 = vadd.f32 %v5036_v43, %v13257_v32  ;;  %v13262_v3 = vld [vmem:[#allocation32_spill] sm:$0xff] }
 0x339   : > { %v9886_v20 = vpop.f32.mrf.mxu1 }
 0x33a   : > { %v9968_v8 = vpop.f32.mrf.mxu0  ;;  %13256 = vst [vmem:[#allocation19_spill] sm:$0xff] %v12444_v24  ;;  %v12447_v37 = vadd.f32 %v5874_v15, %v5151_v23  ;;  %v5154_v44 = vadd.f32 %v9886_v20, %v13259_v14  ;;  %v13263_v15 = vld [vmem:[#allocation33_spill] sm:$0xff] }
 0x33b   : > { %v5039_v38 = vpop.f32.mrf.mxu1 }
 0x33c   : > { %v5877_v45 = vpop.f32.mrf.mxu0  ;;  %13258 = vst [vmem:[#allocation20_spill] sm:$0xff] %v12447_v37  ;;  %v12450_v51 = vadd.f32 %v9968_v8, %v5154_v44  ;;  %v5152_v28 = vadd.f32 %v5039_v38, %v13261_v1  ;;  %v13264_v8 = vld [vmem:[#allocation34_spill] sm:$0xff] }
 0x33d   : > { %v9889_v10 = vpop.f32.mrf.mxu1 }
 0x33e   : > { %v9971_v5 = vpop.f32.mrf.mxu0  ;;  %13260 = vst [vmem:[#allocation21_spill] sm:$0xff] %v12450_v51  ;;  %v12453_v19 = vadd.f32 %v5877_v45, %v5152_v28  ;;  %v5157_v39 = vadd.f32 %v9889_v10, %v13262_v3 }
 0x33f   : > { %v5052_v24 = vpop.f32.mrf.mxu1 }
 0x340   : > { %v5890_v52 = vpop.f32.mrf.mxu0  ;;  %v12456_v32 = vadd.f32 %v9971_v5, %v5157_v39  ;;  %v5155_v23 = vadd.f32 %v5052_v24, %v13263_v15 }
 0x341   : > { %v9890_v37 = vpop.f32.mrf.mxu1 }
 0x342   : > { %v9972_v43 = vpop.f32.mrf.mxu0  ;;  %v12459_v14 = vadd.f32 %v5890_v52, %v5155_v23  ;;  %v5158_v44 = vadd.f32 %v9890_v37, %v13264_v8 }
 0x343   : > { %v5055_v51 = vpop.f32.mrf.mxu1 }
 0x344   : > { %v5893_v20 = vpop.f32.mrf.mxu0  ;;  %v12462_v1 = vadd.f32 %v9972_v43, %v5158_v44  ;;  %v5156_v45 = vadd.f32 %v5055_v51, %v12029_v61  ;;  %v13266_v43 = vld [vmem:[#allocation35_spill] sm:$0xff] }
 0x345   : > { %v9893_v28 = vpop.f32.mrf.mxu1 }
 0x346   : > { %v9975_v38 = vpop.f32.mrf.mxu0  ;;  %13265 = vst [vmem:[#allocation22_spill] sm:$0xff] %v12462_v1  ;;  %v12465_v3 = vadd.f32 %v5893_v20, %v5156_v45  ;;  %v5161_v5 = vadd.f32 %v9893_v28, %v12035_v63 }
 0x347   : > { %v5068_v39 = vpop.f32.mrf.mxu1 }
 0x348   : > { %v5906_v10 = vpop.f32.mrf.mxu0  ;;  %v12468_v15 = vadd.f32 %v9975_v38, %v5161_v5  ;;  %v5159_v52 = vadd.f32 %v5068_v39, %v12040_v42  ;;  %v12480_v42 = vld [vmem:[#allocation4] ss:$0 sm:$0xff] }
 0x349   : > { %v9894_v23 = vpop.f32.mrf.mxu1 }
 0x34a   : > { %v9976_v24 = vpop.f32.mrf.mxu0  ;;  %v12471_v8 = vadd.f32 %v5906_v10, %v5159_v52  ;;  %v5162_v44 = vadd.f32 %v9894_v23, %v13266_v43  ;;  %v12483_v23 = vld [vmem:[#allocation4 + $0x1] ss:$0 sm:$0xff] }
 0x34b   : > { %v5071_v1 = vpop.f32.mrf.mxu1 }
 0x34c   : > { %v5909_v37 = vpop.f32.mrf.mxu0  ;;  %v12474_v51 = vadd.f32 %v9976_v24, %v5162_v44  ;;  %v5160_v20 = vadd.f32 %v5071_v1, %v12054_v55 }
 0x34d   : > { %v9981_v63 = vpop.f32.mrf.mxu1 }
 0x34e   : > { %v10063_v61 = vpop.f32.mrf.mxu0  ;;  %13267 = vst [vmem:[#allocation23_spill] sm:$0xff] %v12474_v51  ;;  %v12477_v28 = vadd.f32 %v5909_v37, %v5160_v20  ;;  %v7089_v38 = vadd.f32 %v9981_v63, %v12060_v11  ;;  %v12487_v37 = vstv %s8060_s27 }
 0x34f   : > { %v6768_v5 = vpop.f32.mrf.mxu1 }
 0x350   : > { %v7411_v45 = vpop.f32.mrf.mxu0  ;;  %13268 = vst [vmem:[#allocation24_spill] sm:$0xff] %v12477_v28  ;;  %v7732_v39 = vadd.f32 %v10063_v61, %v7089_v38  ;;  %v7087_v52 = vadd.f32 %v6768_v5, %v12065_v6 }
 0x351   : > { %v9982_v43 = vpop.f32.mrf.mxu1 }
 0x352   : > { %v10064_v10 = vpop.f32.mrf.mxu0  ;;  %v7817_v44 = vmul.f32 %v12480_v42, %v7732_v39  ;;  %v7730_v55 = vadd.f32 %v7411_v45, %v7087_v52  ;;  %v7090_v1 = vadd.f32 %v9982_v43, %v12073_v60 }
 0x353   : > { %v6771_v20 = vpop.f32.mrf.mxu1 }
 0x354   : > { %v7414_v24 = vpop.f32.mrf.mxu0  ;;  %v7902_v63 = vadd.f32 %v12483_v23, %v7817_v44  ;;  %v7815_v28 = vmul.f32 %v12480_v42, %v7730_v55  ;;  %v7733_v61 = vadd.f32 %v10064_v10, %v7090_v1  ;;  %v7088_v6 = vadd.f32 %v6771_v20, %v12079_v31 }
 0x355   : > { %v9985_v38 = vpop.f32.mrf.mxu1 }
 0x356   : > { %v10067_v11 = vpop.f32.mrf.mxu0  ;;  %vm7982_vm7 = vcmp.gt.f32.partialorder %v7902_v63, 0.0  ;;  %v8064_v45 = vmul.f32 %v12487_v37, %v7902_v63  ;;  %v7900_v60 = vadd.f32 %v12483_v23, %v7815_v28  ;;  %v7818_v39 = vmul.f32 %v12480_v42, %v7733_v61 }
 0x357   : > { %v7731_v52 = vadd.f32 %v7414_v24, %v7088_v6  ;;  %v7093_v43 = vadd.f32 %v9985_v38, %v12085_v17  ;;  %v6784_v44 = vpop.f32.mrf.mxu1 }
 0x358   : > { %v7427_v5 = vpop.f32.mrf.mxu0  ;;  %v8144_v10 = vsel %vm7982_vm7, %v7902_v63, %v8064_v45  ;;  %vm7980_vm8 = vcmp.gt.f32.partialorder %v7900_v60, 0.0  ;;  %v8062_v31 = vmul.f32 %v12487_v37, %v7900_v60  ;;  %v7903_v1 = vadd.f32 %v12483_v23, %v7818_v39  ;;  %v13269_v63 = vld [vmem:[#allocation36_spill] sm:$0xff] }
 0x359   : > { %8225 = vst.msk [vmem:[%s10666_s16 + $0x10] sm:$0xff] %vm8222_vm6, %v8144_v10  ;;  %v7816_v20 = vmul.f32 %v12480_v42, %v7731_v52  ;;  %v7736_v51 = vadd.f32 %v10067_v11, %v7093_v43  ;;  %v7091_v28 = vadd.f32 %v6784_v44, %v12090_v21  ;;  %v9986_v24 = vpop.f32.mrf.mxu1 }
 0x35a   : > { %v10068_v55 = vpop.f32.mrf.mxu0  ;;  %v8142_v17 = vsel %vm7980_vm8, %v7900_v60, %v8062_v31  ;;  %vm7983_vm9 = vcmp.gt.f32.partialorder %v7903_v1, 0.0  ;;  %v8065_v6 = vmul.f32 %v12487_v37, %v7903_v1  ;;  %v7094_v38 = vadd.f32 %v9986_v24, %v13269_v63 }
 0x35b   : > { %8223 = vst.msk [vmem:[%s10666_s16] sm:$0xff] %vm8222_vm6, %v8142_v17  ;;  %v7901_v45 = vadd.f32 %v12483_v23, %v7816_v20  ;;  %v7821_v39 = vmul.f32 %v12480_v42, %v7736_v51  ;;  %v7734_v10 = vadd.f32 %v7427_v5, %v7091_v28  ;;  %v6787_v52 = vpop.f32.mrf.mxu1 }
 0x35c   : > { %v7430_v61 = vpop.f32.mrf.mxu0  ;;  %v8145_v43 = vsel %vm7983_vm9, %v7903_v1, %v8065_v6  ;;  %v7737_v21 = vadd.f32 %v10068_v55, %v7094_v38  ;;  %v7092_v44 = vadd.f32 %v6787_v52, %v12104_v7 }
 0x35d   : > { %8226 = vst.msk [vmem:[%s10666_s16 + $0x18] sm:$0xff] %vm8222_vm6, %v8145_v43  ;;  %vm7981_vm10 = vcmp.gt.f32.partialorder %v7901_v45, 0.0  ;;  %v8063_v60 = vmul.f32 %v12487_v37, %v7901_v45  ;;  %v7906_v31 = vadd.f32 %v12483_v23, %v7821_v39  ;;  %v7819_v24 = vmul.f32 %v12480_v42, %v7734_v10  ;;  %v9989_v20 = vpop.f32.mrf.mxu1 }
 0x35e   : > { %v10071_v11 = vpop.f32.mrf.mxu0  ;;  %v7822_v51 = vmul.f32 %v12480_v42, %v7737_v21  ;;  %v7735_v5 = vadd.f32 %v7430_v61, %v7092_v44  ;;  %v7097_v1 = vadd.f32 %v9989_v20, %v12110_v16 }
 0x35f   : > { %v8143_v55 = vsel %vm7981_vm10, %v7901_v45, %v8063_v60  ;;  %vm7986_vm11 = vcmp.gt.f32.partialorder %v7906_v31, 0.0  ;;  %v8068_v7 = vmul.f32 %v12487_v37, %v7906_v31  ;;  %v7904_v28 = vadd.f32 %v12483_v23, %v7819_v24  ;;  %v6800_v6 = vpop.f32.mrf.mxu1 }
 0x360   : > { %v7443_v17 = vpop.f32.mrf.mxu0  ;;  %8224 = vst.msk [vmem:[%s10666_s16 + $0x8] sm:$0xff] %vm8222_vm6, %v8143_v55  ;;  %v7907_v38 = vadd.f32 %v12483_v23, %v7822_v51  ;;  %v7820_v39 = vmul.f32 %v12480_v42, %v7735_v5  ;;  %v7740_v10 = vadd.f32 %v10071_v11, %v7097_v1  ;;  %v7095_v61 = vadd.f32 %v6800_v6, %v12115_v35 }
 0x361   : > { %v8148_v16 = vsel %vm7986_vm11, %v7906_v31, %v8068_v7  ;;  %vm7984_vm12 = vcmp.gt.f32.partialorder %v7904_v28, 0.0  ;;  %v8066_v45 = vmul.f32 %v12487_v37, %v7904_v28  ;;  %v9990_v52 = vpop.f32.mrf.mxu1 }
 0x362   : > { %v10072_v63 = vpop.f32.mrf.mxu0  ;;  %8229 = vst.msk [vmem:[%s10666_s16 + $0x30] sm:$0xff] %vm8222_vm6, %v8148_v16  ;;  %vm7987_vm13 = vcmp.gt.f32.partialorder %v7907_v38, 0.0  ;;  %v8069_v21 = vmul.f32 %v12487_v37, %v7907_v38  ;;  %v7905_v44 = vadd.f32 %v12483_v23, %v7820_v39  ;;  %v7825_v60 = vmul.f32 %v12480_v42, %v7740_v10 }
 0x363   : > { %v8146_v11 = vsel %vm7984_vm12, %v7904_v28, %v8066_v45  ;;  %v7738_v24 = vadd.f32 %v7443_v17, %v7095_v61  ;;  %v7098_v35 = vadd.f32 %v9990_v52, %v12123_v4  ;;  %v6803_v31 = vpop.f32.mrf.mxu1 }
 0x364   : > { %v7446_v43 = vpop.f32.mrf.mxu0  ;;  %8227 = vst.msk [vmem:[%s10666_s16 + $0x20] sm:$0xff] %vm8222_vm6, %v8146_v11  ;;  %v8149_v51 = vsel %vm7987_vm13, %v7907_v38, %v8069_v21  ;;  %vm7985_vm14 = vcmp.gt.f32.partialorder %v7905_v44, 0.0  ;;  %v8067_v5 = vmul.f32 %v12487_v37, %v7905_v44  ;;  %v7910_v1 = vadd.f32 %v12483_v23, %v7825_v60 }
 0x365   : > { %8230 = vst.msk [vmem:[%s10666_s16 + $0x38] sm:$0xff] %vm8222_vm6, %v8149_v51  ;;  %v7823_v55 = vmul.f32 %v12480_v42, %v7738_v24  ;;  %v7741_v7 = vadd.f32 %v10072_v63, %v7098_v35  ;;  %v7096_v17 = vadd.f32 %v6803_v31, %v12129_v53  ;;  %v9993_v4 = vpop.f32.mrf.mxu1 }
 0x366   : > { %v10075_v20 = vpop.f32.mrf.mxu0  ;;  %v8147_v6 = vsel %vm7985_vm14, %v7905_v44, %v8067_v5  ;;  %vm7990_vm15 = vcmp.gt.f32.partialorder %v7910_v1, 0.0  ;;  %v8072_v39 = vmul.f32 %v12487_v37, %v7910_v1  ;;  %v7101_v38 = vadd.f32 %v9993_v4, %v12135_v46 }
 0x367   : > { %8228 = vst.msk [vmem:[%s10666_s16 + $0x28] sm:$0xff] %vm8222_vm6, %v8147_v6  ;;  %v7908_v10 = vadd.f32 %v12483_v23, %v7823_v55  ;;  %v7826_v61 = vmul.f32 %v12480_v42, %v7741_v7  ;;  %v7739_v16 = vadd.f32 %v7446_v43, %v7096_v17  ;;  %v6816_v45 = vpop.f32.mrf.mxu1 }
 0x368   : > { %v7459_v28 = vpop.f32.mrf.mxu0  ;;  %v8152_v52 = vsel %vm7990_vm15, %v7910_v1, %v8072_v39  ;;  %v7744_v53 = vadd.f32 %v10075_v20, %v7101_v38  ;;  %v7099_v21 = vadd.f32 %v6816_v45, %v12140_v62 }
 0x369   : > { %8233 = vst.msk [vmem:[%s10666_s16 + $0x50] sm:$0xff] %vm8222_vm6, %v8152_v52  ;;  %vm7988_vm0 = vcmp.gt.f32.partialorder %v7908_v10, 0.0  ;;  %v8070_v44 = vmul.f32 %v12487_v37, %v7908_v10  ;;  %v7911_v46 = vadd.f32 %v12483_v23, %v7826_v61  ;;  %v7824_v60 = vmul.f32 %v12480_v42, %v7739_v16  ;;  %v9994_v11 = vpop.f32.mrf.mxu1 }
 0x36a   : > { %v10076_v63 = vpop.f32.mrf.mxu0  ;;  %v7829_v43 = vmul.f32 %v12480_v42, %v7744_v53  ;;  %v7742_v35 = vadd.f32 %v7459_v28, %v7099_v21  ;;  %v7102_v31 = vadd.f32 %v9994_v11, %v12148_v26 }
 0x36b   : > { %v8150_v20 = vsel %vm7988_vm0, %v7908_v10, %v8070_v44  ;;  %vm7991_vm1 = vcmp.gt.f32.partialorder %v7911_v46, 0.0  ;;  %v8073_v62 = vmul.f32 %v12487_v37, %v7911_v46  ;;  %v7909_v51 = vadd.f32 %v12483_v23, %v7824_v60  ;;  %v6819_v5 = vpop.f32.mrf.mxu1 }
 0x36c   : > { %v7462_v24 = vpop.f32.mrf.mxu0  ;;  %8231 = vst.msk [vmem:[%s10666_s16 + $0x40] sm:$0xff] %vm8222_vm6, %v8150_v20  ;;  %v7914_v55 = vadd.f32 %v12483_v23, %v7829_v43  ;;  %v7827_v7 = vmul.f32 %v12480_v42, %v7742_v35  ;;  %v7745_v17 = vadd.f32 %v10076_v63, %v7102_v31  ;;  %v7100_v4 = vadd.f32 %v6819_v5, %v12154_v58 }
 0x36d   : > { %v8153_v26 = vsel %vm7991_vm1, %v7911_v46, %v8073_v62  ;;  %vm7989_vm2 = vcmp.gt.f32.partialorder %v7909_v51, 0.0  ;;  %v8071_v28 = vmul.f32 %v12487_v37, %v7909_v51  ;;  %v9997_v6 = vpop.f32.mrf.mxu1 }
 0x36e   : > { %v10079_v1 = vpop.f32.mrf.mxu0  ;;  %8234 = vst.msk [vmem:[%s10666_s16 + $0x58] sm:$0xff] %vm8222_vm6, %v8153_v26  ;;  %vm7994_vm3 = vcmp.gt.f32.partialorder %v7914_v55, 0.0  ;;  %v8076_v38 = vmul.f32 %v12487_v37, %v7914_v55  ;;  %v7912_v10 = vadd.f32 %v12483_v23, %v7827_v7  ;;  %v7830_v61 = vmul.f32 %v12480_v42, %v7745_v17 }
 0x36f   : > { %v8151_v16 = vsel %vm7989_vm2, %v7909_v51, %v8071_v28  ;;  %v7743_v45 = vadd.f32 %v7462_v24, %v7100_v4  ;;  %v7105_v58 = vadd.f32 %v9997_v6, %v12160_v41  ;;  %v6832_v63 = vpop.f32.mrf.mxu1 }
 0x370   : > { %v7475_v39 = vpop.f32.mrf.mxu0  ;;  %8232 = vst.msk [vmem:[%s10666_s16 + $0x48] sm:$0xff] %vm8222_vm6, %v8151_v16  ;;  %v8156_v53 = vsel %vm7994_vm3, %v7914_v55, %v8076_v38  ;;  %vm7992_vm4 = vcmp.gt.f32.partialorder %v7912_v10, 0.0  ;;  %v8074_v21 = vmul.f32 %v12487_v37, %v7912_v10  ;;  %v7915_v44 = vadd.f32 %v12483_v23, %v7830_v61 }
 0x371   : > { %8237 = vst.msk [vmem:[%s10666_s16 + $0x70] sm:$0xff] %vm8222_vm6, %v8156_v53  ;;  %v7828_v46 = vmul.f32 %v12480_v42, %v7743_v45  ;;  %v7748_v60 = vadd.f32 %v10079_v1, %v7105_v58  ;;  %v7103_v11 = vadd.f32 %v6832_v63, %v12165_v36  ;;  %v9998_v41 = vpop.f32.mrf.mxu1 }
 0x372   : > { %v10080_v52 = vpop.f32.mrf.mxu0  ;;  %v8154_v43 = vsel %vm7992_vm4, %v7912_v10, %v8074_v21  ;;  %vm7995_vm5 = vcmp.gt.f32.partialorder %v7915_v44, 0.0  ;;  %v8077_v35 = vmul.f32 %v12487_v37, %v7915_v44  ;;  %v7106_v31 = vadd.f32 %v9998_v41, %v12173_v29 }
 0x373   : > { %8235 = vst.msk [vmem:[%s10666_s16 + $0x60] sm:$0xff] %vm8222_vm6, %v8154_v43  ;;  %v7913_v20 = vadd.f32 %v12483_v23, %v7828_v46  ;;  %v7833_v62 = vmul.f32 %v12480_v42, %v7748_v60  ;;  %v7746_v51 = vadd.f32 %v7475_v39, %v7103_v11  ;;  %v6835_v5 = vpop.f32.mrf.mxu1 }
 0x374   : > { %v7478_v24 = vpop.f32.mrf.mxu0  ;;  %v8157_v55 = vsel %vm7995_vm5, %v7915_v44, %v8077_v35  ;;  %v7749_v36 = vadd.f32 %v10080_v52, %v7106_v31  ;;  %v7104_v7 = vadd.f32 %v6835_v5, %v12179_v33 }
 0x375   : > { %8238 = vst.msk [vmem:[%s10666_s16 + $0x78] sm:$0xff] %vm8222_vm6, %v8157_v55  ;;  %vm7993_vm7 = vcmp.gt.f32.partialorder %v7913_v20, 0.0  ;;  %v8075_v17 = vmul.f32 %v12487_v37, %v7913_v20  ;;  %v7918_v29 = vadd.f32 %v12483_v23, %v7833_v62  ;;  %v7831_v4 = vmul.f32 %v12480_v42, %v7746_v51  ;;  %v10001_v26 = vpop.f32.mrf.mxu1 }
 0x376   : > { %v10083_v1 = vpop.f32.mrf.mxu0  ;;  %v7834_v6 = vmul.f32 %v12480_v42, %v7749_v36  ;;  %v7747_v39 = vadd.f32 %v7478_v24, %v7104_v7  ;;  %v7109_v38 = vadd.f32 %v10001_v26, %v12185_v47 }
 0x377   : > { %v8155_v10 = vsel %vm7993_vm7, %v7913_v20, %v8075_v17  ;;  %vm7998_vm8 = vcmp.gt.f32.partialorder %v7918_v29, 0.0  ;;  %v8080_v33 = vmul.f32 %v12487_v37, %v7918_v29  ;;  %v7916_v61 = vadd.f32 %v12483_v23, %v7831_v4  ;;  %v6848_v16 = vpop.f32.mrf.mxu1 }
 0x378   : > { %v7491_v28 = vpop.f32.mrf.mxu0  ;;  %8236 = vst.msk [vmem:[%s10666_s16 + $0x68] sm:$0xff] %vm8222_vm6, %v8155_v10  ;;  %v7919_v58 = vadd.f32 %v12483_v23, %v7834_v6  ;;  %v7832_v63 = vmul.f32 %v12480_v42, %v7747_v39  ;;  %v7752_v52 = vadd.f32 %v10083_v1, %v7109_v38  ;;  %v7107_v53 = vadd.f32 %v6848_v16, %v12190_v50 }
 0x379   : > { %v8160_v47 = vsel %vm7998_vm8, %v7918_v29, %v8080_v33  ;;  %vm7996_vm9 = vcmp.gt.f32.partialorder %v7916_v61, 0.0  ;;  %v8078_v21 = vmul.f32 %v12487_v37, %v7916_v61  ;;  %v10002_v44 = vpop.f32.mrf.mxu1 }
 0x37a   : > { %v10084_v45 = vpop.f32.mrf.mxu0  ;;  %8241 = vst.msk [vmem:[%s10666_s16 + $0x90] sm:$0xff] %vm8222_vm6, %v8160_v47  ;;  %vm7999_vm10 = vcmp.gt.f32.partialorder %v7919_v58, 0.0  ;;  %v8081_v60 = vmul.f32 %v12487_v37, %v7919_v58  ;;  %v7917_v11 = vadd.f32 %v12483_v23, %v7832_v63  ;;  %v7837_v41 = vmul.f32 %v12480_v42, %v7752_v52 }
 0x37b   : > { %v8158_v24 = vsel %vm7996_vm9, %v7916_v61, %v8078_v21  ;;  %v7750_v43 = vadd.f32 %v7491_v28, %v7107_v53  ;;  %v7110_v50 = vadd.f32 %v10002_v44, %v12198_v2  ;;  %v6851_v35 = vpop.f32.mrf.mxu1 }
 0x37c   : > { %v7494_v46 = vpop.f32.mrf.mxu0  ;;  %8239 = vst.msk [vmem:[%s10666_s16 + $0x80] sm:$0xff] %vm8222_vm6, %v8158_v24  ;;  %v8161_v20 = vsel %vm7999_vm10, %v7919_v58, %v8081_v60  ;;  %vm7997_vm11 = vcmp.gt.f32.partialorder %v7917_v11, 0.0  ;;  %v8079_v62 = vmul.f32 %v12487_v37, %v7917_v11  ;;  %v7922_v51 = vadd.f32 %v12483_v23, %v7837_v41 }
 0x37d   : > { %8242 = vst.msk [vmem:[%s10666_s16 + $0x98] sm:$0xff] %vm8222_vm6, %v8161_v20  ;;  %v7835_v5 = vmul.f32 %v12480_v42, %v7750_v43  ;;  %v7753_v1 = vadd.f32 %v10084_v45, %v7110_v50  ;;  %v7108_v55 = vadd.f32 %v6851_v35, %v12204_v13  ;;  %v10005_v2 = vpop.f32.mrf.mxu1 }
 0x37e   : > { %v10087_v31 = vpop.f32.mrf.mxu0  ;;  %v8159_v7 = vsel %vm7997_vm11, %v7917_v11, %v8079_v62  ;;  %vm8002_vm12 = vcmp.gt.f32.partialorder %v7922_v51, 0.0  ;;  %v8084_v17 = vmul.f32 %v12487_v37, %v7922_v51  ;;  %v7113_v29 = vadd.f32 %v10005_v2, %v12210_v57 }
 0x37f   : > { %8240 = vst.msk [vmem:[%s10666_s16 + $0x88] sm:$0xff] %vm8222_vm6, %v8159_v7  ;;  %v7920_v4 = vadd.f32 %v12483_v23, %v7835_v5  ;;  %v7838_v26 = vmul.f32 %v12480_v42, %v7753_v1  ;;  %v7751_v28 = vadd.f32 %v7494_v46, %v7108_v55  ;;  %v6864_v6 = vpop.f32.mrf.mxu1 }
 0x380   : > { %v7507_v36 = vpop.f32.mrf.mxu0  ;;  %v8164_v38 = vsel %vm8002_vm12, %v7922_v51, %v8084_v17  ;;  %v7756_v13 = vadd.f32 %v10087_v31, %v7113_v29  ;;  %v7111_v10 = vadd.f32 %v6864_v6, %v12215_v40  ;;  %v13270_v6 = vld [vmem:[#allocation37_spill] sm:$0xff] }
 0x381   : > { %8245 = vst.msk [vmem:[%s10666_s16 + $0xb0] sm:$0xff] %vm8222_vm6, %v8164_v38  ;;  %vm8000_vm13 = vcmp.gt.f32.partialorder %v7920_v4, 0.0  ;;  %v8082_v33 = vmul.f32 %v12487_v37, %v7920_v4  ;;  %v7923_v57 = vadd.f32 %v12483_v23, %v7838_v26  ;;  %v7836_v61 = vmul.f32 %v12480_v42, %v7751_v28  ;;  %v10006_v16 = vpop.f32.mrf.mxu1 }
 0x382   : > { %v10088_v39 = vpop.f32.mrf.mxu0  ;;  %v7841_v58 = vmul.f32 %v12480_v42, %v7756_v13  ;;  %v7754_v63 = vadd.f32 %v7507_v36, %v7111_v10  ;;  %v7114_v52 = vadd.f32 %v10006_v16, %v12223_v22  ;;  %v13271_v16 = vld [vmem:[#allocation38_spill] sm:$0xff] }
 0x383   : > { %v8162_v53 = vsel %vm8000_vm13, %v7920_v4, %v8082_v33  ;;  %vm8003_vm14 = vcmp.gt.f32.partialorder %v7923_v57, 0.0  ;;  %v8085_v40 = vmul.f32 %v12487_v37, %v7923_v57  ;;  %v7921_v47 = vadd.f32 %v12483_v23, %v7836_v61  ;;  %v6867_v21 = vpop.f32.mrf.mxu1 }
 0x384   : > { %v7510_v45 = vpop.f32.mrf.mxu0  ;;  %8243 = vst.msk [vmem:[%s10666_s16 + $0xa0] sm:$0xff] %vm8222_vm6, %v8162_v53  ;;  %v7926_v46 = vadd.f32 %v12483_v23, %v7841_v58  ;;  %v7839_v60 = vmul.f32 %v12480_v42, %v7754_v63  ;;  %v7757_v11 = vadd.f32 %v10088_v39, %v7114_v52  ;;  %v7112_v41 = vadd.f32 %v6867_v21, %v12229_v27 }
 0x385   : > { %v8165_v22 = vsel %vm8003_vm14, %v7923_v57, %v8085_v40  ;;  %vm8001_vm15 = vcmp.gt.f32.partialorder %v7921_v47, 0.0  ;;  %v8083_v24 = vmul.f32 %v12487_v37, %v7921_v47  ;;  %v10009_v43 = vpop.f32.mrf.mxu1 }
 0x386   : > { %v10091_v44 = vpop.f32.mrf.mxu0  ;;  %8246 = vst.msk [vmem:[%s10666_s16 + $0xb8] sm:$0xff] %vm8222_vm6, %v8165_v22  ;;  %vm8006_vm0 = vcmp.gt.f32.partialorder %v7926_v46, 0.0  ;;  %v8088_v35 = vmul.f32 %v12487_v37, %v7926_v46  ;;  %v7924_v31 = vadd.f32 %v12483_v23, %v7839_v60  ;;  %v7842_v20 = vmul.f32 %v12480_v42, %v7757_v11 }
 0x387   : > { %v8163_v62 = vsel %vm8001_vm15, %v7921_v47, %v8083_v24  ;;  %v7755_v51 = vadd.f32 %v7510_v45, %v7112_v41  ;;  %v7117_v27 = vadd.f32 %v10009_v43, %v12235_v0  ;;  %v6880_v5 = vpop.f32.mrf.mxu1 }
 0x388   : > { %v7523_v50 = vpop.f32.mrf.mxu0  ;;  %8244 = vst.msk [vmem:[%s10666_s16 + $0xa8] sm:$0xff] %vm8222_vm6, %v8163_v62  ;;  %v8168_v55 = vsel %vm8006_vm0, %v7926_v46, %v8088_v35  ;;  %vm8004_vm1 = vcmp.gt.f32.partialorder %v7924_v31, 0.0  ;;  %v8086_v2 = vmul.f32 %v12487_v37, %v7924_v31  ;;  %v7927_v36 = vadd.f32 %v12483_v23, %v7842_v20 }
 0x389   : > { %8249 = vst.msk [vmem:[%s10666_s16 + $0xd0] sm:$0xff] %vm8222_vm6, %v8168_v55  ;;  %v7840_v7 = vmul.f32 %v12480_v42, %v7755_v51  ;;  %v7760_v17 = vadd.f32 %v10091_v44, %v7117_v27  ;;  %v7115_v29 = vadd.f32 %v6880_v5, %v12240_v54  ;;  %v10010_v0 = vpop.f32.mrf.mxu1  ;;  %v13272_v44 = vld [vmem:[#allocation39_spill] sm:$0xff] }
 0x38a   : > { %v10092_v1 = vpop.f32.mrf.mxu0  ;;  %v8166_v26 = vsel %vm8004_vm1, %v7924_v31, %v8086_v2  ;;  %vm8007_vm2 = vcmp.gt.f32.partialorder %v7927_v36, 0.0  ;;  %v8089_v28 = vmul.f32 %v12487_v37, %v7927_v36  ;;  %v7118_v39 = vadd.f32 %v10010_v0, %v13270_v6  ;;  %v13273_v31 = vld [vmem:[#allocation40_spill] sm:$0xff] }
 0x38b   : > { %8247 = vst.msk [vmem:[%s10666_s16 + $0xc0] sm:$0xff] %vm8222_vm6, %v8166_v26  ;;  %v7925_v38 = vadd.f32 %v12483_v23, %v7840_v7  ;;  %v7845_v13 = vmul.f32 %v12480_v42, %v7760_v17  ;;  %v7758_v10 = vadd.f32 %v7523_v50, %v7115_v29  ;;  %v6883_v33 = vpop.f32.mrf.mxu1  ;;  %v13274_v17 = vld [vmem:[#allocation41_spill] sm:$0xff] }
 0x38c   : > { %v7526_v4 = vpop.f32.mrf.mxu0  ;;  %v8169_v61 = vsel %vm8007_vm2, %v7927_v36, %v8089_v28  ;;  %v7761_v54 = vadd.f32 %v10092_v1, %v7118_v39  ;;  %v7116_v45 = vadd.f32 %v6883_v33, %v13271_v16  ;;  %v13276_v16 = vld [vmem:[#allocation43_spill] sm:$0xff] }
 0x38d   : > { %8250 = vst.msk [vmem:[%s10666_s16 + $0xd8] sm:$0xff] %vm8222_vm6, %v8169_v61  ;;  %vm8005_vm3 = vcmp.gt.f32.partialorder %v7925_v38, 0.0  ;;  %v8087_v58 = vmul.f32 %v12487_v37, %v7925_v38  ;;  %v7930_v63 = vadd.f32 %v12483_v23, %v7845_v13  ;;  %v7843_v52 = vmul.f32 %v12480_v42, %v7758_v10  ;;  %v10013_v53 = vpop.f32.mrf.mxu1  ;;  %v13275_v13 = vld [vmem:[#allocation42_spill] sm:$0xff] }
 0x38e   : > { %v10095_v57 = vpop.f32.mrf.mxu0  ;;  %v7846_v47 = vmul.f32 %v12480_v42, %v7761_v54  ;;  %v7759_v21 = vadd.f32 %v7526_v4, %v7116_v45  ;;  %v7121_v46 = vadd.f32 %v10013_v53, %v13272_v44  ;;  %v13277_v44 = vld [vmem:[#allocation44_spill] sm:$0xff] }
 0x38f   : > { %v8167_v60 = vsel %vm8005_vm3, %v7925_v38, %v8087_v58  ;;  %vm8010_vm4 = vcmp.gt.f32.partialorder %v7930_v63, 0.0  ;;  %v8092_v11 = vmul.f32 %v12487_v37, %v7930_v63  ;;  %v7928_v41 = vadd.f32 %v12483_v23, %v7843_v52  ;;  %v6896_v22 = vpop.f32.mrf.mxu1 }
 0x390   : > { %v7539_v40 = vpop.f32.mrf.mxu0  ;;  %8248 = vst.msk [vmem:[%s10666_s16 + $0xc8] sm:$0xff] %vm8222_vm6, %v8167_v60  ;;  %v7931_v43 = vadd.f32 %v12483_v23, %v7846_v47  ;;  %v7844_v50 = vmul.f32 %v12480_v42, %v7759_v21  ;;  %v7764_v35 = vadd.f32 %v10095_v57, %v7121_v46  ;;  %v7119_v20 = vadd.f32 %v6896_v22, %v13273_v31 }
 0x391   : > { %v8172_v62 = vsel %vm8010_vm4, %v7930_v63, %v8092_v11  ;;  %vm8008_vm5 = vcmp.gt.f32.partialorder %v7928_v41, 0.0  ;;  %v8090_v51 = vmul.f32 %v12487_v37, %v7928_v41  ;;  %v10014_v27 = vpop.f32.mrf.mxu1 }
 0x392   : > { %v10096_v24 = vpop.f32.mrf.mxu0  ;;  %8253 = vst.msk [vmem:[%s10666_s16 + $0xf0] sm:$0xff] %vm8222_vm6, %v8172_v62  ;;  %vm8011_vm7 = vcmp.gt.f32.partialorder %v7931_v43, 0.0  ;;  %v8093_v1 = vmul.f32 %v12487_v37, %v7931_v43  ;;  %v7929_v55 = vadd.f32 %v12483_v23, %v7844_v50  ;;  %v7849_v2 = vmul.f32 %v12480_v42, %v7764_v35  ;;  %v13278_v35 = vld [vmem:[#allocation45_spill] sm:$0xff] }
 0x393   : > { %v8170_v36 = vsel %vm8008_vm5, %v7928_v41, %v8090_v51  ;;  %v7762_v7 = vadd.f32 %v7539_v40, %v7119_v20  ;;  %v7122_v29 = vadd.f32 %v10014_v27, %v13274_v17  ;;  %v6899_v0 = vpop.f32.mrf.mxu1 }
 0x394   : > { %v7542_v5 = vpop.f32.mrf.mxu0  ;;  %8251 = vst.msk [vmem:[%s10666_s16 + $0xe0] sm:$0xff] %vm8222_vm6, %v8170_v36  ;;  %v8173_v26 = vsel %vm8011_vm7, %v7931_v43, %v8093_v1  ;;  %vm8009_vm8 = vcmp.gt.f32.partialorder %v7929_v55, 0.0  ;;  %v8091_v28 = vmul.f32 %v12487_v37, %v7929_v55  ;;  %v7934_v6 = vadd.f32 %v12483_v23, %v7849_v2  ;;  %v13279_v36 = vld [vmem:[#allocation46_spill] sm:$0xff] }
 0x395   : > { %8254 = vst.msk [vmem:[%s10666_s16 + $0xf8] sm:$0xff] %vm8222_vm6, %v8173_v26  ;;  %v7847_v39 = vmul.f32 %v12480_v42, %v7762_v7  ;;  %v7765_v38 = vadd.f32 %v10096_v24, %v7122_v29  ;;  %v7120_v10 = vadd.f32 %v6899_v0, %v13275_v13  ;;  %v10017_v33 = vpop.f32.mrf.mxu1  ;;  %v13280_v13 = vld [vmem:[#allocation47_spill] sm:$0xff] }
 0x396   : > { %v10099_v4 = vpop.f32.mrf.mxu0  ;;  %v8171_v61 = vsel %vm8009_vm8, %v7929_v55, %v8091_v28  ;;  %vm8014_vm9 = vcmp.gt.f32.partialorder %v7934_v6, 0.0  ;;  %v8096_v54 = vmul.f32 %v12487_v37, %v7934_v6  ;;  %v7125_v45 = vadd.f32 %v10017_v33, %v13276_v16 }
 0x397   : > { %8252 = vst.msk [vmem:[%s10666_s16 + $0xe8] sm:$0xff] %vm8222_vm6, %v8171_v61  ;;  %v7932_v58 = vadd.f32 %v12483_v23, %v7847_v39  ;;  %v7850_v63 = vmul.f32 %v12480_v42, %v7765_v38  ;;  %v7763_v52 = vadd.f32 %v7542_v5, %v7120_v10  ;;  %v6912_v53 = vpop.f32.mrf.mxu1 }
 0x398   : > { %v7555_v57 = vpop.f32.mrf.mxu0  ;;  %v8176_v47 = vsel %vm8014_vm9, %v7934_v6, %v8096_v54  ;;  %v7768_v21 = vadd.f32 %v10099_v4, %v7125_v45  ;;  %v7123_v46 = vadd.f32 %v6912_v53, %v13277_v44  ;;  %v13282_v44 = vld [vmem:[#allocation49_spill] sm:$0xff] }
 0x399   : > { %8257 = vst.msk [vmem:[%s10666_s16 + $0x110] sm:$0xff] %vm8222_vm6, %v8176_v47  ;;  %vm8012_vm10 = vcmp.gt.f32.partialorder %v7932_v58, 0.0  ;;  %v8094_v60 = vmul.f32 %v12487_v37, %v7932_v58  ;;  %v7935_v11 = vadd.f32 %v12483_v23, %v7850_v63  ;;  %v7848_v41 = vmul.f32 %v12480_v42, %v7763_v52  ;;  %v10018_v22 = vpop.f32.mrf.mxu1  ;;  %v13281_v63 = vld [vmem:[#allocation48_spill] sm:$0xff] }
 0x39a   : > { %v10100_v40 = vpop.f32.mrf.mxu0  ;;  %v7853_v43 = vmul.f32 %v12480_v42, %v7768_v21  ;;  %v7766_v50 = vadd.f32 %v7555_v57, %v7123_v46  ;;  %v7126_v31 = vadd.f32 %v10018_v22, %v13278_v35  ;;  %v13283_v35 = vld [vmem:[#allocation50_spill] sm:$0xff] }
 0x39b   : > { %v8174_v20 = vsel %vm8012_vm10, %v7932_v58, %v8094_v60  ;;  %vm8015_vm11 = vcmp.gt.f32.partialorder %v7935_v11, 0.0  ;;  %v8097_v62 = vmul.f32 %v12487_v37, %v7935_v11  ;;  %v7933_v51 = vadd.f32 %v12483_v23, %v7848_v41  ;;  %v6915_v27 = vpop.f32.mrf.mxu1 }
 0x39c   : > { %v7558_v24 = vpop.f32.mrf.mxu0  ;;  %8255 = vst.msk [vmem:[%s10666_s16 + $0x100] sm:$0xff] %vm8222_vm6, %v8174_v20  ;;  %v7938_v1 = vadd.f32 %v12483_v23, %v7853_v43  ;;  %v7851_v55 = vmul.f32 %v12480_v42, %v7766_v50  ;;  %v7769_v2 = vadd.f32 %v10100_v40, %v7126_v31  ;;  %v7124_v7 = vadd.f32 %v6915_v27, %v13279_v36 }
 0x39d   : > { %v8177_v17 = vsel %vm8015_vm11, %v7935_v11, %v8097_v62  ;;  %vm8013_vm12 = vcmp.gt.f32.partialorder %v7933_v51, 0.0  ;;  %v8095_v29 = vmul.f32 %v12487_v37, %v7933_v51  ;;  %v10021_v0 = vpop.f32.mrf.mxu1 }
 0x39e   : > { %v10103_v5 = vpop.f32.mrf.mxu0  ;;  %8258 = vst.msk [vmem:[%s10666_s16 + $0x118] sm:$0xff] %vm8222_vm6, %v8177_v17  ;;  %vm8018_vm13 = vcmp.gt.f32.partialorder %v7938_v1, 0.0  ;;  %v8100_v26 = vmul.f32 %v12487_v37, %v7938_v1  ;;  %v7936_v28 = vadd.f32 %v12483_v23, %v7851_v55  ;;  %v7854_v6 = vmul.f32 %v12480_v42, %v7769_v2  ;;  %v13284_v2 = vld [vmem:[#allocation51_spill] sm:$0xff] }
 0x39f   : > { %v8175_v39 = vsel %vm8013_vm12, %v7933_v51, %v8095_v29  ;;  %v7767_v38 = vadd.f32 %v7558_v24, %v7124_v7  ;;  %v7129_v10 = vadd.f32 %v10021_v0, %v13280_v13  ;;  %v6928_v33 = vpop.f32.mrf.mxu1 }
 0x3a0   : > { %v7571_v4 = vpop.f32.mrf.mxu0  ;;  %8256 = vst.msk [vmem:[%s10666_s16 + $0x108] sm:$0xff] %vm8222_vm6, %v8175_v39  ;;  %v8180_v61 = vsel %vm8018_vm13, %v7938_v1, %v8100_v26  ;;  %vm8016_vm14 = vcmp.gt.f32.partialorder %v7936_v28, 0.0  ;;  %v8098_v54 = vmul.f32 %v12487_v37, %v7936_v28  ;;  %v7939_v16 = vadd.f32 %v12483_v23, %v7854_v6  ;;  %v13285_v39 = vld [vmem:[#allocation52_spill] sm:$0xff] }
 0x3a1   : > { %8261 = vst.msk [vmem:[%s10666_s16 + $0x130] sm:$0xff] %vm8222_vm6, %v8180_v61  ;;  %v7852_v45 = vmul.f32 %v12480_v42, %v7767_v38  ;;  %v7772_v58 = vadd.f32 %v10103_v5, %v7129_v10  ;;  %v7127_v52 = vadd.f32 %v6928_v33, %v13281_v63  ;;  %v10022_v53 = vpop.f32.mrf.mxu1  ;;  %v13286_v63 = vld [vmem:[#allocation7_spill] sm:$0xff] }
 0x3a2   : > { %v10104_v57 = vpop.f32.mrf.mxu0  ;;  %v8178_v47 = vsel %vm8016_vm14, %v7936_v28, %v8098_v54  ;;  %vm8019_vm15 = vcmp.gt.f32.partialorder %v7939_v16, 0.0  ;;  %v8101_v21 = vmul.f32 %v12487_v37, %v7939_v16  ;;  %v7130_v46 = vadd.f32 %v10022_v53, %v13282_v44 }
 0x3a3   : > { %8259 = vst.msk [vmem:[%s10666_s16 + $0x120] sm:$0xff] %vm8222_vm6, %v8178_v47  ;;  %v7937_v60 = vadd.f32 %v12483_v23, %v7852_v45  ;;  %v7857_v11 = vmul.f32 %v12480_v42, %v7772_v58  ;;  %v7770_v41 = vadd.f32 %v7571_v4, %v7127_v52  ;;  %v6931_v22 = vpop.f32.mrf.mxu1 }
 0x3a4   : > { %v7574_v40 = vpop.f32.mrf.mxu0  ;;  %v8181_v43 = vsel %vm8019_vm15, %v7939_v16, %v8101_v21  ;;  %v7773_v50 = vadd.f32 %v10104_v57, %v7130_v46  ;;  %v7128_v31 = vadd.f32 %v6931_v22, %v13283_v35 }
 0x3a5   : > { %8262 = vst.msk [vmem:[%s10666_s16 + $0x138] sm:$0xff] %vm8222_vm6, %v8181_v43  ;;  %vm8017_vm0 = vcmp.gt.f32.partialorder %v7937_v60, 0.0  ;;  %v8099_v20 = vmul.f32 %v12487_v37, %v7937_v60  ;;  %v7942_v62 = vadd.f32 %v12483_v23, %v7857_v11  ;;  %v7855_v51 = vmul.f32 %v12480_v42, %v7770_v41  ;;  %v10025_v27 = vpop.f32.mrf.mxu1 }
 0x3a6   : > { %v10107_v24 = vpop.f32.mrf.mxu0  ;;  %v7858_v1 = vmul.f32 %v12480_v42, %v7773_v50  ;;  %v7771_v55 = vadd.f32 %v7574_v40, %v7128_v31  ;;  %v7133_v36 = vadd.f32 %v10025_v27, %v13284_v2 }
 0x3a7   : > { %v8179_v7 = vsel %vm8017_vm0, %v7937_v60, %v8099_v20  ;;  %vm8022_vm1 = vcmp.gt.f32.partialorder %v7942_v62, 0.0  ;;  %v8104_v17 = vmul.f32 %v12487_v37, %v7942_v62  ;;  %v7940_v29 = vadd.f32 %v12483_v23, %v7855_v51  ;;  %v6944_v0 = vpop.f32.mrf.mxu1 }
 0x3a8   : > { %v7587_v5 = vpop.f32.mrf.mxu0  ;;  %8260 = vst.msk [vmem:[%s10666_s16 + $0x128] sm:$0xff] %vm8222_vm6, %v8179_v7  ;;  %v7943_v26 = vadd.f32 %v12483_v23, %v7858_v1  ;;  %v7856_v28 = vmul.f32 %v12480_v42, %v7771_v55  ;;  %v7776_v6 = vadd.f32 %v10107_v24, %v7133_v36  ;;  %v7131_v38 = vadd.f32 %v6944_v0, %v13285_v39 }
 0x3a9   : > { %v8184_v13 = vsel %vm8022_vm1, %v7942_v62, %v8104_v17  ;;  %vm8020_vm2 = vcmp.gt.f32.partialorder %v7940_v29, 0.0  ;;  %v8102_v10 = vmul.f32 %v12487_v37, %v7940_v29  ;;  %v10026_v33 = vpop.f32.mrf.mxu1 }
 0x3aa   : > { %v10108_v4 = vpop.f32.mrf.mxu0  ;;  %8265 = vst.msk [vmem:[%s10666_s16 + $0x150] sm:$0xff] %vm8222_vm6, %v8184_v13  ;;  %vm8023_vm3 = vcmp.gt.f32.partialorder %v7943_v26, 0.0  ;;  %v8105_v61 = vmul.f32 %v12487_v37, %v7943_v26  ;;  %v7941_v54 = vadd.f32 %v12483_v23, %v7856_v28  ;;  %v7861_v16 = vmul.f32 %v12480_v42, %v7776_v6 }
 0x3ab   : > { %v8182_v45 = vsel %vm8020_vm2, %v7940_v29, %v8102_v10  ;;  %v7774_v58 = vadd.f32 %v7587_v5, %v7131_v38  ;;  %v7134_v52 = vadd.f32 %v10026_v33, %v13286_v63  ;;  %v6947_v53 = vpop.f32.mrf.mxu1  ;;  %v13287_v29 = vld [vmem:[#allocation8_spill] sm:$0xff]  ;;  %v13288_v10 = vld [vmem:[#allocation9_spill] sm:$0xff] }
 0x3ac   : > { %v7590_v57 = vpop.f32.mrf.mxu0  ;;  %8263 = vst.msk [vmem:[%s10666_s16 + $0x140] sm:$0xff] %vm8222_vm6, %v8182_v45  ;;  %v8185_v47 = vsel %vm8023_vm3, %v7943_v26, %v8105_v61  ;;  %vm8021_vm4 = vcmp.gt.f32.partialorder %v7941_v54, 0.0  ;;  %v8103_v21 = vmul.f32 %v12487_v37, %v7941_v54  ;;  %v7946_v44 = vadd.f32 %v12483_v23, %v7861_v16 }
 0x3ad   : > { %8266 = vst.msk [vmem:[%s10666_s16 + $0x158] sm:$0xff] %vm8222_vm6, %v8185_v47  ;;  %v7859_v46 = vmul.f32 %v12480_v42, %v7774_v58  ;;  %v7777_v60 = vadd.f32 %v10108_v4, %v7134_v52  ;;  %v7132_v11 = vadd.f32 %v6947_v53, %v12354_v49  ;;  %v10029_v41 = vpop.f32.mrf.mxu1 }
 0x3ae   : > { %v10111_v40 = vpop.f32.mrf.mxu0  ;;  %v8183_v24 = vsel %vm8021_vm4, %v7941_v54, %v8103_v21  ;;  %vm8026_vm5 = vcmp.gt.f32.partialorder %v7946_v44, 0.0  ;;  %v8108_v43 = vmul.f32 %v12487_v37, %v7946_v44  ;;  %v7137_v50 = vadd.f32 %v10029_v41, %v12360_v56 }
 0x3af   : > { %8264 = vst.msk [vmem:[%s10666_s16 + $0x148] sm:$0xff] %vm8222_vm6, %v8183_v24  ;;  %v7944_v35 = vadd.f32 %v12483_v23, %v7859_v46  ;;  %v7862_v31 = vmul.f32 %v12480_v42, %v7777_v60  ;;  %v7775_v20 = vadd.f32 %v7590_v57, %v7132_v11  ;;  %v6960_v62 = vpop.f32.mrf.mxu1  ;;  %v12788_v11 = vld [vmem:[#allocation4] ss:$0 sm:$0xff] }
 0x3b0   : > { %v7603_v22 = vpop.f32.mrf.mxu0  ;;  %v8188_v27 = vsel %vm8026_vm5, %v7946_v44, %v8108_v43  ;;  %v7780_v49 = vadd.f32 %v10111_v40, %v7137_v50  ;;  %v7135_v5 = vadd.f32 %v6960_v62, %v12366_v18 }
 0x3b1   : > { %8269 = vst.msk [vmem:[%s10666_s16 + $0x170] sm:$0xff] %vm8222_vm6, %v8188_v27  ;;  %vm8024_vm7 = vcmp.gt.f32.partialorder %v7944_v35, 0.0  ;;  %v8106_v1 = vmul.f32 %v12487_v37, %v7944_v35  ;;  %v7947_v56 = vadd.f32 %v12483_v23, %v7862_v31  ;;  %v7860_v55 = vmul.f32 %v12480_v42, %v7775_v20  ;;  %v10030_v2 = vpop.f32.mrf.mxu1 }
 0x3b2   : > { %v10112_v51 = vpop.f32.mrf.mxu0  ;;  %v7865_v7 = vmul.f32 %v12480_v42, %v7780_v49  ;;  %v7778_v17 = vadd.f32 %v7603_v22, %v7135_v5  ;;  %v7138_v0 = vadd.f32 %v10030_v2, %v13287_v29 }
 0x3b3   : > { %v8186_v4 = vsel %vm8024_vm7, %v7944_v35, %v8106_v1  ;;  %vm8027_vm8 = vcmp.gt.f32.partialorder %v7947_v56, 0.0  ;;  %v8109_v18 = vmul.f32 %v12487_v37, %v7947_v56  ;;  %v7945_v26 = vadd.f32 %v12483_v23, %v7860_v55  ;;  %v6963_v28 = vpop.f32.mrf.mxu1 }
 0x3b4   : > { %v7606_v36 = vpop.f32.mrf.mxu0  ;;  %8267 = vst.msk [vmem:[%s10666_s16 + $0x160] sm:$0xff] %vm8222_vm6, %v8186_v4  ;;  %v7950_v39 = vadd.f32 %v12483_v23, %v7865_v7  ;;  %v7863_v38 = vmul.f32 %v12480_v42, %v7778_v17  ;;  %v7781_v13 = vadd.f32 %v10112_v51, %v7138_v0  ;;  %v7136_v33 = vadd.f32 %v6963_v28, %v13288_v10 }
 0x3b5   : > { %v8189_v57 = vsel %vm8027_vm8, %v7947_v56, %v8109_v18  ;;  %vm8025_vm9 = vcmp.gt.f32.partialorder %v7945_v26, 0.0  ;;  %v8107_v61 = vmul.f32 %v12487_v37, %v7945_v26  ;;  %v10033_v54 = vpop.f32.mrf.mxu1 }
 0x3b6   : > { %v10115_v6 = vpop.f32.mrf.mxu0  ;;  %8270 = vst.msk [vmem:[%s10666_s16 + $0x178] sm:$0xff] %vm8222_vm6, %v8189_v57  ;;  %vm8030_vm10 = vcmp.gt.f32.partialorder %v7950_v39, 0.0  ;;  %v8112_v45 = vmul.f32 %v12487_v37, %v7950_v39  ;;  %v7948_v58 = vadd.f32 %v12483_v23, %v7863_v38  ;;  %v7866_v63 = vmul.f32 %v12480_v42, %v7781_v13 }
 0x3b7   : > { %v8187_v52 = vsel %vm8025_vm9, %v7945_v26, %v8107_v61  ;;  %v7779_v53 = vadd.f32 %v7606_v36, %v7136_v33  ;;  %v7141_v40 = vadd.f32 %v10033_v54, %v12383_v25  ;;  %v6976_v47 = vpop.f32.mrf.mxu1 }
 0x3b8   : > { %v7619_v16 = vpop.f32.mrf.mxu0  ;;  %8268 = vst.msk [vmem:[%s10666_s16 + $0x168] sm:$0xff] %vm8222_vm6, %v8187_v52  ;;  %v8192_v44 = vsel %vm8030_vm10, %v7950_v39, %v8112_v45  ;;  %vm8028_vm11 = vcmp.gt.f32.partialorder %v7948_v58, 0.0  ;;  %v8110_v46 = vmul.f32 %v12487_v37, %v7948_v58  ;;  %v7951_v60 = vadd.f32 %v12483_v23, %v7866_v63  ;;  %v12796_v23 = vld [vmem:[#allocation4 + $0x1] ss:$0 sm:$0xff] }
 0x3b9   : > { %8273 = vst.msk [vmem:[%s10666_s16 + $0x190] sm:$0xff] %vm8222_vm6, %v8192_v44  ;;  %v7864_v42 = vmul.f32 %v12788_v11, %v7779_v53  ;;  %v7784_v41 = vadd.f32 %v10115_v6, %v7141_v40  ;;  %v7139_v25 = vadd.f32 %v6976_v47, %v12389_v30  ;;  %v10034_v22 = vpop.f32.mrf.mxu1 }
 0x3ba   : > { %v10116_v21 = vpop.f32.mrf.mxu0  ;;  %v8190_v43 = vsel %vm8028_vm11, %v7948_v58, %v8110_v46  ;;  %vm8031_vm12 = vcmp.gt.f32.partialorder %v7951_v60, 0.0  ;;  %v8113_v50 = vmul.f32 %v12487_v37, %v7951_v60  ;;  %v7142_v35 = vadd.f32 %v10034_v22, %v12395_v48 }
 0x3bb   : > { %8271 = vst.msk [vmem:[%s10666_s16 + $0x180] sm:$0xff] %vm8222_vm6, %v8190_v43  ;;  %v7949_v31 = vadd.f32 %v12796_v23, %v7864_v42  ;;  %v7869_v20 = vmul.f32 %v12788_v11, %v7784_v41  ;;  %v7782_v62 = vadd.f32 %v7619_v16, %v7139_v25  ;;  %v6979_v51 = vpop.f32.mrf.mxu1  ;;  %v13290_v41 = vld [vmem:[#allocation11_spill] sm:$0xff] }
 0x3bc   : > { %v7622_v24 = vpop.f32.mrf.mxu0  ;;  %v8193_v27 = vsel %vm8031_vm12, %v7951_v60, %v8113_v50  ;;  %v7785_v49 = vadd.f32 %v10116_v21, %v7142_v35  ;;  %v7140_v5 = vadd.f32 %v6979_v51, %v12400_v9  ;;  %v13289_v21 = vld [vmem:[#allocation10_spill] sm:$0xff] }
 0x3bd   : > { %8274 = vst.msk [vmem:[%s10666_s16 + $0x198] sm:$0xff] %vm8222_vm6, %v8193_v27  ;;  %vm8029_vm13 = vcmp.gt.f32.partialorder %v7949_v31, 0.0  ;;  %v8111_v48 = vmul.f32 %v12487_v37, %v7949_v31  ;;  %v7954_v1 = vadd.f32 %v12796_v23, %v7869_v20  ;;  %v7867_v56 = vmul.f32 %v12788_v11, %v7782_v62  ;;  %v10037_v55 = vpop.f32.mrf.mxu1  ;;  %v13291_v62 = vld [vmem:[#allocation12_spill] sm:$0xff] }
 0x3be   : > { %v10119_v30 = vpop.f32.mrf.mxu0  ;;  %v7870_v36 = vmul.f32 %v12788_v11, %v7785_v49  ;;  %v7783_v7 = vadd.f32 %v7622_v24, %v7140_v5  ;;  %v7145_v17 = vadd.f32 %v10037_v55, %v12404_v34  ;;  %v13292_v55 = vld [vmem:[#allocation13_spill] sm:$0xff] }
 0x3bf   : > { %v8191_v29 = vsel %vm8029_vm13, %v7949_v31, %v8111_v48  ;;  %vm8034_vm14 = vcmp.gt.f32.partialorder %v7954_v1, 0.0  ;;  %v8116_v9 = vmul.f32 %v12487_v37, %v7954_v1  ;;  %v7952_v0 = vadd.f32 %v12796_v23, %v7867_v56  ;;  %v6992_v4 = vpop.f32.mrf.mxu1 }
 0x3c0   : > { %v7635_v2 = vpop.f32.mrf.mxu0  ;;  %8272 = vst.msk [vmem:[%s10666_s16 + $0x188] sm:$0xff] %vm8222_vm6, %v8191_v29  ;;  %v7955_v26 = vadd.f32 %v12796_v23, %v7870_v36  ;;  %v7868_v28 = vmul.f32 %v12788_v11, %v7783_v7  ;;  %v7788_v6 = vadd.f32 %v10119_v30, %v7145_v17  ;;  %v7143_v39 = vadd.f32 %v6992_v4, %v12408_v59 }
 0x3c1   : > { %v8196_v34 = vsel %vm8034_vm14, %v7954_v1, %v8116_v9  ;;  %vm8032_vm15 = vcmp.gt.f32.partialorder %v7952_v0, 0.0  ;;  %v8114_v38 = vmul.f32 %v12487_v37, %v7952_v0  ;;  %v10038_v13 = vpop.f32.mrf.mxu1 }
 0x3c2   : > { %v10120_v18 = vpop.f32.mrf.mxu0  ;;  %8277 = vst.msk [vmem:[%s10666_s16 + $0x1b0] sm:$0xff] %vm8222_vm6, %v8196_v34  ;;  %vm8035_vm0 = vcmp.gt.f32.partialorder %v7955_v26, 0.0  ;;  %v8117_v33 = vmul.f32 %v12487_v37, %v7955_v26  ;;  %v7953_v57 = vadd.f32 %v12796_v23, %v7868_v28  ;;  %v7873_v61 = vmul.f32 %v12788_v11, %v7788_v6 }
 0x3c3   : > { %v8194_v54 = vsel %vm8032_vm15, %v7952_v0, %v8114_v38  ;;  %v7786_v16 = vadd.f32 %v7635_v2, %v7143_v39  ;;  %v7146_v59 = vadd.f32 %v10038_v13, %v12413_v12  ;;  %v6995_v45 = vpop.f32.mrf.mxu1 }
 0x3c4   : > { %v7638_v10 = vpop.f32.mrf.mxu0  ;;  %8275 = vst.msk [vmem:[%s10666_s16 + $0x1a0] sm:$0xff] %vm8222_vm6, %v8194_v54  ;;  %v8197_v63 = vsel %vm8035_vm0, %v7955_v26, %v8117_v33  ;;  %vm8033_vm1 = vcmp.gt.f32.partialorder %v7953_v57, 0.0  ;;  %v8115_v52 = vmul.f32 %v12487_v37, %v7953_v57  ;;  %v7958_v53 = vadd.f32 %v12796_v23, %v7873_v61  ;;  %v13293_v26 = vld [vmem:[#allocation14_spill] sm:$0xff]  ;;  %v13294_v54 = vld [vmem:[#allocation15_spill] sm:$0xff] }
 0x3c5   : > { %8278 = vst.msk [vmem:[%s10666_s16 + $0x1b8] sm:$0xff] %vm8222_vm6, %v8197_v63  ;;  %v7871_v40 = vmul.f32 %v12788_v11, %v7786_v16  ;;  %v7789_v47 = vadd.f32 %v10120_v18, %v7146_v59  ;;  %v7144_v44 = vadd.f32 %v6995_v45, %v13289_v21  ;;  %v10041_v12 = vpop.f32.mrf.mxu1 }
 0x3c6   : > { %v10123_v58 = vpop.f32.mrf.mxu0  ;;  %v8195_v60 = vsel %vm8033_vm1, %v7953_v57, %v8115_v52  ;;  %vm8038_vm2 = vcmp.gt.f32.partialorder %v7958_v53, 0.0  ;;  %v8120_v42 = vmul.f32 %v12487_v37, %v7958_v53  ;;  %v7149_v25 = vadd.f32 %v10041_v12, %v13290_v41 }
 0x3c7   : > { %8276 = vst.msk [vmem:[%s10666_s16 + $0x1a8] sm:$0xff] %vm8222_vm6, %v8195_v60  ;;  %v7956_v22 = vadd.f32 %v12796_v23, %v7871_v40  ;;  %v7874_v24 = vmul.f32 %v12788_v11, %v7789_v47  ;;  %v7787_v43 = vadd.f32 %v7638_v10, %v7144_v44  ;;  %v7008_v50 = vpop.f32.mrf.mxu1  ;;  %v13295_v47 = vld [vmem:[#allocation16_spill] sm:$0xff] }
 0x3c8   : > { %v7651_v46 = vpop.f32.mrf.mxu0  ;;  %v8200_v31 = vsel %vm8038_vm2, %v7958_v53, %v8120_v42  ;;  %v7792_v20 = vadd.f32 %v10123_v58, %v7149_v25  ;;  %v7147_v51 = vadd.f32 %v7008_v50, %v13291_v62  ;;  %v13296_v42 = vld [vmem:[#allocation17_spill] sm:$0xff] }
 0x3c9   : > { %8281 = vst.msk [vmem:[%s10666_s16 + $0x1d0] sm:$0xff] %vm8222_vm6, %v8200_v31  ;;  %vm8036_vm3 = vcmp.gt.f32.partialorder %v7956_v22, 0.0  ;;  %v8118_v30 = vmul.f32 %v12487_v37, %v7956_v22  ;;  %v7959_v27 = vadd.f32 %v12796_v23, %v7874_v24  ;;  %v7872_v49 = vmul.f32 %v12788_v11, %v7787_v43  ;;  %v10042_v5 = vpop.f32.mrf.mxu1 }
 0x3ca   : > { %v10124_v35 = vpop.f32.mrf.mxu0  ;;  %v7877_v1 = vmul.f32 %v12788_v11, %v7792_v20  ;;  %v7790_v56 = vadd.f32 %v7651_v46, %v7147_v51  ;;  %v7150_v2 = vadd.f32 %v10042_v5, %v13292_v55  ;;  %v13297_v20 = vld [vmem:[#allocation18_spill] sm:$0xff] }
 0x3cb   : > { %v8198_v36 = vsel %vm8036_vm3, %v7956_v22, %v8118_v30  ;;  %vm8039_vm4 = vcmp.gt.f32.partialorder %v7959_v27, 0.0  ;;  %v8121_v7 = vmul.f32 %v12487_v37, %v7959_v27  ;;  %v7957_v17 = vadd.f32 %v12796_v23, %v7872_v49  ;;  %v7011_v29 = vpop.f32.mrf.mxu1 }
 0x3cc   : > { %v7654_v48 = vpop.f32.mrf.mxu0  ;;  %8279 = vst.msk [vmem:[%s10666_s16 + $0x1c0] sm:$0xff] %vm8222_vm6, %v8198_v36  ;;  %v7962_v0 = vadd.f32 %v12796_v23, %v7877_v1  ;;  %v7875_v4 = vmul.f32 %v12788_v11, %v7790_v56  ;;  %v7793_v18 = vadd.f32 %v10124_v35, %v7150_v2  ;;  %v7148_v28 = vadd.f32 %v7011_v29, %v13293_v26  ;;  %v13298_v56 = vld [vmem:[#allocation19_spill] sm:$0xff] }
 0x3cd   : > { %v8201_v6 = vsel %vm8039_vm4, %v7959_v27, %v8121_v7  ;;  %vm8037_vm5 = vcmp.gt.f32.partialorder %v7957_v17, 0.0  ;;  %v8119_v39 = vmul.f32 %v12487_v37, %v7957_v17  ;;  %v10045_v34 = vpop.f32.mrf.mxu1 }
 0x3ce   : > { %v10127_v9 = vpop.f32.mrf.mxu0  ;;  %8282 = vst.msk [vmem:[%s10666_s16 + $0x1d8] sm:$0xff] %vm8222_vm6, %v8201_v6  ;;  %vm8042_vm7 = vcmp.gt.f32.partialorder %v7962_v0, 0.0  ;;  %v8124_v13 = vmul.f32 %v12487_v37, %v7962_v0  ;;  %v7960_v10 = vadd.f32 %v12796_v23, %v7875_v4  ;;  %v7878_v33 = vmul.f32 %v12788_v11, %v7793_v18  ;;  %v13299_v18 = vld [vmem:[#allocation20_spill] sm:$0xff] }
 0x3cf   : > { %v8199_v57 = vsel %vm8037_vm5, %v7957_v17, %v8119_v39  ;;  %v7791_v61 = vadd.f32 %v7654_v48, %v7148_v28  ;;  %v7153_v16 = vadd.f32 %v10045_v34, %v13294_v54  ;;  %v7024_v59 = vpop.f32.mrf.mxu1 }
 0x3d0   : > { %v7667_v38 = vpop.f32.mrf.mxu0  ;;  %8280 = vst.msk [vmem:[%s10666_s16 + $0x1c8] sm:$0xff] %vm8222_vm6, %v8199_v57  ;;  %v8204_v58 = vsel %vm8042_vm7, %v7962_v0, %v8124_v13  ;;  %vm8040_vm8 = vcmp.gt.f32.partialorder %v7960_v10, 0.0  ;;  %v8122_v63 = vmul.f32 %v12487_v37, %v7960_v10  ;;  %v7963_v52 = vadd.f32 %v12796_v23, %v7878_v33 }
 0x3d1   : > { %8285 = vst.msk [vmem:[%s10666_s16 + $0x1f0] sm:$0xff] %vm8222_vm6, %v8204_v58  ;;  %v7876_v53 = vmul.f32 %v12788_v11, %v7791_v61  ;;  %v7796_v40 = vadd.f32 %v10127_v9, %v7153_v16  ;;  %v7151_v21 = vadd.f32 %v7024_v59, %v13295_v47  ;;  %v10046_v44 = vpop.f32.mrf.mxu1  ;;  %v13300_v61 = vld [vmem:[#allocation21_spill] sm:$0xff] }
 0x3d2   : > { %v10128_v45 = vpop.f32.mrf.mxu0  ;;  %v8202_v46 = vsel %vm8040_vm8, %v7960_v10, %v8122_v63  ;;  %vm8043_vm9 = vcmp.gt.f32.partialorder %v7963_v52, 0.0  ;;  %v8125_v60 = vmul.f32 %v12487_v37, %v7963_v52  ;;  %v7154_v41 = vadd.f32 %v10046_v44, %v13296_v42 }
 0x3d3   : > { %8283 = vst.msk [vmem:[%s10666_s16 + $0x1e0] sm:$0xff] %vm8222_vm6, %v8202_v46  ;;  %v7961_v25 = vadd.f32 %v12796_v23, %v7876_v53  ;;  %v7881_v22 = vmul.f32 %v12788_v11, %v7796_v40  ;;  %v7794_v24 = vadd.f32 %v7667_v38, %v7151_v21  ;;  %v7027_v43 = vpop.f32.mrf.mxu1 }
 0x3d4   : > { %v7670_v12 = vpop.f32.mrf.mxu0  ;;  %v8205_v35 = vsel %vm8043_vm9, %v7963_v52, %v8125_v60  ;;  %v7797_v31 = vadd.f32 %v10128_v45, %v7154_v41  ;;  %v7152_v62 = vadd.f32 %v7027_v43, %v13297_v20 }
 0x3d5   : > { %8286 = vst.msk [vmem:[%s10666_s16 + $0x1f8] sm:$0xff] %vm8222_vm6, %v8205_v35  ;;  %vm8041_vm10 = vcmp.gt.f32.partialorder %v7961_v25, 0.0  ;;  %v8123_v51 = vmul.f32 %v12487_v37, %v7961_v25  ;;  %v7966_v30 = vadd.f32 %v12796_v23, %v7881_v22  ;;  %v7879_v27 = vmul.f32 %v12788_v11, %v7794_v24  ;;  %v10049_v49 = vpop.f32.mrf.mxu1 }
 0x3d6   : > { %v10131_v50 = vpop.f32.mrf.mxu0  ;;  %v7882_v48 = vmul.f32 %v12788_v11, %v7797_v31  ;;  %v7795_v1 = vadd.f32 %v7670_v12, %v7152_v62  ;;  %v7157_v55 = vadd.f32 %v10049_v49, %v13298_v56 }
 0x3d7   : > { %v8203_v2 = vsel %vm8041_vm10, %v7961_v25, %v8123_v51  ;;  %vm8046_vm11 = vcmp.gt.f32.partialorder %v7966_v30, 0.0  ;;  %v8128_v36 = vmul.f32 %v12487_v37, %v7966_v30  ;;  %v7964_v7 = vadd.f32 %v12796_v23, %v7879_v27  ;;  %v7040_v17 = vpop.f32.mrf.mxu1 }
 0x3d8   : > { %v7683_v5 = vpop.f32.mrf.mxu0  ;;  %8284 = vst.msk [vmem:[%s10666_s16 + $0x1e8] sm:$0xff] %vm8222_vm6, %v8203_v2  ;;  %v7967_v9 = vadd.f32 %v12796_v23, %v7882_v48  ;;  %v7880_v0 = vmul.f32 %v12788_v11, %v7795_v1  ;;  %v7800_v4 = vadd.f32 %v10131_v50, %v7157_v55  ;;  %v7155_v26 = vadd.f32 %v7040_v17, %v13299_v18 }
 0x3d9   : > { %v8208_v28 = vsel %vm8046_vm11, %v7966_v30, %v8128_v36  ;;  %vm8044_vm12 = vcmp.gt.f32.partialorder %v7964_v7, 0.0  ;;  %v8126_v6 = vmul.f32 %v12487_v37, %v7964_v7  ;;  %v10050_v39 = vpop.f32.mrf.mxu1  ;;  %v13301_v30 = vld [vmem:[#allocation22_spill] sm:$0xff] }
 0x3da   : > { %v10132_v29 = vpop.f32.mrf.mxu0  ;;  %8289 = vst.msk [vmem:[%s10666_s16 + $0x210] sm:$0xff] %vm8222_vm6, %v8208_v28  ;;  %vm8047_vm13 = vcmp.gt.f32.partialorder %v7967_v9, 0.0  ;;  %v8129_v38 = vmul.f32 %v12487_v37, %v7967_v9  ;;  %v7965_v13 = vadd.f32 %v12796_v23, %v7880_v0  ;;  %v7885_v10 = vmul.f32 %v12788_v11, %v7800_v4 }
 0x3db   : > { %v8206_v33 = vsel %vm8044_vm12, %v7964_v7, %v8126_v6  ;;  %v7798_v57 = vadd.f32 %v7683_v5, %v7155_v26  ;;  %v7158_v54 = vadd.f32 %v10050_v39, %v13300_v61  ;;  %v7043_v16 = vpop.f32.mrf.mxu1 }
 0x3dc   : > { %v7686_v34 = vpop.f32.mrf.mxu0  ;;  %8287 = vst.msk [vmem:[%s10666_s16 + $0x200] sm:$0xff] %vm8222_vm6, %v8206_v33  ;;  %v8209_v45 = vsel %vm8047_vm13, %v7967_v9, %v8129_v38  ;;  %vm8045_vm14 = vcmp.gt.f32.partialorder %v7965_v13, 0.0  ;;  %v8127_v58 = vmul.f32 %v12487_v37, %v7965_v13  ;;  %v7970_v63 = vadd.f32 %v12796_v23, %v7885_v10 }
 0x3dd   : > { %8290 = vst.msk [vmem:[%s10666_s16 + $0x218] sm:$0xff] %vm8222_vm6, %v8209_v45  ;;  %v7883_v52 = vmul.f32 %v12788_v11, %v7798_v57  ;;  %v7801_v53 = vadd.f32 %v10132_v29, %v7158_v54  ;;  %v7156_v40 = vadd.f32 %v7043_v16, %v12453_v19  ;;  %v10053_v47 = vpop.f32.mrf.mxu1  ;;  %v13302_v16 = vld [vmem:[#allocation23_spill] sm:$0xff] }
 0x3de   : > { %v10135_v59 = vpop.f32.mrf.mxu0  ;;  %v8207_v44 = vsel %vm8045_vm14, %v7965_v13, %v8127_v58  ;;  %vm8050_vm15 = vcmp.gt.f32.partialorder %v7970_v63, 0.0  ;;  %v8132_v12 = vmul.f32 %v12487_v37, %v7970_v63  ;;  %v7161_v46 = vadd.f32 %v10053_v47, %v12456_v32 }
 0x3df   : > { %8288 = vst.msk [vmem:[%s10666_s16 + $0x208] sm:$0xff] %vm8222_vm6, %v8207_v44  ;;  %v7968_v60 = vadd.f32 %v12796_v23, %v7883_v52  ;;  %v7886_v42 = vmul.f32 %v12788_v11, %v7801_v53  ;;  %v7799_v41 = vadd.f32 %v7686_v34, %v7156_v40  ;;  %v7056_v25 = vpop.f32.mrf.mxu1 }
 0x3e0   : > { %v7699_v21 = vpop.f32.mrf.mxu0  ;;  %v8212_v24 = vsel %vm8050_vm15, %v7970_v63, %v8132_v12  ;;  %v7804_v19 = vadd.f32 %v10135_v59, %v7161_v46  ;;  %v7159_v43 = vadd.f32 %v7056_v25, %v12459_v14 }
 0x3e1   : > { %8293 = vst.msk [vmem:[%s10666_s16 + $0x230] sm:$0xff] %vm8222_vm6, %v8212_v24  ;;  %vm8048_vm0 = vcmp.gt.f32.partialorder %v7968_v60, 0.0  ;;  %v8130_v50 = vmul.f32 %v12487_v37, %v7968_v60  ;;  %v7971_v32 = vadd.f32 %v12796_v23, %v7886_v42  ;;  %v7884_v35 = vmul.f32 %v12788_v11, %v7799_v41  ;;  %v10054_v31 = vpop.f32.mrf.mxu1 }
 0x3e2   : > { %v10136_v22 = vpop.f32.mrf.mxu0  ;;  %v7889_v62 = vmul.f32 %v12788_v11, %v7804_v19  ;;  %v7802_v51 = vadd.f32 %v7699_v21, %v7159_v43  ;;  %v7162_v27 = vadd.f32 %v10054_v31, %v13301_v30 }
 0x3e3   : > { %v8210_v49 = vsel %vm8048_vm0, %v7968_v60, %v8130_v50  ;;  %vm8051_vm1 = vcmp.gt.f32.partialorder %v7971_v32, 0.0  ;;  %v8133_v14 = vmul.f32 %v12487_v37, %v7971_v32  ;;  %v7969_v5 = vadd.f32 %v12796_v23, %v7884_v35  ;;  %v7059_v48 = vpop.f32.mrf.mxu1 }
 0x3e4   : > { %v7702_v20 = vpop.f32.mrf.mxu0  ;;  %8291 = vst.msk [vmem:[%s10666_s16 + $0x220] sm:$0xff] %vm8222_vm6, %v8210_v49  ;;  %v7974_v56 = vadd.f32 %v12796_v23, %v7889_v62  ;;  %v7887_v55 = vmul.f32 %v12788_v11, %v7802_v51  ;;  %v7805_v2 = vadd.f32 %v10136_v22, %v7162_v27  ;;  %v7160_v36 = vadd.f32 %v7059_v48, %v12465_v3 }
 0x3e5   : > { %v8213_v7 = vsel %vm8051_vm1, %v7971_v32, %v8133_v14  ;;  %vm8049_vm2 = vcmp.gt.f32.partialorder %v7969_v5, 0.0  ;;  %v8131_v17 = vmul.f32 %v12487_v37, %v7969_v5  ;;  %v10057_v29 = vpop.f32.mrf.mxu1 }
 0x3e6   : > { %v10139_v1 = vpop.f32.mrf.mxu0  ;;  %8294 = vst.msk [vmem:[%s10666_s16 + $0x238] sm:$0xff] %vm8222_vm6, %v8213_v7  ;;  %vm8054_vm3 = vcmp.gt.f32.partialorder %v7974_v56, 0.0  ;;  %v8136_v0 = vmul.f32 %v12487_v37, %v7974_v56  ;;  %v7972_v4 = vadd.f32 %v12796_v23, %v7887_v55  ;;  %v7890_v18 = vmul.f32 %v12788_v11, %v7805_v2 }
 0x3e7   : > { %v8211_v26 = vsel %vm8049_vm2, %v7969_v5, %v8131_v17  ;;  %v7803_v28 = vadd.f32 %v7702_v20, %v7160_v36  ;;  %v7165_v3 = vadd.f32 %v10057_v29, %v12468_v15  ;;  %v7072_v6 = vpop.f32.mrf.mxu1 }
 0x3e8   : > { %v7715_v9 = vpop.f32.mrf.mxu0  ;;  %8292 = vst.msk [vmem:[%s10666_s16 + $0x228] sm:$0xff] %vm8222_vm6, %v8211_v26  ;;  %v8216_v34 = vsel %vm8054_vm3, %v7974_v56, %v8136_v0  ;;  %vm8052_vm4 = vcmp.gt.f32.partialorder %v7972_v4, 0.0  ;;  %v8134_v38 = vmul.f32 %v12487_v37, %v7972_v4  ;;  %v7975_v13 = vadd.f32 %v12796_v23, %v7890_v18 }
 0x3e9   : > { %8297 = vst.msk [vmem:[%s10666_s16 + $0x250] sm:$0xff] %vm8222_vm6, %v8216_v34  ;;  %v7888_v10 = vmul.f32 %v12788_v11, %v7803_v28  ;;  %v7808_v33 = vadd.f32 %v10139_v1, %v7165_v3  ;;  %v7163_v57 = vadd.f32 %v7072_v6, %v12471_v8  ;;  %v10058_v15 = vpop.f32.mrf.mxu1  ;;  %v13303_v8 = vld [vmem:[#allocation24_spill] sm:$0xff] }
 0x3ea   : > { %v10140_v39 = vpop.f32.mrf.mxu0  ;;  %v8214_v61 = vsel %vm8052_vm4, %v7972_v4, %v8134_v38  ;;  %vm8055_vm5 = vcmp.gt.f32.partialorder %v7975_v13, 0.0  ;;  %v8137_v54 = vmul.f32 %v12487_v37, %v7975_v13  ;;  %v7166_v59 = vadd.f32 %v10058_v15, %v13302_v16 }
 0x3eb   : > { %8295 = vst.msk [vmem:[%s10666_s16 + $0x240] sm:$0xff] %vm8222_vm6, %v8214_v61  ;;  %v7973_v45 = vadd.f32 %v12796_v23, %v7888_v10  ;;  %v7893_v58 = vmul.f32 %v12788_v11, %v7808_v33  ;;  %v7806_v63 = vadd.f32 %v7715_v9, %v7163_v57  ;;  %v7075_v52 = vpop.f32.mrf.mxu1 }
 0x3ec   : > { %v7718_v53 = vpop.f32.mrf.mxu0  ;;  %v8217_v40 = vsel %vm8055_vm5, %v7975_v13, %v8137_v54  ;;  %v7809_v47 = vadd.f32 %v10140_v39, %v7166_v59  ;;  %v7164_v21 = vadd.f32 %v7075_v52, %v13303_v8 }
 0x3ed   : > { %8298 = vst.msk [vmem:[%s10666_s16 + $0x258] sm:$0xff] %vm8222_vm6, %v8217_v40  ;;  %vm8053_vm7 = vcmp.gt.f32.partialorder %v7973_v45, 0.0  ;;  %v8135_v44 = vmul.f32 %v12487_v37, %v7973_v45  ;;  %v7978_v12 = vadd.f32 %v12796_v23, %v7893_v58  ;;  %v7891_v46 = vmul.f32 %v12788_v11, %v7806_v63 }
 0x3ee   : > { %v7894_v60 = vmul.f32 %v12788_v11, %v7809_v47  ;;  %v7807_v42 = vadd.f32 %v7718_v53, %v7164_v21 }
 0x3ef   : > { %v8215_v41 = vsel %vm8053_vm7, %v7973_v45, %v8135_v44  ;;  %vm8058_vm8 = vcmp.gt.f32.partialorder %v7978_v12, 0.0  ;;  %v8140_v25 = vmul.f32 %v12487_v37, %v7978_v12  ;;  %v7976_v22 = vadd.f32 %v12796_v23, %v7891_v46 }
 0x3f0   : > { %8296 = vst.msk [vmem:[%s10666_s16 + $0x248] sm:$0xff] %vm8222_vm6, %v8215_v41  ;;  %v7979_v24 = vadd.f32 %v12796_v23, %v7894_v60  ;;  %v7892_v19 = vmul.f32 %v12788_v11, %v7807_v42 }
 0x3f1   : > { %v8220_v43 = vsel %vm8058_vm8, %v7978_v12, %v8140_v25  ;;  %vm8056_vm9 = vcmp.gt.f32.partialorder %v7976_v22, 0.0  ;;  %v8138_v50 = vmul.f32 %v12487_v37, %v7976_v22 }
 0x3f2   : > { %8301 = vst.msk [vmem:[%s10666_s16 + $0x270] sm:$0xff] %vm8222_vm6, %v8220_v43  ;;  %vm8059_vm10 = vcmp.gt.f32.partialorder %v7979_v24, 0.0  ;;  %v8141_v32 = vmul.f32 %v12487_v37, %v7979_v24  ;;  %v7977_v35 = vadd.f32 %v12796_v23, %v7892_v19 }
 0x3f3   : > { %v8218_v31 = vsel %vm8056_vm9, %v7976_v22, %v8138_v50 }
 0x3f4   : > { %8299 = vst.msk [vmem:[%s10666_s16 + $0x260] sm:$0xff] %vm8222_vm6, %v8218_v31  ;;  %v8221_v20 = vsel %vm8059_vm10, %v7979_v24, %v8141_v32  ;;  %vm8057_vm11 = vcmp.gt.f32.partialorder %v7977_v35, 0.0  ;;  %v8139_v62 = vmul.f32 %v12487_v37, %v7977_v35 }
 0x3f5   : > { %8302 = vst.msk [vmem:[%s10666_s16 + $0x278] sm:$0xff] %vm8222_vm6, %v8221_v20 }
 0x3f6   : > { %v8219_v11 = vsel %vm8057_vm11, %v7977_v35, %v8139_v62 }
 0x3f7   : > { %8300 = vst.msk [vmem:[%s10666_s16 + $0x268] sm:$0xff] %vm8222_vm6, %v8219_v11 }
 0x3f8 PF: > { %s16_s21 = sadd.s32 1, %s10561_s21   ;;  %s13304_s17 = smov %s10553_s19 }
 0x3f9   : > { %p13_p10 = scmp.ge.s32.totalorder %s16_s21, 6   ;;  %s13305_s18 = smov %s10557_s20 }
 0x3fa   : > { %s13306_s19 = smov %s13309_s22  ;;  %s13307_s20 = smov %s13313_s23 }
 0x3fb   :  { %15 = sbr.rel (!%p13_p10) target bundleno = 5 (0x5), region = 100 }
 0x400   :  { %8333 = vsyncpa [#allocation5], 1 }
 0x401   :  { %8335 = vsyncpa [#allocation5 + $0x1], 1 }

</bundles_post_ra>
